<compile_context>
chip_gen: v5e
topology: v5e:2x2
jax: 0.10.0
libtpu: 0.0.40
codegen_flags: <defaults>
</compile_context>

<pallas_src>
import math

import jax
import jax.numpy as jnp
from jax import lax
from jax.experimental import pallas as pl
from jax.experimental.pallas import tpu as pltpu
import numpy as np


# ----------------------------------------------------------------------------
# Pallas kernel: whole TimeDomainBranch forward for a tile of TB batch elems.
# ----------------------------------------------------------------------------
def tdb_kernel(x_ref,
               w1, b1,
               r1w1, r1b1, r1w2, r1b2, r1wa, r1ba,
               r2w1, r2b1, r2w2, r2b2, r2wa, r2ba,
               o_ref, halo, pool):
    TB, L, Cin = x_ref.shape
    cd = w1.dtype                       # matmul operand dtype (bf16 or f32)

    def conv1d(h3, w_ref, b_ref, pad, init=None):
        # h3: (TB, Lh, Ci) f32 value. w_ref: (K, Ci, Co). b_ref: (1, Co) f32.
        # Returns pre-activation (TB, Lh, Co) f32.
        TBv, Lh, Ci = h3.shape
        K = w_ref.shape[0]
        Co = w_ref.shape[2]

        # Stage h3 into the zero-padded halo scratch along the length axis.
        halo[:, pl.ds(0, pad), 0:Ci] = jnp.zeros((TBv, pad, Ci), jnp.float32)
        halo[:, pl.ds(pad, Lh), 0:Ci] = h3
        halo[:, pl.ds(pad + Lh, pad), 0:Ci] = jnp.zeros((TBv, pad, Ci),
                                                        jnp.float32)

        # Bias (and optional residual term) folded into the accumulator init.
        acc = b_ref[...] if init is None else init + b_ref[...]
        for k in range(K):              # static, fully unrolled tap loop
            xs = halo[:, pl.ds(k, Lh), 0:Ci]      # shifted read: no roll/mask
            xs = xs.reshape(TBv * Lh, Ci).astype(cd)
            acc = acc + jnp.dot(xs, w_ref[k],
                                preferred_element_type=jnp.float32)
        return acc.reshape(TBv, Lh, Co)

    def maxpool2(h3):
        # MaxPool1d(kernel_size=2, stride=2) along the length axis.
        TBv, Lh, C = h3.shape
        R = TBv * Lh                    # Lh even -> pairs never cross elements
        pool[pl.ds(0, R), 0:C] = h3.reshape(R, C)
        ev = pool[pl.ds(0, R // 2, 2), 0:C]
        od = pool[pl.ds(1, R // 2, 2), 0:C]
        return jnp.maximum(ev, od).reshape(TBv, Lh // 2, C)

    def resblock(h3, cw1, cb1, cw2, cb2, wa_ref, ba_ref):
        TBv, Lh, Ci = h3.shape
        out = jnp.maximum(conv1d(h3, cw1, cb1, pad=1), 0.0)
        # 1x1-conv identity path, folded into the second conv's accumulator.
        ident = jnp.dot(h3.reshape(TBv * Lh, Ci).astype(cd), wa_ref[...],
                        preferred_element_type=jnp.float32) + ba_ref[...]
        out = conv1d(out, cw2, cb2, pad=1, init=ident)
        return jnp.maximum(out, 0.0)

    x = x_ref[...]                                             # (TB, L,   Cin)
    h = jnp.maximum(conv1d(x, w1, b1, pad=2), 0.0)             # (TB, L,   64)
    h = maxpool2(h)                                            # (TB, L/2, 64)
    h = resblock(h, r1w1, r1b1, r1w2, r1b2, r1wa, r1ba)        # (TB, L/2, 32)
    h = maxpool2(h)                                            # (TB, L/4, 32)
    h = resblock(h, r2w1, r2b1, r2w2, r2b2, r2wa, r2ba)        # (TB, L/4, 16)

    # Single (TB*l_out, 16) slab store per grid step.
    # TODO(synk): for large L emit NCL directly (lane-dense l_out axis on the
    # lanes) and drop the wrapper-side transpose.
    o_ref[...] = h.astype(o_ref.dtype)


# ----------------------------------------------------------------------------
# Wrapper: layout plumbing + pallas_call
# ----------------------------------------------------------------------------
def time_domain_branch(x_ncl, params, *, batch_tile=4,
                       compute_dtype=jnp.bfloat16):
    N, Cin, L = x_ncl.shape
    assert L % 4 == 0, "two 2x max-pools require L % 4 == 0"
    # (L a multiple of 32 keeps every intermediate length a multiple of 8
    #  sublanes, so all in-kernel reshapes are layout-trivial.)

    TB = max(1, min(batch_tile, N))
    n_tiles = -(-N // TB)
    Npad = n_tiles * TB

    x_nlc = jnp.transpose(x_ncl, (0, 2, 1)).astype(jnp.float32)   # (N, L, Cin)
    if Npad != N:
        x_nlc = jnp.concatenate(
            [x_nlc, jnp.zeros((Npad - N, L, Cin), jnp.float32)], axis=0)

    cd = compute_dtype

    def wk(w):    # torch conv weight (Cout, Cin, K) -> (K, Cin, Cout)
        return jnp.transpose(w, (2, 1, 0)).astype(cd)

    def adj(w):   # 1x1 conv weight (Cout, Cin, 1) -> (Cin, Cout)
        return jnp.transpose(w[:, :, 0]).astype(cd)

    def b2(b):    # (Cout,) -> (1, Cout) for lane broadcast, kept in f32
        return b[None, :].astype(jnp.float32)

    args = [
        x_nlc,
        wk(params["conv1_w"]), b2(params["conv1_b"]),
        wk(params["r1_c1_w"]), b2(params["r1_c1_b"]),
        wk(params["r1_c2_w"]), b2(params["r1_c2_b"]),
        adj(params["r1_adj_w"]), b2(params["r1_adj_b"]),
        wk(params["r2_c1_w"]), b2(params["r2_c1_b"]),
        wk(params["r2_c2_w"]), b2(params["r2_c2_b"]),
        adj(params["r2_adj_w"]), b2(params["r2_adj_b"]),
    ]

    def full_spec(a):
        r = a.ndim
        return pl.BlockSpec(a.shape, lambda n, _r=r: (0,) * _r)

    in_specs = [pl.BlockSpec((TB, L, Cin), lambda n: (n, 0, 0))]
    in_specs += [full_spec(a) for a in args[1:]]

    conv_ch = params["conv1_w"].shape[0]          # 64
    cr1 = params["r1_c1_w"].shape[0]              # 32
    cr2 = params["r2_c1_w"].shape[0]              # 16
    l_out = L // 4

    # Advisory scheduling hint for XLA (multiply-add counted as 2 flops).
    flops = 2 * Npad * (
        L * 5 * Cin * conv_ch
        + (L // 2) * (3 * conv_ch * cr1 + 3 * cr1 * cr1 + conv_ch * cr1)
        + (L // 4) * (3 * cr1 * cr2 + 3 * cr2 * cr2 + cr1 * cr2))
    bytes_accessed = int(
        x_nlc.size * 4 + Npad * l_out * cr2 * 4
        + sum(int(a.size) * a.dtype.itemsize for a in args[1:]))
    cost = pl.CostEstimate(flops=int(flops), transcendentals=0,
                           bytes_accessed=bytes_accessed)

    out = pl.pallas_call(
        tdb_kernel,
        out_shape=jax.ShapeDtypeStruct((Npad, l_out, cr2), jnp.float32),
        grid=(n_tiles,),
        in_specs=in_specs,
        out_specs=pl.BlockSpec((TB, l_out, cr2), lambda n: (n, 0, 0)),
        scratch_shapes=[
            pltpu.VMEM((TB, L + 4, conv_ch), jnp.float32),    # conv halo buffer
            pltpu.VMEM((TB * L, conv_ch), jnp.float32),       # max-pool buffer
        ],
        compiler_params=pltpu.CompilerParams(
            dimension_semantics=("parallel",)),
        cost_estimate=cost,
    )(*args)

    return jnp.transpose(out[:N], (0, 2, 1))      # back to NCL (N, 16, L//4)


# ----------------------------------------------------------------------------
# Deterministic parameter init (PyTorch Conv1d default-style uniform bounds)
# ----------------------------------------------------------------------------
def init_params(key):
    def conv_init(k, cout, cin, ksz):
        kw, kb = jax.random.split(k)
        bound = 1.0 / math.sqrt(cin * ksz)
        w = jax.random.uniform(kw, (cout, cin, ksz), jnp.float32, -bound, bound)
        b = jax.random.uniform(kb, (cout,), jnp.float32, -bound, bound)
        return w, b

    keys = jax.random.split(key, 7)
    p = {}
    p["conv1_w"], p["conv1_b"] = conv_init(keys[0], 64, 3, 5)
    p["r1_c1_w"], p["r1_c1_b"] = conv_init(keys[1], 32, 64, 3)
    p["r1_c2_w"], p["r1_c2_b"] = conv_init(keys[2], 32, 32, 3)
    p["r1_adj_w"], p["r1_adj_b"] = conv_init(keys[3], 32, 64, 1)
    p["r2_c1_w"], p["r2_c1_b"] = conv_init(keys[4], 16, 32, 3)
    p["r2_c2_w"], p["r2_c2_b"] = conv_init(keys[5], 16, 16, 3)
    p["r2_adj_w"], p["r2_adj_b"] = conv_init(keys[6], 16, 32, 1)
    return p


# ----------------------------------------------------------------------------
# Pure-JAX reference (NCL layout, mirrors the PyTorch module exactly)
# ----------------------------------------------------------------------------
def conv1d_ref(x, w, b, pad):
    out = lax.conv_general_dilated(
        x, w, window_strides=(1,), padding=[(pad, pad)],
        dimension_numbers=("NCH", "OIH", "NCH"))
    return out + b[None, :, None]


def maxpool_ref(x):
    N, C, L = x.shape
    return jnp.max(x.reshape(N, C, L // 2, 2), axis=-1)


def forward_ref(x, p):
    relu = lambda t: jnp.maximum(t, 0.0)
    h = relu(conv1d_ref(x, p["conv1_w"], p["conv1_b"], 2))
    h = maxpool_ref(h)
    out = relu(conv1d_ref(h, p["r1_c1_w"], p["r1_c1_b"], 1))
    out = conv1d_ref(out, p["r1_c2_w"], p["r1_c2_b"], 1)
    idn = conv1d_ref(h, p["r1_adj_w"], p["r1_adj_b"], 0)
    h = relu(out + idn)
    h = maxpool_ref(h)
    out = relu(conv1d_ref(h, p["r2_c1_w"], p["r2_c1_b"], 1))
    out = conv1d_ref(out, p["r2_c2_w"], p["r2_c2_b"], 1)
    idn = conv1d_ref(h, p["r2_adj_w"], p["r2_adj_b"], 0)
    h = relu(out + idn)
    return h


if __name__ == "__main__":
    key = jax.random.PRNGKey(0)
    kx, kp = jax.random.split(key)

    N, Cin, L = 6, 3, 64              # batch of 6 -> padded to 2 tiles of TB=4
    x = jax.random.normal(kx, (N, Cin, L), jnp.float32)
    params = init_params(kp)
    ref = forward_ref(x, params)

    # Bit-accurate path (f32 matmul operands): tight check of module semantics.
    out_f32 = jax.block_until_ready(
        time_domain_branch(x, params, batch_tile=4, compute_dtype=jnp.float32))
    assert out_f32.shape == (N, 16, L // 4), out_f32.shape
    np.testing.assert_allclose(np.asarray(out_f32), np.asarray(ref),
                               rtol=1e-4, atol=1e-4)

    # Default fast path: bf16 matmul operands, f32 accumulation (full-rate MXU
    # on v6e/v7x). Looser tolerance accounts for bf16 operand rounding.
    out_bf16 = jax.block_until_ready(
        time_domain_branch(x, params, batch_tile=4))
    assert out_bf16.shape == (N, 16, L // 4), out_bf16.shape
    np.testing.assert_allclose(np.asarray(out_bf16), np.asarray(ref),
                               rtol=5e-2, atol=5e-2)

    print("KERNEL_OK")
</pallas_src>

<mosaic_0001>
module attributes {stable_mosaic.version = 11 : i64} {
  func.func @tdb_kernel(%arg0: i32, %arg1: memref<4x64x3xf32, #tpu.memory_space<vmem>>, %arg2: memref<5x3x64xf32, #tpu.memory_space<vmem>>, %arg3: memref<1x64xf32, #tpu.memory_space<vmem>>, %arg4: memref<3x64x32xf32, #tpu.memory_space<vmem>>, %arg5: memref<1x32xf32, #tpu.memory_space<vmem>>, %arg6: memref<3x32x32xf32, #tpu.memory_space<vmem>>, %arg7: memref<1x32xf32, #tpu.memory_space<vmem>>, %arg8: memref<64x32xf32, #tpu.memory_space<vmem>>, %arg9: memref<1x32xf32, #tpu.memory_space<vmem>>, %arg10: memref<3x32x16xf32, #tpu.memory_space<vmem>>, %arg11: memref<1x16xf32, #tpu.memory_space<vmem>>, %arg12: memref<3x16x16xf32, #tpu.memory_space<vmem>>, %arg13: memref<1x16xf32, #tpu.memory_space<vmem>>, %arg14: memref<32x16xf32, #tpu.memory_space<vmem>>, %arg15: memref<1x16xf32, #tpu.memory_space<vmem>>, %arg16: memref<4x16x16xf32, #tpu.memory_space<vmem>>, %arg17: memref<4x68x64xf32, #tpu.memory_space<vmem>>, %arg18: memref<256x64xf32, #tpu.memory_space<vmem>>) attributes {dimension_semantics = [#tpu.dimension_semantics<parallel>], iteration_bounds = array<i64: 2>, scalar_prefetch = 0 : i64, scratch_operands = 2 : i64, tpu.core_type = #tpu.core_type<tc>, window_params = [{transform_indices = @transform_0, window_bounds = array<i64: 4, 64, 3>}, {pipeline_mode = #tpu.pipeline_mode<synchronous>, transform_indices = @transform_1, window_bounds = array<i64: 5, 3, 64>}, {pipeline_mode = #tpu.pipeline_mode<synchronous>, transform_indices = @transform_2, window_bounds = array<i64: 1, 64>}, {pipeline_mode = #tpu.pipeline_mode<synchronous>, transform_indices = @transform_3, window_bounds = array<i64: 3, 64, 32>}, {pipeline_mode = #tpu.pipeline_mode<synchronous>, transform_indices = @transform_4, window_bounds = array<i64: 1, 32>}, {pipeline_mode = #tpu.pipeline_mode<synchronous>, transform_indices = @transform_5, window_bounds = array<i64: 3, 32, 32>}, {pipeline_mode = #tpu.pipeline_mode<synchronous>, transform_indices = @transform_6, window_bounds = array<i64: 1, 32>}, {pipeline_mode = #tpu.pipeline_mode<synchronous>, transform_indices = @transform_7, window_bounds = array<i64: 64, 32>}, {pipeline_mode = #tpu.pipeline_mode<synchronous>, transform_indices = @transform_8, window_bounds = array<i64: 1, 32>}, {pipeline_mode = #tpu.pipeline_mode<synchronous>, transform_indices = @transform_9, window_bounds = array<i64: 3, 32, 16>}, {pipeline_mode = #tpu.pipeline_mode<synchronous>, transform_indices = @transform_10, window_bounds = array<i64: 1, 16>}, {pipeline_mode = #tpu.pipeline_mode<synchronous>, transform_indices = @transform_11, window_bounds = array<i64: 3, 16, 16>}, {pipeline_mode = #tpu.pipeline_mode<synchronous>, transform_indices = @transform_12, window_bounds = array<i64: 1, 16>}, {pipeline_mode = #tpu.pipeline_mode<synchronous>, transform_indices = @transform_13, window_bounds = array<i64: 32, 16>}, {pipeline_mode = #tpu.pipeline_mode<synchronous>, transform_indices = @transform_14, window_bounds = array<i64: 1, 16>}, {transform_indices = @transform_15, window_bounds = array<i64: 4, 16, 16>}]} {
    %c0 = arith.constant 0 : index
    %c0_0 = arith.constant 0 : index
    %c0_1 = arith.constant 0 : index
    %0 = vector.load %arg1[%c0, %c0_0, %c0_1] : memref<4x64x3xf32, #tpu.memory_space<vmem>>, vector<4x64x3xf32>
    %cst = arith.constant 0.000000e+00 : f32
    %1 = vector.broadcast %cst : f32 to vector<4x2x3xf32>
    %c0_2 = arith.constant 0 : index
    %c0_3 = arith.constant 0 : index
    %c0_4 = arith.constant 0 : index
    %2 = vector.load %arg17[%c0_2, %c0_3, %c0_4] : memref<4x68x64xf32, #tpu.memory_space<vmem>>, vector<4x2x3xf32>
    tpu.vector_store %arg17[%c0_2, %c0_3, %c0_4], %1 {strides = array<i32>} : memref<4x68x64xf32, #tpu.memory_space<vmem>>, vector<4x2x3xf32>,
    %c0_5 = arith.constant 0 : index
    %c2 = arith.constant 2 : index
    %c0_6 = arith.constant 0 : index
    %3 = vector.load %arg17[%c0_5, %c2, %c0_6] : memref<4x68x64xf32, #tpu.memory_space<vmem>>, vector<4x64x3xf32>
    tpu.vector_store %arg17[%c0_5, %c2, %c0_6], %0 {strides = array<i32>} : memref<4x68x64xf32, #tpu.memory_space<vmem>>, vector<4x64x3xf32>,
    %cst_7 = arith.constant 0.000000e+00 : f32
    %4 = vector.broadcast %cst_7 : f32 to vector<4x2x3xf32>
    %c0_8 = arith.constant 0 : index
    %c66 = arith.constant 66 : index
    %c0_9 = arith.constant 0 : index
    %5 = vector.load %arg17[%c0_8, %c66, %c0_9] : memref<4x68x64xf32, #tpu.memory_space<vmem>>, vector<4x2x3xf32>
    tpu.vector_store %arg17[%c0_8, %c66, %c0_9], %4 {strides = array<i32>} : memref<4x68x64xf32, #tpu.memory_space<vmem>>, vector<4x2x3xf32>,
    %c0_10 = arith.constant 0 : index
    %c0_11 = arith.constant 0 : index
    %6 = vector.load %arg3[%c0_10, %c0_11] : memref<1x64xf32, #tpu.memory_space<vmem>>, vector<1x64xf32>
    %c0_12 = arith.constant 0 : index
    %c0_13 = arith.constant 0 : index
    %c0_14 = arith.constant 0 : index
    %7 = vector.load %arg17[%c0_12, %c0_13, %c0_14] : memref<4x68x64xf32, #tpu.memory_space<vmem>>, vector<4x64x3xf32>
    %8 = vector.shape_cast %7 : vector<4x64x3xf32> to vector<256x3xf32>
    %c0_15 = arith.constant 0 : index
    %c0_16 = arith.constant 0 : index
    %c0_17 = arith.constant 0 : index
    %9 = vector.load %arg2[%c0_15, %c0_16, %c0_17] : memref<5x3x64xf32, #tpu.memory_space<vmem>>, vector<1x3x64xf32>
    %10 = vector.shape_cast %9 : vector<1x3x64xf32> to vector<3x64xf32>
    %cst_18 = arith.constant dense<0.000000e+00> : vector<256x64xf32>
    %11 = tpu.matmul %8, %10, %cst_18 {dimension_numbers = #tpu.dot_dimension_numbers<[1], [0], [0], [1], [0, 0, 1, 1], [], []>} : vector<256x3xf32>, vector<3x64xf32>, vector<256x64xf32> -> vector<256x64xf32>
    %12 = vector.broadcast %6 : vector<1x64xf32> to vector<256x64xf32>
    %13 = arith.addf %12, %11 : vector<256x64xf32>
    %c0_19 = arith.constant 0 : index
    %c1 = arith.constant 1 : index
    %c0_20 = arith.constant 0 : index
    %14 = vector.load %arg17[%c0_19, %c1, %c0_20] : memref<4x68x64xf32, #tpu.memory_space<vmem>>, vector<4x64x3xf32>
    %15 = vector.shape_cast %14 : vector<4x64x3xf32> to vector<256x3xf32>
    %c1_21 = arith.constant 1 : index
    %c0_22 = arith.constant 0 : index
    %c0_23 = arith.constant 0 : index
    %16 = vector.load %arg2[%c1_21, %c0_22, %c0_23] : memref<5x3x64xf32, #tpu.memory_space<vmem>>, vector<1x3x64xf32>
    %17 = vector.shape_cast %16 : vector<1x3x64xf32> to vector<3x64xf32>
    %cst_24 = arith.constant dense<0.000000e+00> : vector<256x64xf32>
    %18 = tpu.matmul %15, %17, %cst_24 {dimension_numbers = #tpu.dot_dimension_numbers<[1], [0], [0], [1], [0, 0, 1, 1], [], []>} : vector<256x3xf32>, vector<3x64xf32>, vector<256x64xf32> -> vector<256x64xf32>
    %19 = arith.addf %13, %18 : vector<256x64xf32>
    %c0_25 = arith.constant 0 : index
    %c2_26 = arith.constant 2 : index
    %c0_27 = arith.constant 0 : index
    %20 = vector.load %arg17[%c0_25, %c2_26, %c0_27] : memref<4x68x64xf32, #tpu.memory_space<vmem>>, vector<4x64x3xf32>
    %21 = vector.shape_cast %20 : vector<4x64x3xf32> to vector<256x3xf32>
    %c2_28 = arith.constant 2 : index
    %c0_29 = arith.constant 0 : index
    %c0_30 = arith.constant 0 : index
    %22 = vector.load %arg2[%c2_28, %c0_29, %c0_30] : memref<5x3x64xf32, #tpu.memory_space<vmem>>, vector<1x3x64xf32>
    %23 = vector.shape_cast %22 : vector<1x3x64xf32> to vector<3x64xf32>
    %cst_31 = arith.constant dense<0.000000e+00> : vector<256x64xf32>
    %24 = tpu.matmul %21, %23, %cst_31 {dimension_numbers = #tpu.dot_dimension_numbers<[1], [0], [0], [1], [0, 0, 1, 1], [], []>} : vector<256x3xf32>, vector<3x64xf32>, vector<256x64xf32> -> vector<256x64xf32>
    %25 = arith.addf %19, %24 : vector<256x64xf32>
    %c0_32 = arith.constant 0 : index
    %c3 = arith.constant 3 : index
    %c0_33 = arith.constant 0 : index
    %26 = vector.load %arg17[%c0_32, %c3, %c0_33] : memref<4x68x64xf32, #tpu.memory_space<vmem>>, vector<4x64x3xf32>
    %27 = vector.shape_cast %26 : vector<4x64x3xf32> to vector<256x3xf32>
    %c3_34 = arith.constant 3 : index
    %c0_35 = arith.constant 0 : index
    %c0_36 = arith.constant 0 : index
    %28 = vector.load %arg2[%c3_34, %c0_35, %c0_36] : memref<5x3x64xf32, #tpu.memory_space<vmem>>, vector<1x3x64xf32>
    %29 = vector.shape_cast %28 : vector<1x3x64xf32> to vector<3x64xf32>
    %cst_37 = arith.constant dense<0.000000e+00> : vector<256x64xf32>
    %30 = tpu.matmul %27, %29, %cst_37 {dimension_numbers = #tpu.dot_dimension_numbers<[1], [0], [0], [1], [0, 0, 1, 1], [], []>} : vector<256x3xf32>, vector<3x64xf32>, vector<256x64xf32> -> vector<256x64xf32>
    %31 = arith.addf %25, %30 : vector<256x64xf32>
    %c0_38 = arith.constant 0 : index
    %c4 = arith.constant 4 : index
    %c0_39 = arith.constant 0 : index
    %32 = vector.load %arg17[%c0_38, %c4, %c0_39] : memref<4x68x64xf32, #tpu.memory_space<vmem>>, vector<4x64x3xf32>
    %33 = vector.shape_cast %32 : vector<4x64x3xf32> to vector<256x3xf32>
    %c4_40 = arith.constant 4 : index
    %c0_41 = arith.constant 0 : index
    %c0_42 = arith.constant 0 : index
    %34 = vector.load %arg2[%c4_40, %c0_41, %c0_42] : memref<5x3x64xf32, #tpu.memory_space<vmem>>, vector<1x3x64xf32>
    %35 = vector.shape_cast %34 : vector<1x3x64xf32> to vector<3x64xf32>
    %cst_43 = arith.constant dense<0.000000e+00> : vector<256x64xf32>
    %36 = tpu.matmul %33, %35, %cst_43 {dimension_numbers = #tpu.dot_dimension_numbers<[1], [0], [0], [1], [0, 0, 1, 1], [], []>} : vector<256x3xf32>, vector<3x64xf32>, vector<256x64xf32> -> vector<256x64xf32>
    %37 = arith.addf %31, %36 : vector<256x64xf32>
    %38 = vector.shape_cast %37 : vector<256x64xf32> to vector<4x64x64xf32>
    %cst_44 = arith.constant 0.000000e+00 : f32
    %39 = vector.broadcast %cst_44 : f32 to vector<4x64x64xf32>
    %40 = arith.maximumf %38, %39 : vector<4x64x64xf32>
    %41 = vector.shape_cast %40 : vector<4x64x64xf32> to vector<256x64xf32>
    %c0_45 = arith.constant 0 : index
    %c0_46 = arith.constant 0 : index
    %42 = vector.load %arg18[%c0_45, %c0_46] : memref<256x64xf32, #tpu.memory_space<vmem>>, vector<256x64xf32>
    tpu.vector_store %arg18[%c0_45, %c0_46], %41 {strides = array<i32>} : memref<256x64xf32, #tpu.memory_space<vmem>>, vector<256x64xf32>,
    %c0_47 = arith.constant 0 : index
    %c0_48 = arith.constant 0 : index
    %43 = tpu.strided_load %arg18[%c0_47, %c0_48] {strides = array<i32: 2, 1>} : memref<256x64xf32, #tpu.memory_space<vmem>>, vector<128x64xf32>
    %c1_49 = arith.constant 1 : index
    %c0_50 = arith.constant 0 : index
    %44 = tpu.strided_load %arg18[%c1_49, %c0_50] {strides = array<i32: 2, 1>} : memref<256x64xf32, #tpu.memory_space<vmem>>, vector<128x64xf32>
    %45 = arith.maximumf %43, %44 : vector<128x64xf32>
    %46 = vector.shape_cast %45 : vector<128x64xf32> to vector<4x32x64xf32>
    %cst_51 = arith.constant 0.000000e+00 : f32
    %47 = vector.broadcast %cst_51 : f32 to vector<4x1x64xf32>
    %c0_52 = arith.constant 0 : index
    %c0_53 = arith.constant 0 : index
    %c0_54 = arith.constant 0 : index
    %48 = vector.load %arg17[%c0_52, %c0_53, %c0_54] : memref<4x68x64xf32, #tpu.memory_space<vmem>>, vector<4x1x64xf32>
    tpu.vector_store %arg17[%c0_52, %c0_53, %c0_54], %47 {strides = array<i32>} : memref<4x68x64xf32, #tpu.memory_space<vmem>>, vector<4x1x64xf32>,
    %c0_55 = arith.constant 0 : index
    %c1_56 = arith.constant 1 : index
    %c0_57 = arith.constant 0 : index
    %49 = vector.load %arg17[%c0_55, %c1_56, %c0_57] : memref<4x68x64xf32, #tpu.memory_space<vmem>>, vector<4x32x64xf32>
    tpu.vector_store %arg17[%c0_55, %c1_56, %c0_57], %46 {strides = array<i32>} : memref<4x68x64xf32, #tpu.memory_space<vmem>>, vector<4x32x64xf32>,
    %cst_58 = arith.constant 0.000000e+00 : f32
    %50 = vector.broadcast %cst_58 : f32 to vector<4x1x64xf32>
    %c0_59 = arith.constant 0 : index
    %c33 = arith.constant 33 : index
    %c0_60 = arith.constant 0 : index
    %51 = vector.load %arg17[%c0_59, %c33, %c0_60] : memref<4x68x64xf32, #tpu.memory_space<vmem>>, vector<4x1x64xf32>
    tpu.vector_store %arg17[%c0_59, %c33, %c0_60], %50 {strides = array<i32>} : memref<4x68x64xf32, #tpu.memory_space<vmem>>, vector<4x1x64xf32>,
    %c0_61 = arith.constant 0 : index
    %c0_62 = arith.constant 0 : index
    %52 = vector.load %arg5[%c0_61, %c0_62] : memref<1x32xf32, #tpu.memory_space<vmem>>, vector<1x32xf32>
    %c0_63 = arith.constant 0 : index
    %c0_64 = arith.constant 0 : index
    %c0_65 = arith.constant 0 : index
    %53 = vector.load %arg17[%c0_63, %c0_64, %c0_65] : memref<4x68x64xf32, #tpu.memory_space<vmem>>, vector<4x32x64xf32>
    %54 = vector.shape_cast %53 : vector<4x32x64xf32> to vector<128x64xf32>
    %c0_66 = arith.constant 0 : index
    %c0_67 = arith.constant 0 : index
    %c0_68 = arith.constant 0 : index
    %55 = vector.load %arg4[%c0_66, %c0_67, %c0_68] : memref<3x64x32xf32, #tpu.memory_space<vmem>>, vector<1x64x32xf32>
    %56 = vector.shape_cast %55 : vector<1x64x32xf32> to vector<64x32xf32>
    %cst_69 = arith.constant dense<0.000000e+00> : vector<128x32xf32>
    %57 = tpu.matmul %54, %56, %cst_69 {dimension_numbers = #tpu.dot_dimension_numbers<[1], [0], [0], [1], [0, 0, 1, 1], [], []>} : vector<128x64xf32>, vector<64x32xf32>, vector<128x32xf32> -> vector<128x32xf32>
    %58 = vector.broadcast %52 : vector<1x32xf32> to vector<128x32xf32>
    %59 = arith.addf %58, %57 : vector<128x32xf32>
    %c0_70 = arith.constant 0 : index
    %c1_71 = arith.constant 1 : index
    %c0_72 = arith.constant 0 : index
    %60 = vector.load %arg17[%c0_70, %c1_71, %c0_72] : memref<4x68x64xf32, #tpu.memory_space<vmem>>, vector<4x32x64xf32>
    %61 = vector.shape_cast %60 : vector<4x32x64xf32> to vector<128x64xf32>
    %c1_73 = arith.constant 1 : index
    %c0_74 = arith.constant 0 : index
    %c0_75 = arith.constant 0 : index
    %62 = vector.load %arg4[%c1_73, %c0_74, %c0_75] : memref<3x64x32xf32, #tpu.memory_space<vmem>>, vector<1x64x32xf32>
    %63 = vector.shape_cast %62 : vector<1x64x32xf32> to vector<64x32xf32>
    %cst_76 = arith.constant dense<0.000000e+00> : vector<128x32xf32>
    %64 = tpu.matmul %61, %63, %cst_76 {dimension_numbers = #tpu.dot_dimension_numbers<[1], [0], [0], [1], [0, 0, 1, 1], [], []>} : vector<128x64xf32>, vector<64x32xf32>, vector<128x32xf32> -> vector<128x32xf32>
    %65 = arith.addf %59, %64 : vector<128x32xf32>
    %c0_77 = arith.constant 0 : index
    %c2_78 = arith.constant 2 : index
    %c0_79 = arith.constant 0 : index
    %66 = vector.load %arg17[%c0_77, %c2_78, %c0_79] : memref<4x68x64xf32, #tpu.memory_space<vmem>>, vector<4x32x64xf32>
    %67 = vector.shape_cast %66 : vector<4x32x64xf32> to vector<128x64xf32>
    %c2_80 = arith.constant 2 : index
    %c0_81 = arith.constant 0 : index
    %c0_82 = arith.constant 0 : index
    %68 = vector.load %arg4[%c2_80, %c0_81, %c0_82] : memref<3x64x32xf32, #tpu.memory_space<vmem>>, vector<1x64x32xf32>
    %69 = vector.shape_cast %68 : vector<1x64x32xf32> to vector<64x32xf32>
    %cst_83 = arith.constant dense<0.000000e+00> : vector<128x32xf32>
    %70 = tpu.matmul %67, %69, %cst_83 {dimension_numbers = #tpu.dot_dimension_numbers<[1], [0], [0], [1], [0, 0, 1, 1], [], []>} : vector<128x64xf32>, vector<64x32xf32>, vector<128x32xf32> -> vector<128x32xf32>
    %71 = arith.addf %65, %70 : vector<128x32xf32>
    %72 = vector.shape_cast %71 : vector<128x32xf32> to vector<4x32x32xf32>
    %cst_84 = arith.constant 0.000000e+00 : f32
    %73 = vector.broadcast %cst_84 : f32 to vector<4x32x32xf32>
    %74 = arith.maximumf %72, %73 : vector<4x32x32xf32>
    %75 = vector.shape_cast %46 : vector<4x32x64xf32> to vector<128x64xf32>
    %c0_85 = arith.constant 0 : index
    %c0_86 = arith.constant 0 : index
    %76 = vector.load %arg8[%c0_85, %c0_86] : memref<64x32xf32, #tpu.memory_space<vmem>>, vector<64x32xf32>
    %cst_87 = arith.constant dense<0.000000e+00> : vector<128x32xf32>
    %77 = tpu.matmul %75, %76, %cst_87 {dimension_numbers = #tpu.dot_dimension_numbers<[1], [0], [0], [1], [0, 0, 1, 1], [], []>} : vector<128x64xf32>, vector<64x32xf32>, vector<128x32xf32> -> vector<128x32xf32>
    %c0_88 = arith.constant 0 : index
    %c0_89 = arith.constant 0 : index
    %78 = vector.load %arg9[%c0_88, %c0_89] : memref<1x32xf32, #tpu.memory_space<vmem>>, vector<1x32xf32>
    %79 = vector.broadcast %78 : vector<1x32xf32> to vector<128x32xf32>
    %80 = arith.addf %77, %79 : vector<128x32xf32>
    %cst_90 = arith.constant 0.000000e+00 : f32
    %81 = vector.broadcast %cst_90 : f32 to vector<4x1x32xf32>
    %c0_91 = arith.constant 0 : index
    %c0_92 = arith.constant 0 : index
    %c0_93 = arith.constant 0 : index
    %82 = vector.load %arg17[%c0_91, %c0_92, %c0_93] : memref<4x68x64xf32, #tpu.memory_space<vmem>>, vector<4x1x32xf32>
    tpu.vector_store %arg17[%c0_91, %c0_92, %c0_93], %81 {strides = array<i32>} : memref<4x68x64xf32, #tpu.memory_space<vmem>>, vector<4x1x32xf32>,
    %c0_94 = arith.constant 0 : index
    %c1_95 = arith.constant 1 : index
    %c0_96 = arith.constant 0 : index
    %83 = vector.load %arg17[%c0_94, %c1_95, %c0_96] : memref<4x68x64xf32, #tpu.memory_space<vmem>>, vector<4x32x32xf32>
    tpu.vector_store %arg17[%c0_94, %c1_95, %c0_96], %74 {strides = array<i32>} : memref<4x68x64xf32, #tpu.memory_space<vmem>>, vector<4x32x32xf32>,
    %cst_97 = arith.constant 0.000000e+00 : f32
    %84 = vector.broadcast %cst_97 : f32 to vector<4x1x32xf32>
    %c0_98 = arith.constant 0 : index
    %c33_99 = arith.constant 33 : index
    %c0_100 = arith.constant 0 : index
    %85 = vector.load %arg17[%c0_98, %c33_99, %c0_100] : memref<4x68x64xf32, #tpu.memory_space<vmem>>, vector<4x1x32xf32>
    tpu.vector_store %arg17[%c0_98, %c33_99, %c0_100], %84 {strides = array<i32>} : memref<4x68x64xf32, #tpu.memory_space<vmem>>, vector<4x1x32xf32>,
    %c0_101 = arith.constant 0 : index
    %c0_102 = arith.constant 0 : index
    %86 = vector.load %arg7[%c0_101, %c0_102] : memref<1x32xf32, #tpu.memory_space<vmem>>, vector<1x32xf32>
    %87 = vector.broadcast %86 : vector<1x32xf32> to vector<128x32xf32>
    %88 = arith.addf %80, %87 : vector<128x32xf32>
    %c0_103 = arith.constant 0 : index
    %c0_104 = arith.constant 0 : index
    %c0_105 = arith.constant 0 : index
    %89 = vector.load %arg17[%c0_103, %c0_104, %c0_105] : memref<4x68x64xf32, #tpu.memory_space<vmem>>, vector<4x32x32xf32>
    %90 = vector.shape_cast %89 : vector<4x32x32xf32> to vector<128x32xf32>
    %c0_106 = arith.constant 0 : index
    %c0_107 = arith.constant 0 : index
    %c0_108 = arith.constant 0 : index
    %91 = vector.load %arg6[%c0_106, %c0_107, %c0_108] : memref<3x32x32xf32, #tpu.memory_space<vmem>>, vector<1x32x32xf32>
    %92 = vector.shape_cast %91 : vector<1x32x32xf32> to vector<32x32xf32>
    %cst_109 = arith.constant dense<0.000000e+00> : vector<128x32xf32>
    %93 = tpu.matmul %90, %92, %cst_109 {dimension_numbers = #tpu.dot_dimension_numbers<[1], [0], [0], [1], [0, 0, 1, 1], [], []>} : vector<128x32xf32>, vector<32x32xf32>, vector<128x32xf32> -> vector<128x32xf32>
    %94 = arith.addf %88, %93 : vector<128x32xf32>
    %c0_110 = arith.constant 0 : index
    %c1_111 = arith.constant 1 : index
    %c0_112 = arith.constant 0 : index
    %95 = vector.load %arg17[%c0_110, %c1_111, %c0_112] : memref<4x68x64xf32, #tpu.memory_space<vmem>>, vector<4x32x32xf32>
    %96 = vector.shape_cast %95 : vector<4x32x32xf32> to vector<128x32xf32>
    %c1_113 = arith.constant 1 : index
    %c0_114 = arith.constant 0 : index
    %c0_115 = arith.constant 0 : index
    %97 = vector.load %arg6[%c1_113, %c0_114, %c0_115] : memref<3x32x32xf32, #tpu.memory_space<vmem>>, vector<1x32x32xf32>
    %98 = vector.shape_cast %97 : vector<1x32x32xf32> to vector<32x32xf32>
    %cst_116 = arith.constant dense<0.000000e+00> : vector<128x32xf32>
    %99 = tpu.matmul %96, %98, %cst_116 {dimension_numbers = #tpu.dot_dimension_numbers<[1], [0], [0], [1], [0, 0, 1, 1], [], []>} : vector<128x32xf32>, vector<32x32xf32>, vector<128x32xf32> -> vector<128x32xf32>
    %100 = arith.addf %94, %99 : vector<128x32xf32>
    %c0_117 = arith.constant 0 : index
    %c2_118 = arith.constant 2 : index
    %c0_119 = arith.constant 0 : index
    %101 = vector.load %arg17[%c0_117, %c2_118, %c0_119] : memref<4x68x64xf32, #tpu.memory_space<vmem>>, vector<4x32x32xf32>
    %102 = vector.shape_cast %101 : vector<4x32x32xf32> to vector<128x32xf32>
    %c2_120 = arith.constant 2 : index
    %c0_121 = arith.constant 0 : index
    %c0_122 = arith.constant 0 : index
    %103 = vector.load %arg6[%c2_120, %c0_121, %c0_122] : memref<3x32x32xf32, #tpu.memory_space<vmem>>, vector<1x32x32xf32>
    %104 = vector.shape_cast %103 : vector<1x32x32xf32> to vector<32x32xf32>
    %cst_123 = arith.constant dense<0.000000e+00> : vector<128x32xf32>
    %105 = tpu.matmul %102, %104, %cst_123 {dimension_numbers = #tpu.dot_dimension_numbers<[1], [0], [0], [1], [0, 0, 1, 1], [], []>} : vector<128x32xf32>, vector<32x32xf32>, vector<128x32xf32> -> vector<128x32xf32>
    %106 = arith.addf %100, %105 : vector<128x32xf32>
    %107 = vector.shape_cast %106 : vector<128x32xf32> to vector<4x32x32xf32>
    %cst_124 = arith.constant 0.000000e+00 : f32
    %108 = vector.broadcast %cst_124 : f32 to vector<4x32x32xf32>
    %109 = arith.maximumf %107, %108 : vector<4x32x32xf32>
    %110 = vector.shape_cast %109 : vector<4x32x32xf32> to vector<128x32xf32>
    %c0_125 = arith.constant 0 : index
    %c0_126 = arith.constant 0 : index
    %111 = vector.load %arg18[%c0_125, %c0_126] : memref<256x64xf32, #tpu.memory_space<vmem>>, vector<128x32xf32>
    tpu.vector_store %arg18[%c0_125, %c0_126], %110 {strides = array<i32>} : memref<256x64xf32, #tpu.memory_space<vmem>>, vector<128x32xf32>,
    %c0_127 = arith.constant 0 : index
    %c0_128 = arith.constant 0 : index
    %112 = tpu.strided_load %arg18[%c0_127, %c0_128] {strides = array<i32: 2, 1>} : memref<256x64xf32, #tpu.memory_space<vmem>>, vector<64x32xf32>
    %c1_129 = arith.constant 1 : index
    %c0_130 = arith.constant 0 : index
    %113 = tpu.strided_load %arg18[%c1_129, %c0_130] {strides = array<i32: 2, 1>} : memref<256x64xf32, #tpu.memory_space<vmem>>, vector<64x32xf32>
    %114 = arith.maximumf %112, %113 : vector<64x32xf32>
    %115 = vector.shape_cast %114 : vector<64x32xf32> to vector<4x16x32xf32>
    %cst_131 = arith.constant 0.000000e+00 : f32
    %116 = vector.broadcast %cst_131 : f32 to vector<4x1x32xf32>
    %c0_132 = arith.constant 0 : index
    %c0_133 = arith.constant 0 : index
    %c0_134 = arith.constant 0 : index
    %117 = vector.load %arg17[%c0_132, %c0_133, %c0_134] : memref<4x68x64xf32, #tpu.memory_space<vmem>>, vector<4x1x32xf32>
    tpu.vector_store %arg17[%c0_132, %c0_133, %c0_134], %116 {strides = array<i32>} : memref<4x68x64xf32, #tpu.memory_space<vmem>>, vector<4x1x32xf32>,
    %c0_135 = arith.constant 0 : index
    %c1_136 = arith.constant 1 : index
    %c0_137 = arith.constant 0 : index
    %118 = vector.load %arg17[%c0_135, %c1_136, %c0_137] : memref<4x68x64xf32, #tpu.memory_space<vmem>>, vector<4x16x32xf32>
    tpu.vector_store %arg17[%c0_135, %c1_136, %c0_137], %115 {strides = array<i32>} : memref<4x68x64xf32, #tpu.memory_space<vmem>>, vector<4x16x32xf32>,
    %cst_138 = arith.constant 0.000000e+00 : f32
    %119 = vector.broadcast %cst_138 : f32 to vector<4x1x32xf32>
    %c0_139 = arith.constant 0 : index
    %c17 = arith.constant 17 : index
    %c0_140 = arith.constant 0 : index
    %120 = vector.load %arg17[%c0_139, %c17, %c0_140] : memref<4x68x64xf32, #tpu.memory_space<vmem>>, vector<4x1x32xf32>
    tpu.vector_store %arg17[%c0_139, %c17, %c0_140], %119 {strides = array<i32>} : memref<4x68x64xf32, #tpu.memory_space<vmem>>, vector<4x1x32xf32>,
    %c0_141 = arith.constant 0 : index
    %c0_142 = arith.constant 0 : index
    %121 = vector.load %arg11[%c0_141, %c0_142] : memref<1x16xf32, #tpu.memory_space<vmem>>, vector<1x16xf32>
    %c0_143 = arith.constant 0 : index
    %c0_144 = arith.constant 0 : index
    %c0_145 = arith.constant 0 : index
    %122 = vector.load %arg17[%c0_143, %c0_144, %c0_145] : memref<4x68x64xf32, #tpu.memory_space<vmem>>, vector<4x16x32xf32>
    %123 = vector.shape_cast %122 : vector<4x16x32xf32> to vector<64x32xf32>
    %c0_146 = arith.constant 0 : index
    %c0_147 = arith.constant 0 : index
    %c0_148 = arith.constant 0 : index
    %124 = vector.load %arg10[%c0_146, %c0_147, %c0_148] : memref<3x32x16xf32, #tpu.memory_space<vmem>>, vector<1x32x16xf32>
    %125 = vector.shape_cast %124 : vector<1x32x16xf32> to vector<32x16xf32>
    %cst_149 = arith.constant dense<0.000000e+00> : vector<64x16xf32>
    %126 = tpu.matmul %123, %125, %cst_149 {dimension_numbers = #tpu.dot_dimension_numbers<[1], [0], [0], [1], [0, 0, 1, 1], [], []>} : vector<64x32xf32>, vector<32x16xf32>, vector<64x16xf32> -> vector<64x16xf32>
    %127 = vector.broadcast %121 : vector<1x16xf32> to vector<64x16xf32>
    %128 = arith.addf %127, %126 : vector<64x16xf32>
    %c0_150 = arith.constant 0 : index
    %c1_151 = arith.constant 1 : index
    %c0_152 = arith.constant 0 : index
    %129 = vector.load %arg17[%c0_150, %c1_151, %c0_152] : memref<4x68x64xf32, #tpu.memory_space<vmem>>, vector<4x16x32xf32>
    %130 = vector.shape_cast %129 : vector<4x16x32xf32> to vector<64x32xf32>
    %c1_153 = arith.constant 1 : index
    %c0_154 = arith.constant 0 : index
    %c0_155 = arith.constant 0 : index
    %131 = vector.load %arg10[%c1_153, %c0_154, %c0_155] : memref<3x32x16xf32, #tpu.memory_space<vmem>>, vector<1x32x16xf32>
    %132 = vector.shape_cast %131 : vector<1x32x16xf32> to vector<32x16xf32>
    %cst_156 = arith.constant dense<0.000000e+00> : vector<64x16xf32>
    %133 = tpu.matmul %130, %132, %cst_156 {dimension_numbers = #tpu.dot_dimension_numbers<[1], [0], [0], [1], [0, 0, 1, 1], [], []>} : vector<64x32xf32>, vector<32x16xf32>, vector<64x16xf32> -> vector<64x16xf32>
    %134 = arith.addf %128, %133 : vector<64x16xf32>
    %c0_157 = arith.constant 0 : index
    %c2_158 = arith.constant 2 : index
    %c0_159 = arith.constant 0 : index
    %135 = vector.load %arg17[%c0_157, %c2_158, %c0_159] : memref<4x68x64xf32, #tpu.memory_space<vmem>>, vector<4x16x32xf32>
    %136 = vector.shape_cast %135 : vector<4x16x32xf32> to vector<64x32xf32>
    %c2_160 = arith.constant 2 : index
    %c0_161 = arith.constant 0 : index
    %c0_162 = arith.constant 0 : index
    %137 = vector.load %arg10[%c2_160, %c0_161, %c0_162] : memref<3x32x16xf32, #tpu.memory_space<vmem>>, vector<1x32x16xf32>
    %138 = vector.shape_cast %137 : vector<1x32x16xf32> to vector<32x16xf32>
    %cst_163 = arith.constant dense<0.000000e+00> : vector<64x16xf32>
    %139 = tpu.matmul %136, %138, %cst_163 {dimension_numbers = #tpu.dot_dimension_numbers<[1], [0], [0], [1], [0, 0, 1, 1], [], []>} : vector<64x32xf32>, vector<32x16xf32>, vector<64x16xf32> -> vector<64x16xf32>
    %140 = arith.addf %134, %139 : vector<64x16xf32>
    %141 = vector.shape_cast %140 : vector<64x16xf32> to vector<4x16x16xf32>
    %cst_164 = arith.constant 0.000000e+00 : f32
    %142 = vector.broadcast %cst_164 : f32 to vector<4x16x16xf32>
    %143 = arith.maximumf %141, %142 : vector<4x16x16xf32>
    %144 = vector.shape_cast %115 : vector<4x16x32xf32> to vector<64x32xf32>
    %c0_165 = arith.constant 0 : index
    %c0_166 = arith.constant 0 : index
    %145 = vector.load %arg14[%c0_165, %c0_166] : memref<32x16xf32, #tpu.memory_space<vmem>>, vector<32x16xf32>
    %cst_167 = arith.constant dense<0.000000e+00> : vector<64x16xf32>
    %146 = tpu.matmul %144, %145, %cst_167 {dimension_numbers = #tpu.dot_dimension_numbers<[1], [0], [0], [1], [0, 0, 1, 1], [], []>} : vector<64x32xf32>, vector<32x16xf32>, vector<64x16xf32> -> vector<64x16xf32>
    %c0_168 = arith.constant 0 : index
    %c0_169 = arith.constant 0 : index
    %147 = vector.load %arg15[%c0_168, %c0_169] : memref<1x16xf32, #tpu.memory_space<vmem>>, vector<1x16xf32>
    %148 = vector.broadcast %147 : vector<1x16xf32> to vector<64x16xf32>
    %149 = arith.addf %146, %148 : vector<64x16xf32>
    %cst_170 = arith.constant 0.000000e+00 : f32
    %150 = vector.broadcast %cst_170 : f32 to vector<4x1x16xf32>
    %c0_171 = arith.constant 0 : index
    %c0_172 = arith.constant 0 : index
    %c0_173 = arith.constant 0 : index
    %151 = vector.load %arg17[%c0_171, %c0_172, %c0_173] : memref<4x68x64xf32, #tpu.memory_space<vmem>>, vector<4x1x16xf32>
    tpu.vector_store %arg17[%c0_171, %c0_172, %c0_173], %150 {strides = array<i32>} : memref<4x68x64xf32, #tpu.memory_space<vmem>>, vector<4x1x16xf32>,
    %c0_174 = arith.constant 0 : index
    %c1_175 = arith.constant 1 : index
    %c0_176 = arith.constant 0 : index
    %152 = vector.load %arg17[%c0_174, %c1_175, %c0_176] : memref<4x68x64xf32, #tpu.memory_space<vmem>>, vector<4x16x16xf32>
    tpu.vector_store %arg17[%c0_174, %c1_175, %c0_176], %143 {strides = array<i32>} : memref<4x68x64xf32, #tpu.memory_space<vmem>>, vector<4x16x16xf32>,
    %cst_177 = arith.constant 0.000000e+00 : f32
    %153 = vector.broadcast %cst_177 : f32 to vector<4x1x16xf32>
    %c0_178 = arith.constant 0 : index
    %c17_179 = arith.constant 17 : index
    %c0_180 = arith.constant 0 : index
    %154 = vector.load %arg17[%c0_178, %c17_179, %c0_180] : memref<4x68x64xf32, #tpu.memory_space<vmem>>, vector<4x1x16xf32>
    tpu.vector_store %arg17[%c0_178, %c17_179, %c0_180], %153 {strides = array<i32>} : memref<4x68x64xf32, #tpu.memory_space<vmem>>, vector<4x1x16xf32>,
    %c0_181 = arith.constant 0 : index
    %c0_182 = arith.constant 0 : index
    %155 = vector.load %arg13[%c0_181, %c0_182] : memref<1x16xf32, #tpu.memory_space<vmem>>, vector<1x16xf32>
    %156 = vector.broadcast %155 : vector<1x16xf32> to vector<64x16xf32>
    %157 = arith.addf %149, %156 : vector<64x16xf32>
    %c0_183 = arith.constant 0 : index
    %c0_184 = arith.constant 0 : index
    %c0_185 = arith.constant 0 : index
    %158 = vector.load %arg17[%c0_183, %c0_184, %c0_185] : memref<4x68x64xf32, #tpu.memory_space<vmem>>, vector<4x16x16xf32>
    %159 = vector.shape_cast %158 : vector<4x16x16xf32> to vector<64x16xf32>
    %c0_186 = arith.constant 0 : index
    %c0_187 = arith.constant 0 : index
    %c0_188 = arith.constant 0 : index
    %160 = vector.load %arg12[%c0_186, %c0_187, %c0_188] : memref<3x16x16xf32, #tpu.memory_space<vmem>>, vector<1x16x16xf32>
    %161 = vector.shape_cast %160 : vector<1x16x16xf32> to vector<16x16xf32>
    %cst_189 = arith.constant dense<0.000000e+00> : vector<64x16xf32>
    %162 = tpu.matmul %159, %161, %cst_189 {dimension_numbers = #tpu.dot_dimension_numbers<[1], [0], [0], [1], [0, 0, 1, 1], [], []>} : vector<64x16xf32>, vector<16x16xf32>, vector<64x16xf32> -> vector<64x16xf32>
    %163 = arith.addf %157, %162 : vector<64x16xf32>
    %c0_190 = arith.constant 0 : index
    %c1_191 = arith.constant 1 : index
    %c0_192 = arith.constant 0 : index
    %164 = vector.load %arg17[%c0_190, %c1_191, %c0_192] : memref<4x68x64xf32, #tpu.memory_space<vmem>>, vector<4x16x16xf32>
    %165 = vector.shape_cast %164 : vector<4x16x16xf32> to vector<64x16xf32>
    %c1_193 = arith.constant 1 : index
    %c0_194 = arith.constant 0 : index
    %c0_195 = arith.constant 0 : index
    %166 = vector.load %arg12[%c1_193, %c0_194, %c0_195] : memref<3x16x16xf32, #tpu.memory_space<vmem>>, vector<1x16x16xf32>
    %167 = vector.shape_cast %166 : vector<1x16x16xf32> to vector<16x16xf32>
    %cst_196 = arith.constant dense<0.000000e+00> : vector<64x16xf32>
    %168 = tpu.matmul %165, %167, %cst_196 {dimension_numbers = #tpu.dot_dimension_numbers<[1], [0], [0], [1], [0, 0, 1, 1], [], []>} : vector<64x16xf32>, vector<16x16xf32>, vector<64x16xf32> -> vector<64x16xf32>
    %169 = arith.addf %163, %168 : vector<64x16xf32>
    %c0_197 = arith.constant 0 : index
    %c2_198 = arith.constant 2 : index
    %c0_199 = arith.constant 0 : index
    %170 = vector.load %arg17[%c0_197, %c2_198, %c0_199] : memref<4x68x64xf32, #tpu.memory_space<vmem>>, vector<4x16x16xf32>
    %171 = vector.shape_cast %170 : vector<4x16x16xf32> to vector<64x16xf32>
    %c2_200 = arith.constant 2 : index
    %c0_201 = arith.constant 0 : index
    %c0_202 = arith.constant 0 : index
    %172 = vector.load %arg12[%c2_200, %c0_201, %c0_202] : memref<3x16x16xf32, #tpu.memory_space<vmem>>, vector<1x16x16xf32>
    %173 = vector.shape_cast %172 : vector<1x16x16xf32> to vector<16x16xf32>
    %cst_203 = arith.constant dense<0.000000e+00> : vector<64x16xf32>
    %174 = tpu.matmul %171, %173, %cst_203 {dimension_numbers = #tpu.dot_dimension_numbers<[1], [0], [0], [1], [0, 0, 1, 1], [], []>} : vector<64x16xf32>, vector<16x16xf32>, vector<64x16xf32> -> vector<64x16xf32>
    %175 = arith.addf %169, %174 : vector<64x16xf32>
    %176 = vector.shape_cast %175 : vector<64x16xf32> to vector<4x16x16xf32>
    %cst_204 = arith.constant 0.000000e+00 : f32
    %177 = vector.broadcast %cst_204 : f32 to vector<4x16x16xf32>
    %178 = arith.maximumf %176, %177 : vector<4x16x16xf32>
    %c0_205 = arith.constant 0 : index
    %c0_206 = arith.constant 0 : index
    %c0_207 = arith.constant 0 : index
    %179 = vector.load %arg16[%c0_205, %c0_206, %c0_207] : memref<4x16x16xf32, #tpu.memory_space<vmem>>, vector<4x16x16xf32>
    tpu.vector_store %arg16[%c0_205, %c0_206, %c0_207], %178 {strides = array<i32>} : memref<4x16x16xf32, #tpu.memory_space<vmem>>, vector<4x16x16xf32>,
    return
  }
  func.func @transform_0(%arg0: i32) -> (i32, i32, i32) {
    %c0_i32 = arith.constant 0 : i32
    %c0_i32_0 = arith.constant 0 : i32
    %c0_i32_1 = arith.constant 0 : i32
    return %arg0, %c0_i32, %c0_i32_0 : i32, i32, i32
  }
  func.func @transform_1(%arg0: i32) -> (i32, i32, i32) {
    %c0_i32 = arith.constant 0 : i32
    %c0_i32_0 = arith.constant 0 : i32
    %c0_i32_1 = arith.constant 0 : i32
    %c0_i32_2 = arith.constant 0 : i32
    return %c0_i32, %c0_i32_0, %c0_i32_1 : i32, i32, i32
  }
  func.func @transform_2(%arg0: i32) -> (i32, i32) {
    %c0_i32 = arith.constant 0 : i32
    %c0_i32_0 = arith.constant 0 : i32
    %c0_i32_1 = arith.constant 0 : i32
    return %c0_i32, %c0_i32_0 : i32, i32
  }
  func.func @transform_3(%arg0: i32) -> (i32, i32, i32) {
    %c0_i32 = arith.constant 0 : i32
    %c0_i32_0 = arith.constant 0 : i32
    %c0_i32_1 = arith.constant 0 : i32
    %c0_i32_2 = arith.constant 0 : i32
    return %c0_i32, %c0_i32_0, %c0_i32_1 : i32, i32, i32
  }
  func.func @transform_4(%arg0: i32) -> (i32, i32) {
    %c0_i32 = arith.constant 0 : i32
    %c0_i32_0 = arith.constant 0 : i32
    %c0_i32_1 = arith.constant 0 : i32
    return %c0_i32, %c0_i32_0 : i32, i32
  }
  func.func @transform_5(%arg0: i32) -> (i32, i32, i32) {
    %c0_i32 = arith.constant 0 : i32
    %c0_i32_0 = arith.constant 0 : i32
    %c0_i32_1 = arith.constant 0 : i32
    %c0_i32_2 = arith.constant 0 : i32
    return %c0_i32, %c0_i32_0, %c0_i32_1 : i32, i32, i32
  }
  func.func @transform_6(%arg0: i32) -> (i32, i32) {
    %c0_i32 = arith.constant 0 : i32
    %c0_i32_0 = arith.constant 0 : i32
    %c0_i32_1 = arith.constant 0 : i32
    return %c0_i32, %c0_i32_0 : i32, i32
  }
  func.func @transform_7(%arg0: i32) -> (i32, i32) {
    %c0_i32 = arith.constant 0 : i32
    %c0_i32_0 = arith.constant 0 : i32
    %c0_i32_1 = arith.constant 0 : i32
    return %c0_i32, %c0_i32_0 : i32, i32
  }
  func.func @transform_8(%arg0: i32) -> (i32, i32) {
    %c0_i32 = arith.constant 0 : i32
    %c0_i32_0 = arith.constant 0 : i32
    %c0_i32_1 = arith.constant 0 : i32
    return %c0_i32, %c0_i32_0 : i32, i32
  }
  func.func @transform_9(%arg0: i32) -> (i32, i32, i32) {
    %c0_i32 = arith.constant 0 : i32
    %c0_i32_0 = arith.constant 0 : i32
    %c0_i32_1 = arith.constant 0 : i32
    %c0_i32_2 = arith.constant 0 : i32
    return %c0_i32, %c0_i32_0, %c0_i32_1 : i32, i32, i32
  }
  func.func @transform_10(%arg0: i32) -> (i32, i32) {
    %c0_i32 = arith.constant 0 : i32
    %c0_i32_0 = arith.constant 0 : i32
    %c0_i32_1 = arith.constant 0 : i32
    return %c0_i32, %c0_i32_0 : i32, i32
  }
  func.func @transform_11(%arg0: i32) -> (i32, i32, i32) {
    %c0_i32 = arith.constant 0 : i32
    %c0_i32_0 = arith.constant 0 : i32
    %c0_i32_1 = arith.constant 0 : i32
    %c0_i32_2 = arith.constant 0 : i32
    return %c0_i32, %c0_i32_0, %c0_i32_1 : i32, i32, i32
  }
  func.func @transform_12(%arg0: i32) -> (i32, i32) {
    %c0_i32 = arith.constant 0 : i32
    %c0_i32_0 = arith.constant 0 : i32
    %c0_i32_1 = arith.constant 0 : i32
    return %c0_i32, %c0_i32_0 : i32, i32
  }
  func.func @transform_13(%arg0: i32) -> (i32, i32) {
    %c0_i32 = arith.constant 0 : i32
    %c0_i32_0 = arith.constant 0 : i32
    %c0_i32_1 = arith.constant 0 : i32
    return %c0_i32, %c0_i32_0 : i32, i32
  }
  func.func @transform_14(%arg0: i32) -> (i32, i32) {
    %c0_i32 = arith.constant 0 : i32
    %c0_i32_0 = arith.constant 0 : i32
    %c0_i32_1 = arith.constant 0 : i32
    return %c0_i32, %c0_i32_0 : i32, i32
  }
  func.func @transform_15(%arg0: i32) -> (i32, i32, i32) {
    %c0_i32 = arith.constant 0 : i32
    %c0_i32_0 = arith.constant 0 : i32
    %c0_i32_1 = arith.constant 0 : i32
    return %arg0, %c0_i32, %c0_i32_0 : i32, i32, i32
  }
}

</mosaic_0001>

<bundles_post_ra>
// kernel: tpu_custom_call.1
= control target key start
LH: loop header
LB: loop body
LE: loop exit
PB: predicated region body
PF: predicated region fallthrough
CT: control target
= control target key end

     0   :  { %s6062_s0 = inlined_call_operand.vmem [shape: f32[8,64,3], index: 0, kind: input, shape index: {}]   ;;  %s6063_s1 = inlined_call_operand.vmem [shape: f32[5,3,64], index: 1, kind: input, shape index: {}]   ;;  %s6064_s2 = inlined_call_operand.vmem [shape: f32[1,64], index: 2, kind: input, shape index: {}]   ;;  %s6065_s3 = inlined_call_operand.vmem [shape: f32[3,64,32], index: 3, kind: input, shape index: {}]   ;;  %s6066_s4 = inlined_call_operand.vmem [shape: f32[1,32], index: 4, kind: input, shape index: {}]   ;;  %s6067_s5 = inlined_call_operand.vmem [shape: f32[3,32,32], index: 5, kind: input, shape index: {}]   ;;  %s6068_s6 = inlined_call_operand.vmem [shape: f32[1,32], index: 6, kind: input, shape index: {}]   ;;  %s6069_s7 = inlined_call_operand.vmem [shape: f32[64,32], index: 7, kind: input, shape index: {}]   ;;  %s6070_s8 = inlined_call_operand.vmem [shape: f32[1,32], index: 8, kind: input, shape index: {}]   ;;  %s6071_s9 = inlined_call_operand.vmem [shape: f32[3,32,16], index: 9, kind: input, shape index: {}]   ;;  %s6072_s10 = inlined_call_operand.vmem [shape: f32[1,16], index: 10, kind: input, shape index: {}]   ;;  %s6073_s11 = inlined_call_operand.vmem [shape: f32[3,16,16], index: 11, kind: input, shape index: {}]   ;;  %s6074_s12 = inlined_call_operand.vmem [shape: f32[1,16], index: 12, kind: input, shape index: {}]   ;;  %s6075_s13 = inlined_call_operand.vmem [shape: f32[32,16], index: 13, kind: input, shape index: {}]   ;;  %s6076_s14 = inlined_call_operand.vmem [shape: f32[1,16], index: 14, kind: input, shape index: {}]   ;;  %s6077_s15 = inlined_call_operand.hbm [shape: f32[8,16,16], index: 15, kind: output, shape index: {}]  }
   0x1   :  { %6083 = sst [smem:[#allocation23_spill]] %s6062_s0 }
   0x2   :  { %6084 = sst [smem:[#allocation24_spill]] %s6063_s1 }
   0x3   :  { %6085 = sst [smem:[#allocation25_spill]] %s6064_s2 }
   0x4   :  { %6086 = sst [smem:[#allocation26_spill]] %s6065_s3 }
   0x5   :  { %20 = vsyncpa [#allocation5], 0 }
   0x6   :  { %22 = vsyncpa [#allocation5 + $0x1], 0  ;;  %s4617_s18 = smov 0   ;;  %s4619_s19 = smov 0  }
   0x7   :  { %s4621_s20 = smov 0   ;;  %s4623_s21 = smov 0  }
   0x8 LB: > { %s4638_s22 = sadd.s32 4294967295, %s4532_s21   ;;  %s4027_s23 = sadd.s32 4294967294, %s4532_s21   ;;  %s4532_s21 = sphi %s4623_s21, %s6129_s21   ;;  %s4528_s20 = sphi %s4621_s20, %s6128_s20   ;;  %s4524_s19 = sphi %s4619_s19, %s6127_s19   ;;  %s4520_s18 = sphi %s4617_s18, %s6126_s18  }
   0x9   : > { %s4642_s24 = sadd.s32 1, %s4532_s21   ;;  %s355_s25 = sadd.s32 1, %s4528_s20 }
   0xa   : > { %s352_s26 = ssub.s32 %s4532_s21, %s4642_s24  ;;  %p365_p0 = scmp.ne.s32.totalorder %s4528_s20, %s4524_s19 }
   0xb   : > { %p353_p1 = scmp.eq.s32.totalorder %s352_s26, 0  ;;  %p366_p2 = scmp.eq.s32.totalorder %s4638_s22, 1 }
   0xc   : > { %p371_p3 = scmp.ne.s32.totalorder %s4524_s19, %s4520_s18  ;;  %p372_p4 = scmp.eq.s32.totalorder %s4027_s23, 1 }
   0xd   : > { %s4653_s27 = scalar_select %p353_p1, %s4528_s20, %s355_s25  }
   0xe   : > { %p4655_p5 = por %p366_p2, %p365_p0  ;;  %p4659_p6 = por %p372_p4, %p371_p3 }
   0xf   : > { %6087 = sst [smem:[#allocation7_spill]] %s4653_s27  ;;  %p4030_p7 = scmp.ge.s32.totalorder %s4532_s21, 1 }
  0x10   : > { %p442_p8 = scmp.lt.s32.totalorder %s4532_s21, 3 }
  0x12   : > { %p443_p9 = pnand %p4030_p7, %p442_p8 }
  0x14   : > { %446 = sbr.rel (%p443_p9) target bundleno = 1256 (0x4e8), region = 80 }
  0x19   : > { %s6090_s1 = sld [smem:[#allocation24_spill]]  ;;  %vm703_vm0 = vcmask 1042432   ;;  %s4032_s17 = sshll.u32 %s4638_s22, 2  ;;  %vm531_vm1 = vcmask 17408   ;;  %v6078_v1 = vmov 0.0   ;;  %vm536_vm2 = vcmask 23552  }
  0x1a   : > { %p492_p10 = scmp.lt.s32.totalorder %s4032_s17, 7  ;;  %532 = vst.msk [vmem:[#allocation2] sm:$0x3] %vm531_vm1, %v6078_v1  ;;  %s6091_s0 = sld [smem:[#allocation23_spill]]  ;;  %vm2111_vm3 = vcmask 516096   ;;  %vm1999_vm4 = vcmask 523264  }
  0x1b   : > { %533 = vst.msk [vmem:[#allocation2 + $0x48] sm:$0x3] %vm531_vm1, %v6078_v1  ;;  %s6097_s2 = sld [smem:[#allocation25_spill]]  ;;  %vm2742_vm5 = vcmask 253952   ;;  %vm2747_vm6 = vcmask 261120   ;;  %vm3651_vm7 = vcmask 122880  }
  0x1c   : > { %s6131_s17 = smov (!%p492_p10, %s4032_s17), 7  ;;  %534 = vst.msk [vmem:[#allocation2 + $0x90] sm:$0x3] %vm531_vm1, %v6078_v1  ;;  %s6099_s3 = sld [smem:[#allocation26_spill]]  ;;  %vm3656_vm8 = vcmask 130048  }
  0x1d   : > { %535 = vst.msk [vmem:[#allocation2 + $0xd8] sm:$0x3] %vm531_vm1, %v6078_v1  ;;  %s4414_s23 = sshll.u32 %s6131_s17, 6  ;;  %s488_s17 = sand.u32 1, %s4524_s19  }
  0x1e   : > { %569 = vst.msk [vmem:[#allocation2 + $0x42] sm:$0x3] %vm531_vm1, %v6078_v1  ;;  %s4416_s27 = sshll.u32 %s4638_s22, 6  ;;  %s3949_s22 = scalar_lea.sflag [#allocation5], %s488_s17 }
  0x1f   : > { %v606_v0 = vld [vmem:[%s6090_s1] sm:$0x7]  ;;  %v4170_v2 = vld [vmem:[%s6090_s1 + $0x10] sm:$0x7]  ;;  %v4068_v3 = vld [vmem:[%s6090_s1 + $0x4] sm:$0x7]  ;;  %s3961_s30 = scalar_lea.hbm %s6077_s15, %s4416_s27 }
  0x20   : > { %4035 = vmatpush.msk.msra.mxu0 %vm703_vm0, %v606_v0  ;;  %4417 = vmatpush.msk.msra.mxu1 %vm703_vm0, %v606_v0  ;;  %v4102_v4 = vld [vmem:[%s6090_s1 + $0x8] sm:$0x7]  ;;  %v4136_v5 = vld [vmem:[%s6090_s1 + $0xc] sm:$0x7]  ;;  %s4701_s16 = scalar_lea.vmem %s6091_s0, %s4414_s23  ;;  %570 = vst.msk [vmem:[#allocation2 + $0x8a] sm:$0x3] %vm531_vm1, %v6078_v1 }
  0x21   : > { %4418 = vmatpush.msk.msra.mxu2 %vm703_vm0, %v606_v0  ;;  %4419 = vmatpush.msk.msra.mxu3 %vm703_vm0, %v606_v0  ;;  %v499_v6 = vld [vmem:[%s4701_s16] sm:$0xff]  ;;  %571 = vst.msk [vmem:[#allocation2 + $0xd2] sm:$0x3] %vm531_vm1, %v6078_v1  ;;  %v524_v7 = vld [vmem:[%s4701_s16 + $0xc8] sm:$0xff]  ;;  %v525_v8 = vld [vmem:[%s4701_s16 + $0xd0] sm:$0xff]  ;;  %s4031_s23 = sshll.u32 %s488_s17, 6 }
  0x22   : > { %4171 = vmatpush.msk.msrb.mxu0 %vm703_vm0, %v4170_v2  ;;  %4069 = vmatpush.msk.msrb.mxu1 %vm703_vm0, %v4068_v3  ;;  %537 = vst.msk [vmem:[#allocation2 + $0x2] sm:$0xff] %vm536_vm2, %v499_v6  ;;  %v526_v9 = vld [vmem:[%s4701_s16 + $0xd8] sm:$0xff]  ;;  %v527_v10 = vld [vmem:[%s4701_s16 + $0xe0] sm:$0xff]  ;;  %v528_v11 = vld [vmem:[%s4701_s16 + $0xe8] sm:$0xff]  ;;  %s6010_s0 = scalar_lea.vmem [#allocation4], %s4031_s23  ;;  %s3964_s23 = sshll.u32 %s3961_s30, 4  ;;  %s3965_s23 = int_to_ptr.hbm [resolvable:$true] %s3964_s23 }
  0x23   : > { %4103 = vmatpush.msk.msrb.mxu2 %vm703_vm0, %v4102_v4  ;;  %4137 = vmatpush.msk.msrb.mxu3 %vm703_vm0, %v4136_v5  ;;  %572 = vst.msk [vmem:[#allocation2 + $0x11a] sm:$0x3] %vm531_vm1, %v6078_v1  ;;  %v529_v12 = vld [vmem:[%s4701_s16 + $0xf0] sm:$0xff]  ;;  %v500_v13 = vld [vmem:[%s4701_s16 + $0x8] sm:$0xff]  ;;  %v530_v14 = vld [vmem:[%s4701_s16 + $0xf8] sm:$0xff]  ;;  %s4484_s1 = sshra.s32 %s3965_s23, 4  ;;  %s4485_s1 = int_to_ptr.hbm [resolvable:$true] %s4484_s1 }
  0x24   : > { %562 = vst.msk [vmem:[#allocation2 + $0xe2] sm:$0xff] %vm536_vm2, %v524_v7  ;;  %v501_v16 = vld [vmem:[%s4701_s16 + $0x10] sm:$0xff]  ;;  %v502_v17 = vld [vmem:[%s4701_s16 + $0x18] sm:$0xff]  ;;  %v503_v18 = vld [vmem:[%s4701_s16 + $0x20] sm:$0xff]  ;;  %s4490_s26 = scalar_lea.hbm %s6077_s15, 128  ;;  %p4491_p0 = scmp.lt.s32.totalorder %s4485_s1, %s6077_s15 }
  0x25   : > { %563 = vst.msk [vmem:[#allocation2 + $0xea] sm:$0xff] %vm536_vm2, %v525_v8  ;;  %v504_v21 = vld [vmem:[%s4701_s16 + $0x28] sm:$0xff]  ;;  %v505_v27 = vld [vmem:[%s4701_s16 + $0x30] sm:$0xff]  ;;  %v506_v32 = vld [vmem:[%s4701_s16 + $0x38] sm:$0xff] }
  0x26   : > { %564 = vst.msk [vmem:[#allocation2 + $0xf2] sm:$0xff] %vm536_vm2, %v526_v9  ;;  %v507_v37 = vld [vmem:[%s4701_s16 + $0x40] sm:$0xff]  ;;  %v508_v42 = vld [vmem:[%s4701_s16 + $0x48] sm:$0xff]  ;;  %v509_v47 = vld [vmem:[%s4701_s16 + $0x50] sm:$0xff] }
  0x27   : > { %565 = vst.msk [vmem:[#allocation2 + $0xfa] sm:$0xff] %vm536_vm2, %v527_v10  ;;  %v510_v52 = vld [vmem:[%s4701_s16 + $0x58] sm:$0xff]  ;;  %v511_v57 = vld [vmem:[%s4701_s16 + $0x60] sm:$0xff]  ;;  %v512_v62 = vld [vmem:[%s4701_s16 + $0x68] sm:$0xff] }
  0x28   : > { %566 = vst.msk [vmem:[#allocation2 + $0x102] sm:$0xff] %vm536_vm2, %v528_v11  ;;  %v513_v4 = vld [vmem:[%s4701_s16 + $0x70] sm:$0xff]  ;;  %v514_v9 = vld [vmem:[%s4701_s16 + $0x78] sm:$0xff] }
  0x29   : > { %v574_v15 = vld [vmem:[#allocation2] sm:$0xff]  ;;  %567 = vst.msk [vmem:[#allocation2 + $0x10a] sm:$0xff] %vm536_vm2, %v529_v12 }
  0x2a   : > { %4036 = vmatmul.msk.f32.vlgmr.msra.gmra.mxu0 %vm536_vm2, %v574_v15  ;;  %538 = vst.msk [vmem:[#allocation2 + $0xa] sm:$0xff] %vm536_vm2, %v500_v13  ;;  %v855_v29 = vld [vmem:[#allocation2 + $0x1] sm:$0xff] }
  0x2b   : > { %568 = vst.msk [vmem:[#allocation2 + $0x112] sm:$0xff] %vm536_vm2, %v530_v14  ;;  %v1133_v30 = vld [vmem:[#allocation2 + $0x2] sm:$0xff] }
  0x2c   : > { %v600_v19 = vld [vmem:[#allocation2 + $0xe8] sm:$0xff]  ;;  %539 = vst.msk [vmem:[#allocation2 + $0x12] sm:$0xff] %vm536_vm2, %v501_v16  ;;  %v515_v14 = vld [vmem:[%s4701_s16 + $0x80] sm:$0xff] }
  0x2d   : > { %4062 = vmatmul.msk.f32.vlgmr.msra.gmra.mxu1 %vm536_vm2, %v600_v19  ;;  %540 = vst.msk [vmem:[#allocation2 + $0x1a] sm:$0xff] %vm536_vm2, %v502_v17  ;;  %v601_v24 = vld [vmem:[#allocation2 + $0xf0] sm:$0xff]  ;;  %v516_v19 = vld [vmem:[%s4701_s16 + $0x88] sm:$0xff] }
  0x2e   : > { %v602_v20 = vld [vmem:[#allocation2 + $0xf8] sm:$0xff]  ;;  %541 = vst.msk [vmem:[#allocation2 + $0x22] sm:$0xff] %vm536_vm2, %v503_v18 }
  0x2f   : > { %4064 = vmatmul.msk.f32.vlgmr.msra.gmra.mxu2 %vm536_vm2, %v602_v20  ;;  %542 = vst.msk [vmem:[#allocation2 + $0x2a] sm:$0xff] %vm536_vm2, %v504_v21  ;;  %v603_v25 = vld [vmem:[#allocation2 + $0x100] sm:$0xff] }
  0x30   : > { %v604_v22 = vld [vmem:[#allocation2 + $0x108] sm:$0xff]  ;;  %543 = vst.msk [vmem:[#allocation2 + $0x32] sm:$0xff] %vm536_vm2, %v505_v27 }
  0x31   : > { %4066 = vmatmul.msk.f32.vlgmr.msra.gmra.mxu3 %vm536_vm2, %v604_v22  ;;  %v575_v23 = vld [vmem:[#allocation2 + $0x8] sm:$0xff]  ;;  %544 = vst.msk [vmem:[#allocation2 + $0x3a] sm:$0xff] %vm536_vm2, %v506_v32 }
  0x32   : > { %4037 = vmatmul.msk.f32.gmra.mxu0 %vm536_vm2, %v575_v23  ;;  %v605_v26 = vld [vmem:[#allocation2 + $0x110] sm:$0xff]  ;;  %v1411_v31 = vld [vmem:[#allocation2 + $0x3] sm:$0xff]  ;;  %545 = vst.msk [vmem:[#allocation2 + $0x4a] sm:$0xff] %vm536_vm2, %v507_v37 }
  0x33   : > { %v576_v28 = vld [vmem:[#allocation2 + $0x10] sm:$0xff]  ;;  %546 = vst.msk [vmem:[#allocation2 + $0x52] sm:$0xff] %vm536_vm2, %v508_v42 }
  0x34   : > { %v577_v33 = vld [vmem:[#allocation2 + $0x18] sm:$0xff]  ;;  %v856_v34 = vld [vmem:[#allocation2 + $0x9] sm:$0xff]  ;;  %547 = vst.msk [vmem:[#allocation2 + $0x5a] sm:$0xff] %vm536_vm2, %v509_v47 }
  0x35   : > { %4063 = vmatmul.msk.f32.gmra.mxu1 %vm536_vm2, %v601_v24  ;;  %v1134_v35 = vld [vmem:[#allocation2 + $0xa] sm:$0xff]  ;;  %v578_v38 = vld [vmem:[#allocation2 + $0x20] sm:$0xff]  ;;  %v1135_v40 = vld [vmem:[#allocation2 + $0x12] sm:$0xff]  ;;  %548 = vst.msk [vmem:[#allocation2 + $0x62] sm:$0xff] %vm536_vm2, %v510_v52 }
  0x36   : > { %v1412_v36 = vld [vmem:[#allocation2 + $0xb] sm:$0xff]  ;;  %v1413_v41 = vld [vmem:[#allocation2 + $0x13] sm:$0xff]  ;;  %v1414_v46 = vld [vmem:[#allocation2 + $0x1b] sm:$0xff]  ;;  %549 = vst.msk [vmem:[#allocation2 + $0x6a] sm:$0xff] %vm536_vm2, %v511_v57 }
  0x37   : > { %4065 = vmatmul.msk.f32.gmra.mxu2 %vm536_vm2, %v603_v25  ;;  %v857_v39 = vld [vmem:[#allocation2 + $0x11] sm:$0xff]  ;;  %v579_v43 = vld [vmem:[#allocation2 + $0x28] sm:$0xff]  ;;  %v858_v44 = vld [vmem:[#allocation2 + $0x19] sm:$0xff]  ;;  %550 = vst.msk [vmem:[#allocation2 + $0x72] sm:$0xff] %vm536_vm2, %v512_v62 }
  0x38   : > { %v1136_v45 = vld [vmem:[#allocation2 + $0x1a] sm:$0xff]  ;;  %v580_v48 = vld [vmem:[#allocation2 + $0x30] sm:$0xff]  ;;  %v1137_v50 = vld [vmem:[#allocation2 + $0x22] sm:$0xff]  ;;  %551 = vst.msk [vmem:[#allocation2 + $0x7a] sm:$0xff] %vm536_vm2, %v513_v4 }
  0x39   : > { %4067 = vmatmul.msk.f32.gmra.mxu3 %vm536_vm2, %v605_v26  ;;  %v859_v49 = vld [vmem:[#allocation2 + $0x21] sm:$0xff]  ;;  %v581_v53 = vld [vmem:[#allocation2 + $0x38] sm:$0xff]  ;;  %v860_v54 = vld [vmem:[#allocation2 + $0x29] sm:$0xff]  ;;  %552 = vst.msk [vmem:[#allocation2 + $0x82] sm:$0xff] %vm536_vm2, %v514_v9 }
  0x3a   : > { %4038 = vmatmul.msk.f32.gmra.mxu0 %vm536_vm2, %v576_v28  ;;  %v1415_v51 = vld [vmem:[#allocation2 + $0x23] sm:$0xff]  ;;  %v1416_v56 = vld [vmem:[#allocation2 + $0x2b] sm:$0xff]  ;;  %v1417_v61 = vld [vmem:[#allocation2 + $0x33] sm:$0xff]  ;;  %553 = vst.msk [vmem:[#allocation2 + $0x92] sm:$0xff] %vm536_vm2, %v515_v14 }
  0x3b   : > { %v1138_v55 = vld [vmem:[#allocation2 + $0x2a] sm:$0xff]  ;;  %v1139_v60 = vld [vmem:[#allocation2 + $0x32] sm:$0xff]  ;;  %v1140_v2 = vld [vmem:[#allocation2 + $0x3a] sm:$0xff]  ;;  %554 = vst.msk [vmem:[#allocation2 + $0x9a] sm:$0xff] %vm536_vm2, %v516_v19 }
  0x3c   : > { %v582_v58 = vld [vmem:[#allocation2 + $0x48] sm:$0xff]  ;;  %v861_v59 = vld [vmem:[#allocation2 + $0x31] sm:$0xff]  ;;  %v862_v0 = vld [vmem:[#allocation2 + $0x39] sm:$0xff]  ;;  %2112 = vst.msk [vmem:[#allocation2] sm:$0x1] %vm2111_vm3, %v6078_v1 }
  0x3d   : > { %4070 = vmatmul.msk.f32.vlgmr.msrb.gmra.mxu1 %vm536_vm2, %v855_v29  ;;  %v583_v63 = vld [vmem:[#allocation2 + $0x50] sm:$0xff]  ;;  %v1418_v3 = vld [vmem:[#allocation2 + $0x3b] sm:$0xff]  ;;  %v586_v15 = vld [vmem:[#allocation2 + $0x68] sm:$0xff]  ;;  %2113 = vst.msk [vmem:[#allocation2 + $0x48] sm:$0x1] %vm2111_vm3, %v6078_v1 }
  0x3e   : > { %v584_v5 = vld [vmem:[#allocation2 + $0x58] sm:$0xff]  ;;  %v863_v6 = vld [vmem:[#allocation2 + $0x49] sm:$0xff]  ;;  %v585_v10 = vld [vmem:[#allocation2 + $0x60] sm:$0xff] }
  0x3f   : > { %4104 = vmatmul.msk.f32.vlgmr.msrb.gmra.mxu2 %vm536_vm2, %v1133_v30  ;;  %v1141_v7 = vld [vmem:[#allocation2 + $0x4a] sm:$0xff]  ;;  %v1142_v12 = vld [vmem:[#allocation2 + $0x52] sm:$0xff]  ;;  %v1143_v17 = vld [vmem:[#allocation2 + $0x5a] sm:$0xff] }
  0x40   : > { %v1419_v8 = vld [vmem:[#allocation2 + $0x4b] sm:$0xff]  ;;  %v1420_v13 = vld [vmem:[#allocation2 + $0x53] sm:$0xff]  ;;  %v1421_v18 = vld [vmem:[#allocation2 + $0x5b] sm:$0xff] }
  0x41   : > { %4138 = vmatmul.msk.f32.vlgmr.msrb.gmra.mxu3 %vm536_vm2, %v1411_v31  ;;  %v864_v11 = vld [vmem:[#allocation2 + $0x51] sm:$0xff]  ;;  %v865_v16 = vld [vmem:[#allocation2 + $0x59] sm:$0xff]  ;;  %v866_v21 = vld [vmem:[#allocation2 + $0x61] sm:$0xff] }
  0x42   : > { %4039 = vmatmul.msk.f32.gmra.mxu0 %vm536_vm2, %v577_v33  ;;  %v587_v20 = vld [vmem:[#allocation2 + $0x70] sm:$0xff]  ;;  %v1144_v22 = vld [vmem:[#allocation2 + $0x62] sm:$0xff]  ;;  %v588_v25 = vld [vmem:[#allocation2 + $0x78] sm:$0xff] }
  0x43   : > { %v1422_v23 = vld [vmem:[#allocation2 + $0x63] sm:$0xff]  ;;  %v517_v24 = vld [vmem:[%s4701_s16 + $0x90] sm:$0xff]  ;;  %v518_v29 = vld [vmem:[%s4701_s16 + $0x98] sm:$0xff] }
  0x44   : > { %555 = vst.msk [vmem:[#allocation2 + $0xa2] sm:$0xff] %vm536_vm2, %v517_v24  ;;  %v867_v26 = vld [vmem:[#allocation2 + $0x69] sm:$0xff]  ;;  %v589_v30 = vld [vmem:[#allocation2 + $0x80] sm:$0xff]  ;;  %v868_v31 = vld [vmem:[#allocation2 + $0x71] sm:$0xff] }
  0x45   : > { %4071 = vmatmul.msk.f32.gmra.mxu1 %vm536_vm2, %v856_v34  ;;  %v1145_v27 = vld [vmem:[#allocation2 + $0x6a] sm:$0xff]  ;;  %556 = vst.msk [vmem:[#allocation2 + $0xaa] sm:$0xff] %vm536_vm2, %v518_v29  ;;  %v1146_v32 = vld [vmem:[#allocation2 + $0x72] sm:$0xff]  ;;  %v519_v34 = vld [vmem:[%s4701_s16 + $0xa0] sm:$0xff] }
  0x46   : > { %v1423_v28 = vld [vmem:[#allocation2 + $0x6b] sm:$0xff]  ;;  %v1424_v33 = vld [vmem:[#allocation2 + $0x73] sm:$0xff]  ;;  %557 = vst.msk [vmem:[#allocation2 + $0xb2] sm:$0xff] %vm536_vm2, %v519_v34 }
  0x47   : > { %4105 = vmatmul.msk.f32.gmra.mxu2 %vm536_vm2, %v1134_v35  ;;  %v872_v4 = vld [vmem:[#allocation2 + $0x99] sm:$0xff] }
  0x49   : > { %4139 = vmatmul.msk.f32.gmra.mxu3 %vm536_vm2, %v1412_v36  ;;  %v590_v36 = vld [vmem:[#allocation2 + $0x90] sm:$0xff] }
  0x4a   : > { %4040 = vmatmul.msk.f32.gmra.mxu0 %vm536_vm2, %v578_v38  ;;  %v869_v38 = vld [vmem:[#allocation2 + $0x79] sm:$0xff]  ;;  %2114 = vst.msk [vmem:[#allocation2 + $0x90] sm:$0x1] %vm2111_vm3, %v6078_v1 }
  0x4b   : > { %v592_v52 = vld [vmem:[#allocation2 + $0xa0] sm:$0xff] }
  0x4c   : > { %v1428_v9 = vld [vmem:[#allocation2 + $0x9b] sm:$0xff]  ;;  %v874_v29 = vld [vmem:[#allocation2 + $0xa9] sm:$0xff] }
  0x4d   : > { %4072 = vmatmul.msk.f32.gmra.mxu1 %vm536_vm2, %v857_v39  ;;  %v1147_v39 = vld [vmem:[#allocation2 + $0x7a] sm:$0xff]  ;;  %v1430_v34 = vld [vmem:[#allocation2 + $0xab] sm:$0xff] }
  0x4f   : > { %4106 = vmatmul.msk.f32.gmra.mxu2 %vm536_vm2, %v1135_v40  ;;  %v1425_v40 = vld [vmem:[#allocation2 + $0x7b] sm:$0xff] }
  0x51   : > { %4140 = vmatmul.msk.f32.gmra.mxu3 %vm536_vm2, %v1413_v41  ;;  %v520_v41 = vld [vmem:[%s4701_s16 + $0xa8] sm:$0xff] }
  0x52   : > { %4041 = vmatmul.msk.f32.gmra.mxu0 %vm536_vm2, %v579_v43  ;;  %v591_v43 = vld [vmem:[#allocation2 + $0x98] sm:$0xff]  ;;  %558 = vst.msk [vmem:[#allocation2 + $0xba] sm:$0xff] %vm536_vm2, %v520_v41 }
  0x55   : > { %4073 = vmatmul.msk.f32.gmra.mxu1 %vm536_vm2, %v858_v44 }
  0x57   : > { %4107 = vmatmul.msk.f32.gmra.mxu2 %vm536_vm2, %v1136_v45 }
  0x59   : > { %4141 = vmatmul.msk.f32.gmra.mxu3 %vm536_vm2, %v1414_v46  ;;  %v870_v46 = vld [vmem:[#allocation2 + $0x81] sm:$0xff] }
  0x5a   : > { %4042 = vmatmul.msk.f32.gmra.mxu0 %vm536_vm2, %v580_v48  ;;  %v1148_v48 = vld [vmem:[#allocation2 + $0x82] sm:$0xff] }
  0x5d   : > { %4074 = vmatmul.msk.f32.gmra.mxu1 %vm536_vm2, %v859_v49  ;;  %v1426_v49 = vld [vmem:[#allocation2 + $0x83] sm:$0xff] }
  0x5f   : > { %4108 = vmatmul.msk.f32.gmra.mxu2 %vm536_vm2, %v1137_v50  ;;  %v521_v50 = vld [vmem:[%s4701_s16 + $0xb0] sm:$0xff] }
  0x60   : > { %559 = vst.msk [vmem:[#allocation2 + $0xc2] sm:$0xff] %vm536_vm2, %v521_v50  ;;  %v1431_v50 = vld [vmem:[#allocation2 + $0xb3] sm:$0xff] }
  0x61   : > { %4142 = vmatmul.msk.f32.gmra.mxu3 %vm536_vm2, %v1415_v51 }
  0x62   : > { %4043 = vmatmul.msk.f32.gmra.mxu0 %vm536_vm2, %v581_v53 }
  0x65   : > { %4075 = vmatmul.msk.f32.gmra.mxu1 %vm536_vm2, %v860_v54 }
  0x67   : > { %4109 = vmatmul.msk.f32.gmra.mxu2 %vm536_vm2, %v1138_v55  ;;  %v871_v55 = vld [vmem:[#allocation2 + $0x91] sm:$0xff] }
  0x69   : > { %4143 = vmatmul.msk.f32.gmra.mxu3 %vm536_vm2, %v1416_v56  ;;  %v4856_v56 = vld [vmem:[%s6097_s2] ss:$0 sm:$0xff] }
  0x6a   : > { %4044 = vmatmul.msk.f32.gmra.mxu0 %vm536_vm2, %v582_v58  ;;  %v1149_v58 = vld [vmem:[#allocation2 + $0x92] sm:$0xff] }
  0x6d   : > { %4076 = vmatmul.msk.f32.gmra.mxu1 %vm536_vm2, %v861_v59  ;;  %v1427_v59 = vld [vmem:[#allocation2 + $0x93] sm:$0xff] }
  0x6f   : > { %4110 = vmatmul.msk.f32.gmra.mxu2 %vm536_vm2, %v1139_v60  ;;  %v522_v60 = vld [vmem:[%s4701_s16 + $0xb8] sm:$0xff] }
  0x70   : > { %560 = vst.msk [vmem:[#allocation2 + $0xca] sm:$0xff] %vm536_vm2, %v522_v60  ;;  %v876_v60 = vld [vmem:[#allocation2 + $0xb9] sm:$0xff] }
  0x71   : > { %4144 = vmatmul.msk.f32.gmra.mxu3 %vm536_vm2, %v1417_v61 }
  0x72   : > { %4045 = vmatmul.msk.f32.gmra.mxu0 %vm536_vm2, %v583_v63  ;;  %v593_v63 = vld [vmem:[#allocation2 + $0xa8] sm:$0xff] }
  0x75   : > { %4077 = vmatmul.msk.f32.gmra.mxu1 %vm536_vm2, %v862_v0 }
  0x77   : > { %4111 = vmatmul.msk.f32.gmra.mxu2 %vm536_vm2, %v1140_v2 }
  0x79   : > { %4145 = vmatmul.msk.f32.gmra.mxu3 %vm536_vm2, %v1418_v3 }
  0x7a   : > { %4046 = vmatmul.msk.f32.gmra.mxu0 %vm536_vm2, %v584_v5 }
  0x7d   : > { %4078 = vmatmul.msk.f32.gmra.mxu1 %vm536_vm2, %v863_v6 }
  0x7f   : > { %4112 = vmatmul.msk.f32.gmra.mxu2 %vm536_vm2, %v1141_v7  ;;  %v1150_v7 = vld [vmem:[#allocation2 + $0x9a] sm:$0xff] }
  0x81   : > { %4146 = vmatmul.msk.f32.gmra.mxu3 %vm536_vm2, %v1419_v8 }
  0x82   : > { %4047 = vmatmul.msk.f32.gmra.mxu0 %vm536_vm2, %v585_v10  ;;  %v523_v10 = vld [vmem:[%s4701_s16 + $0xc0] sm:$0xff]  ;;  %s3962_s16 = sshll.u32 %s6010_s0, 4  ;;  %s3963_s16 = int_to_ptr.vmem [resolvable:$true] %s3962_s16 }
  0x83   : > { %561 = vst.msk [vmem:[#allocation2 + $0xda] sm:$0xff] %vm536_vm2, %v523_v10 }
  0x85   : > { %4079 = vmatmul.msk.f32.gmra.mxu1 %vm536_vm2, %v864_v11 }
  0x87   : > { %4113 = vmatmul.msk.f32.gmra.mxu2 %vm536_vm2, %v1142_v12 }
  0x89   : > { %4147 = vmatmul.msk.f32.gmra.mxu3 %vm536_vm2, %v1420_v13  ;;  %v594_v13 = vld [vmem:[#allocation2 + $0xb0] sm:$0xff] }
  0x8a   : > { %4048 = vmatmul.msk.f32.gmra.mxu0 %vm536_vm2, %v586_v15 }
  0x8d   : > { %4080 = vmatmul.msk.f32.gmra.mxu1 %vm536_vm2, %v865_v16 }
  0x8f   : > { %4114 = vmatmul.msk.f32.gmra.mxu2 %vm536_vm2, %v1143_v17  ;;  %v873_v17 = vld [vmem:[#allocation2 + $0xa1] sm:$0xff] }
  0x91   : > { %4148 = vmatmul.msk.f32.gmra.mxu3 %vm536_vm2, %v1421_v18 }
  0x92   : > { %4049 = vmatmul.msk.f32.gmra.mxu0 %vm536_vm2, %v587_v20  ;;  %v1151_v20 = vld [vmem:[#allocation2 + $0xa2] sm:$0xff] }
  0x95   : > { %4081 = vmatmul.msk.f32.gmra.mxu1 %vm536_vm2, %v866_v21 }
  0x97   : > { %4115 = vmatmul.msk.f32.gmra.mxu2 %vm536_vm2, %v1144_v22  ;;  %v1429_v22 = vld [vmem:[#allocation2 + $0xa3] sm:$0xff] }
  0x99   : > { %4149 = vmatmul.msk.f32.gmra.mxu3 %vm536_vm2, %v1422_v23 }
  0x9a   : > { %4050 = vmatmul.msk.f32.gmra.mxu0 %vm536_vm2, %v588_v25  ;;  %v595_v25 = vld [vmem:[#allocation2 + $0xb8] sm:$0xff] }
  0x9d   : > { %4082 = vmatmul.msk.f32.gmra.mxu1 %vm536_vm2, %v867_v26 }
  0x9f   : > { %4116 = vmatmul.msk.f32.gmra.mxu2 %vm536_vm2, %v1145_v27 }
  0xa1   : > { %4150 = vmatmul.msk.f32.gmra.mxu3 %vm536_vm2, %v1423_v28 }
  0xa2   : > { %4051 = vmatmul.msk.f32.gmra.mxu0 %vm536_vm2, %v589_v30 }
  0xa5   : > { %4083 = vmatmul.msk.f32.gmra.mxu1 %vm536_vm2, %v868_v31 }
  0xa7   : > { %4117 = vmatmul.msk.f32.gmra.mxu2 %vm536_vm2, %v1146_v32  ;;  %v724_v35 = vpop.f32.mrf.mxu0  ;;  %v1152_v32 = vld [vmem:[#allocation2 + $0xaa] sm:$0xff] }
  0xa8   : > { %v823_v61 = vadd.f32 %v4856_v56, %v724_v35 }
  0xa9   : > { %4151 = vmatmul.msk.f32.gmra.mxu3 %vm536_vm2, %v1424_v33 }
  0xaa   : > { %v4830_v37 = vpop.f32.mrf.mxu1  ;;  %4052 = vmatmul.msk.f32.gmra.mxu0 %vm536_vm2, %v590_v36 }
  0xab   : > { %6092 = vst [vmem:[#allocation8_spill] sm:$0xff] %v4830_v37 }
  0xad   : > { %4084 = vmatmul.msk.f32.gmra.mxu1 %vm536_vm2, %v869_v38  ;;  %v596_v38 = vld [vmem:[#allocation2 + $0xc0] sm:$0xff] }
  0xaf   : > { %4118 = vmatmul.msk.f32.gmra.mxu2 %vm536_vm2, %v1147_v39  ;;  %v727_v42 = vpop.f32.mrf.mxu0 }
  0xb0   : > { %v824_v11 = vadd.f32 %v4856_v56, %v727_v42  ;;  %v875_v42 = vld [vmem:[#allocation2 + $0xb1] sm:$0xff] }
  0xb1   : > { %4152 = vmatmul.msk.f32.gmra.mxu3 %vm536_vm2, %v1425_v40 }
  0xb2   : > { %v4838_v44 = vpop.f32.mrf.mxu2  ;;  %v4840_v45 = vpop.f32.mrf.mxu1  ;;  %4053 = vmatmul.msk.f32.gmra.mxu0 %vm536_vm2, %v591_v43 }
  0xb3   : > { %6093 = vst [vmem:[#allocation9_spill] sm:$0xff] %v4838_v44 }
  0xb4   : > { %6094 = vst [vmem:[#allocation10_spill] sm:$0xff] %v4840_v45  ;;  %v4843_v47 = vpop.f32.mrf.mxu3 }
  0xb5   : > { %6095 = vst [vmem:[#allocation11_spill] sm:$0xff] %v4843_v47  ;;  %4085 = vmatmul.msk.f32.gmra.mxu1 %vm536_vm2, %v870_v46  ;;  %v1707_v47 = vld [vmem:[#allocation2 + $0xa4] sm:$0xff] }
  0xb7   : > { %4119 = vmatmul.msk.f32.gmra.mxu2 %vm536_vm2, %v1148_v48  ;;  %v730_v51 = vpop.f32.mrf.mxu0  ;;  %v1153_v48 = vld [vmem:[#allocation2 + $0xb2] sm:$0xff] }
  0xb8   : > { %v825_v23 = vadd.f32 %v4856_v56, %v730_v51 }
  0xb9   : > { %4153 = vmatmul.msk.f32.gmra.mxu3 %vm536_vm2, %v1426_v49 }
  0xba   : > { %v4850_v53 = vpop.f32.mrf.mxu2  ;;  %v1005_v54 = vpop.f32.mrf.mxu1  ;;  %4054 = vmatmul.msk.f32.gmra.mxu0 %vm536_vm2, %v592_v52 }
  0xbb   : > { %6096 = vst [vmem:[#allocation12_spill] sm:$0xff] %v4850_v53  ;;  %v1101_v0 = vadd.f32 %v1005_v54, %v823_v61  ;;  %v597_v54 = vld [vmem:[#allocation2 + $0xc8] sm:$0xff] }
  0xbc   : > { %v4858_v57 = vpop.f32.mrf.mxu3 }
  0xbd   : > { %6098 = vst [vmem:[#allocation13_spill] sm:$0xff] %v4858_v57  ;;  %4086 = vmatmul.msk.f32.gmra.mxu1 %vm536_vm2, %v871_v55 }
  0xbf   : > { %4120 = vmatmul.msk.f32.gmra.mxu2 %vm536_vm2, %v1149_v58  ;;  %v733_v62 = vpop.f32.mrf.mxu0 }
  0xc0   : > { %v826_v35 = vadd.f32 %v4856_v56, %v733_v62 }
  0xc1   : > { %4154 = vmatmul.msk.f32.gmra.mxu3 %vm536_vm2, %v1427_v59 }
  0xc2   : > { %v1283_v2 = vpop.f32.mrf.mxu2  ;;  %v1008_v3 = vpop.f32.mrf.mxu1  ;;  %4055 = vmatmul.msk.f32.gmra.mxu0 %vm536_vm2, %v593_v63  ;;  %v1154_v63 = vld [vmem:[#allocation2 + $0xba] sm:$0xff] }
  0xc3   : > { %v1379_v5 = vadd.f32 %v1283_v2, %v1101_v0  ;;  %v1102_v14 = vadd.f32 %v1008_v3, %v824_v11  ;;  %v1432_v2 = vld [vmem:[#allocation2 + $0xbb] sm:$0xff] }
  0xc4   : > { %v1561_v6 = vpop.f32.mrf.mxu3 }
  0xc5   : > { %v4867_v8 = vadd.f32 %v1561_v6, %v1379_v5  ;;  %4087 = vmatmul.msk.f32.gmra.mxu1 %vm536_vm2, %v872_v4  ;;  %v598_v5 = vld [vmem:[#allocation2 + $0xd8] sm:$0xff] }
  0xc6   : > { %2115 = vst.msk [vmem:[#allocation2 + $0xd8] sm:$0x1] %vm2111_vm3, %v6078_v1 }
  0xc7   : > { %4121 = vmatmul.msk.f32.gmra.mxu2 %vm536_vm2, %v1150_v7  ;;  %v736_v12 = vpop.f32.mrf.mxu0 }
  0xc8   : > { %v827_v51 = vadd.f32 %v4856_v56, %v736_v12 }
  0xc9   : > { %4155 = vmatmul.msk.f32.gmra.mxu3 %vm536_vm2, %v1428_v9  ;;  %v877_v9 = vld [vmem:[#allocation2 + $0xc1] sm:$0xff] }
  0xca   : > { %v1286_v15 = vpop.f32.mrf.mxu2  ;;  %v1011_v16 = vpop.f32.mrf.mxu1  ;;  %4056 = vmatmul.msk.f32.gmra.mxu0 %vm536_vm2, %v594_v13  ;;  %v1155_v13 = vld [vmem:[#allocation2 + $0xc2] sm:$0xff] }
  0xcb   : > { %v1380_v18 = vadd.f32 %v1286_v15, %v1102_v14  ;;  %v1103_v26 = vadd.f32 %v1011_v16, %v825_v23  ;;  %v1433_v15 = vld [vmem:[#allocation2 + $0xc3] sm:$0xff] }
  0xcc   : > { %v1564_v19 = vpop.f32.mrf.mxu3 }
  0xcd   : > { %v4876_v21 = vadd.f32 %v1564_v19, %v1380_v18  ;;  %4088 = vmatmul.msk.f32.gmra.mxu1 %vm536_vm2, %v873_v17  ;;  %v599_v18 = vld [vmem:[#allocation2 + $0xe0] sm:$0xff] }
  0xcf   : > { %4122 = vmatmul.msk.f32.gmra.mxu2 %vm536_vm2, %v1151_v20  ;;  %v739_v24 = vpop.f32.mrf.mxu0 }
  0xd0   : > { %v828_v3 = vadd.f32 %v4856_v56, %v739_v24 }
  0xd1   : > { %4156 = vmatmul.msk.f32.gmra.mxu3 %vm536_vm2, %v1429_v22  ;;  %v878_v22 = vld [vmem:[#allocation2 + $0xc9] sm:$0xff] }
  0xd2   : > { %v1289_v27 = vpop.f32.mrf.mxu2  ;;  %v1014_v28 = vpop.f32.mrf.mxu1  ;;  %4057 = vmatmul.msk.f32.gmra.mxu0 %vm536_vm2, %v595_v25  ;;  %v1156_v25 = vld [vmem:[#allocation2 + $0xca] sm:$0xff] }
  0xd3   : > { %v1381_v30 = vadd.f32 %v1289_v27, %v1103_v26  ;;  %v1104_v39 = vadd.f32 %v1014_v28, %v826_v35  ;;  %v1434_v28 = vld [vmem:[#allocation2 + $0xcb] sm:$0xff]  ;;  %v4227_v35 = vld [vmem:[%s6099_s3 + $0x78] sm:$0xff] }
  0xd4   : > { %v1567_v31 = vpop.f32.mrf.mxu3  ;;  %2374 = vmatpush.msra.mxu2 %v4227_v35  ;;  %v1700_v35 = vld [vmem:[#allocation2 + $0x64] sm:$0xff] }
  0xd5   : > { %v4883_v33 = vadd.f32 %v1567_v31, %v1381_v30  ;;  %4089 = vmatmul.msk.f32.gmra.mxu1 %vm536_vm2, %v874_v29  ;;  %v1689_v31 = vld [vmem:[#allocation2 + $0x4] sm:$0xff]  ;;  %2133 = vst.msk [vmem:[#allocation2 + $0x69] sm:$0x1] %vm2111_vm3, %v6078_v1 }
  0xd7   : > { %4123 = vmatmul.msk.f32.gmra.mxu2 %vm536_vm2, %v1152_v32  ;;  %v742_v36 = vpop.f32.mrf.mxu0  ;;  %v1692_v32 = vld [vmem:[#allocation2 + $0x1c] sm:$0xff] }
  0xd8   : > { %v829_v16 = vadd.f32 %v4856_v56, %v742_v36  ;;  %2132 = vst.msk [vmem:[#allocation2 + $0x21] sm:$0x1] %vm2111_vm3, %v6078_v1 }
  0xd9   : > { %4157 = vmatmul.msk.f32.gmra.mxu3 %vm536_vm2, %v1430_v34 }
  0xda   : > { %v1292_v40 = vpop.f32.mrf.mxu2  ;;  %v1017_v41 = vpop.f32.mrf.mxu1  ;;  %4058 = vmatmul.msk.f32.gmra.mxu0 %vm536_vm2, %v596_v38  ;;  %v879_v38 = vld [vmem:[#allocation2 + $0xd9] sm:$0xff] }
  0xdb   : > { %v1382_v43 = vadd.f32 %v1292_v40, %v1104_v39  ;;  %v1105_v55 = vadd.f32 %v1017_v41, %v827_v51  ;;  %v4251_v40 = vld [vmem:[%s6099_s3 + $0xb8] sm:$0xff]  ;;  %v1690_v51 = vld [vmem:[#allocation2 + $0xc] sm:$0xff] }
  0xdc   : > { %v1570_v46 = vpop.f32.mrf.mxu3  ;;  %2528 = vmatpush.msra.mxu3 %v4251_v40 }
  0xdd   : > { %v4890_v49 = vadd.f32 %v1570_v46, %v1382_v43  ;;  %4090 = vmatmul.msk.f32.gmra.mxu1 %vm536_vm2, %v875_v42  ;;  %v1157_v42 = vld [vmem:[#allocation2 + $0xda] sm:$0xff] }
  0xde   : > { %v2160_v46 = vld [vmem:[%s6099_s3 + $0x38] sm:$0xff] }
  0xdf   : > { %4124 = vmatmul.msk.f32.gmra.mxu2 %vm536_vm2, %v1153_v48  ;;  %v745_v52 = vpop.f32.mrf.mxu0  ;;  %v1435_v48 = vld [vmem:[#allocation2 + $0xdb] sm:$0xff]  ;;  %2217 = vmatpush.msra.mxu1 %v2160_v46  ;;  %v4249_v46 = vld [vmem:[%s6099_s3 + $0xa8] sm:$0xff] }
  0xe0   : > { %v830_v29 = vadd.f32 %v4856_v56, %v745_v52  ;;  %v880_v52 = vld [vmem:[#allocation2 + $0xe1] sm:$0xff] }
  0xe1   : > { %4158 = vmatmul.msk.f32.gmra.mxu3 %vm536_vm2, %v1431_v50 }
  0xe2   : > { %v1295_v58 = vpop.f32.mrf.mxu2  ;;  %v1020_v59 = vpop.f32.mrf.mxu1  ;;  %4059 = vmatmul.msk.f32.gmra.mxu0 %vm536_vm2, %v597_v54  ;;  %v1158_v54 = vld [vmem:[#allocation2 + $0xe2] sm:$0xff] }
  0xe3   : > { %v1383_v61 = vadd.f32 %v1295_v58, %v1105_v55  ;;  %v1106_v6 = vadd.f32 %v1020_v59, %v828_v3  ;;  %v1436_v55 = vld [vmem:[#allocation2 + $0xe3] sm:$0xff]  ;;  %v1691_v59 = vld [vmem:[#allocation2 + $0x14] sm:$0xff] }
  0xe4   : > { %v1573_v62 = vpop.f32.mrf.mxu3  ;;  %v1160_v3 = vld [vmem:[#allocation2 + $0xf2] sm:$0xff] }
  0xe5   : > { %v4897_v0 = vadd.f32 %v1573_v62, %v1383_v61  ;;  %4091 = vmatmul.msk.f32.gmra.mxu1 %vm536_vm2, %v876_v60  ;;  %v881_v60 = vld [vmem:[#allocation2 + $0xe9] sm:$0xff] }
  0xe6   : > { %v1159_v61 = vld [vmem:[#allocation2 + $0xea] sm:$0xff] }
  0xe7   : > { %4125 = vmatmul.msk.f32.gmra.mxu2 %vm536_vm2, %v1154_v63  ;;  %v4902_v4 = vpop.f32.mrf.mxu0  ;;  %v1437_v62 = vld [vmem:[#allocation2 + $0xeb] sm:$0xff] }
  0xe9   : > { %4159 = vmatmul.msk.f32.gmra.mxu3 %vm536_vm2, %v1432_v2  ;;  %v882_v2 = vld [vmem:[#allocation2 + $0xf1] sm:$0xff] }
  0xea   : > { %v1298_v7 = vpop.f32.mrf.mxu2  ;;  %4060 = vmatmul.msk.f32.gmra.mxu0 %vm536_vm2, %v598_v5  ;;  %v1023_v11 = vpop.f32.mrf.mxu1  ;;  %v1438_v5 = vld [vmem:[#allocation2 + $0xf3] sm:$0xff] }
  0xeb   : > { %v1384_v10 = vadd.f32 %v1298_v7, %v1106_v6  ;;  %v1107_v19 = vadd.f32 %v1023_v11, %v829_v16  ;;  %v1693_v7 = vld [vmem:[#allocation2 + $0x24] sm:$0xff]  ;;  %v4250_v11 = vld [vmem:[%s6099_s3 + $0xb0] sm:$0xff] }
  0xec   : > { %v1576_v12 = vpop.f32.mrf.mxu3  ;;  %2529 = vmatpush.msra.mxu3 %v4250_v11 }
  0xed   : > { %v4906_v14 = vadd.f32 %v1576_v12, %v1384_v10  ;;  %4092 = vmatmul.msk.f32.gmra.mxu1 %vm536_vm2, %v877_v9  ;;  %v4226_v9 = vld [vmem:[%s6099_s3 + $0x70] sm:$0xff]  ;;  %v883_v10 = vld [vmem:[#allocation2 + $0xf9] sm:$0xff] }
  0xee   : > { %2375 = vmatpush.msra.mxu2 %v4226_v9  ;;  %v1161_v12 = vld [vmem:[#allocation2 + $0xfa] sm:$0xff]  ;;  %2530 = vmatpush.msra.mxu3 %v4249_v46 }
  0xef   : > { %4126 = vmatmul.msk.f32.gmra.mxu2 %vm536_vm2, %v1155_v13  ;;  %v4911_v17 = vpop.f32.mrf.mxu0  ;;  %v2159_v13 = vld [vmem:[%s6099_s3 + $0x30] sm:$0xff]  ;;  %v2156_v46 = vld [vmem:[%s6099_s3 + $0x18] sm:$0xff] }
  0xf0   : > { %2218 = vmatpush.msra.mxu1 %v2159_v13  ;;  %v1701_v13 = vld [vmem:[#allocation2 + $0x6c] sm:$0xff] }
  0xf1   : > { %4160 = vmatmul.msk.f32.gmra.mxu3 %vm536_vm2, %v1433_v15  ;;  %v1439_v15 = vld [vmem:[#allocation2 + $0xfb] sm:$0xff] }
  0xf2   : > { %v1301_v20 = vpop.f32.mrf.mxu2  ;;  %4061 = vmatmul.msk.f32.gmra.mxu0 %vm536_vm2, %v599_v18  ;;  %v1026_v27 = vpop.f32.mrf.mxu1  ;;  %v1694_v18 = vld [vmem:[#allocation2 + $0x2c] sm:$0xff] }
  0xf3   : > { %v1385_v23 = vadd.f32 %v1301_v20, %v1107_v19  ;;  %v1108_v34 = vadd.f32 %v1026_v27, %v830_v29  ;;  %v884_v19 = vld [vmem:[#allocation2 + $0x101] sm:$0xff]  ;;  %v1163_v27 = vld [vmem:[#allocation2 + $0x10a] sm:$0xff] }
  0xf4   : > { %v1579_v24 = vpop.f32.mrf.mxu3  ;;  %v1162_v20 = vld [vmem:[#allocation2 + $0x102] sm:$0xff] }
  0xf5   : > { %v4915_v26 = vadd.f32 %v1579_v24, %v1385_v23  ;;  %4093 = vmatmul.msk.f32.gmra.mxu1 %vm536_vm2, %v878_v22  ;;  %v1440_v22 = vld [vmem:[#allocation2 + $0x103] sm:$0xff]  ;;  %v1695_v24 = vld [vmem:[#allocation2 + $0x34] sm:$0xff] }
  0xf7   : > { %4127 = vmatmul.msk.f32.gmra.mxu2 %vm536_vm2, %v1156_v25  ;;  %v4920_v30 = vpop.f32.mrf.mxu0  ;;  %v885_v25 = vld [vmem:[#allocation2 + $0x109] sm:$0xff] }
  0xf9   : > { %4161 = vmatmul.msk.f32.gmra.mxu3 %vm536_vm2, %v1434_v28  ;;  %v1441_v28 = vld [vmem:[#allocation2 + $0x10b] sm:$0xff] }
  0xfa   : > { %v1304_v36 = vpop.f32.mrf.mxu2  ;;  %4172 = vmatmul.msk.f32.vlgmr.msrb.gmra.mxu0 %vm536_vm2, %v1689_v31  ;;  %v1696_v31 = vld [vmem:[#allocation2 + $0x3c] sm:$0xff] }
  0xfb   : > { %v1386_v39 = vadd.f32 %v1304_v36, %v1108_v34  ;;  %v1164_v34 = vld [vmem:[#allocation2 + $0x112] sm:$0xff]  ;;  %v4225_v36 = vld [vmem:[%s6099_s3 + $0x68] sm:$0xff] }
  0xfc   : > { %v1582_v41 = vpop.f32.mrf.mxu3  ;;  %2376 = vmatpush.msra.mxu2 %v4225_v36 }
  0xfd   : > { %v4940_v43 = vadd.f32 %v1582_v41, %v1386_v39  ;;  %4094 = vmatmul.msk.f32.gmra.mxu1 %vm536_vm2, %v879_v38  ;;  %v5000_v38 = vpop.f32.mrf.mxu1  ;;  %v1442_v39 = vld [vmem:[#allocation2 + $0x113] sm:$0xff] }
  0xfe   : > { %v1697_v41 = vld [vmem:[#allocation2 + $0x4c] sm:$0xff] }
  0xff   : > { %4128 = vmatmul.msk.f32.gmra.mxu2 %vm536_vm2, %v1157_v42  ;;  %v4947_v50 = vpop.f32.mrf.mxu0 }
 0x101   : > { %4162 = vmatmul.msk.f32.gmra.mxu3 %vm536_vm2, %v1435_v48 }
 0x102   : > { %4173 = vmatmul.msk.f32.gmra.mxu0 %vm536_vm2, %v1690_v51  ;;  %v5007_v42 = vpop.f32.mrf.mxu2  ;;  %v2158_v51 = vld [vmem:[%s6099_s3 + $0x28] sm:$0xff] }
 0x103   : > { %2219 = vmatpush.msra.mxu1 %v2158_v51  ;;  %v4223_v51 = vld [vmem:[%s6099_s3 + $0x58] sm:$0xff] }
 0x104   : > { %v5014_v48 = vpop.f32.mrf.mxu3 }
 0x105   : > { %4095 = vmatmul.msk.f32.gmra.mxu1 %vm536_vm2, %v880_v52 }
 0x107   : > { %4129 = vmatmul.msk.f32.gmra.mxu2 %vm536_vm2, %v1158_v54  ;;  %v4953_v58 = vpop.f32.mrf.mxu0  ;;  %v1698_v54 = vld [vmem:[#allocation2 + $0x54] sm:$0xff] }
 0x109   : > { %4163 = vmatmul.msk.f32.gmra.mxu3 %vm536_vm2, %v1436_v55  ;;  %v5021_v55 = vpop.f32.mrf.mxu1 }
 0x10a   : > { %4174 = vmatmul.msk.f32.gmra.mxu0 %vm536_vm2, %v1691_v59  ;;  %v5023_v59 = vpop.f32.mrf.mxu2 }
 0x10d   : > { %4096 = vmatmul.msk.f32.gmra.mxu1 %vm536_vm2, %v881_v60  ;;  %v5026_v60 = vpop.f32.mrf.mxu3 }
 0x10f   : > { %4130 = vmatmul.msk.f32.gmra.mxu2 %vm536_vm2, %v1159_v61  ;;  %v4959_v63 = vpop.f32.mrf.mxu0 }
 0x111   : > { %4164 = vmatmul.msk.f32.gmra.mxu3 %vm536_vm2, %v1437_v62  ;;  %v1699_v62 = vld [vmem:[#allocation2 + $0x5c] sm:$0xff] }
 0x112   : > { %4175 = vmatmul.msk.f32.gmra.mxu0 %vm536_vm2, %v1692_v32  ;;  %v886_v32 = vld [vmem:[#allocation2 + $0x111] sm:$0xff] }
 0x115   : > { %4097 = vmatmul.msk.f32.gmra.mxu1 %vm536_vm2, %v882_v2  ;;  %v5030_v2 = vpop.f32.mrf.mxu1 }
 0x117   : > { %4131 = vmatmul.msk.f32.gmra.mxu2 %vm536_vm2, %v1160_v3  ;;  %v4965_v6 = vpop.f32.mrf.mxu0  ;;  %v5033_v3 = vpop.f32.mrf.mxu2 }
 0x119   : > { %4165 = vmatmul.msk.f32.gmra.mxu3 %vm536_vm2, %v1438_v5 }
 0x11a   : > { %4176 = vmatmul.msk.f32.gmra.mxu0 %vm536_vm2, %v1693_v7  ;;  %v5037_v7 = vpop.f32.mrf.mxu3 }
 0x11d   : > { %4098 = vmatmul.msk.f32.gmra.mxu1 %vm536_vm2, %v883_v10  ;;  %v5040_v9 = vpop.f32.mrf.mxu1  ;;  %v4224_v10 = vld [vmem:[%s6099_s3 + $0x60] sm:$0xff] }
 0x11e   : > { %2377 = vmatpush.msra.mxu2 %v4224_v10  ;;  %v4222_v10 = vld [vmem:[%s6099_s3 + $0x50] sm:$0xff] }
 0x11f   : > { %4132 = vmatmul.msk.f32.gmra.mxu2 %vm536_vm2, %v1161_v12  ;;  %v4980_v16 = vpop.f32.mrf.mxu0  ;;  %v5045_v11 = vpop.f32.mrf.mxu2 }
 0x120   : > { %2378 = vmatpush.msra.mxu2 %v4223_v51  ;;  %v2153_v51 = vld [vmem:[%s6099_s3] sm:$0xff] }
 0x121   : > { %4166 = vmatmul.msk.f32.gmra.mxu3 %vm536_vm2, %v1439_v15 }
 0x122   : > { %4177 = vmatmul.msk.f32.gmra.mxu0 %vm536_vm2, %v1694_v18  ;;  %v5049_v15 = vpop.f32.mrf.mxu3  ;;  %v4248_v18 = vld [vmem:[%s6099_s3 + $0xa0] sm:$0xff]  ;;  %2379 = vmatpush.msra.mxu2 %v4222_v10 }
 0x123   : > { %2531 = vmatpush.msra.mxu3 %v4248_v18 }
 0x125   : > { %4099 = vmatmul.msk.f32.gmra.mxu1 %vm536_vm2, %v884_v19  ;;  %v2157_v19 = vld [vmem:[%s6099_s3 + $0x20] sm:$0xff] }
 0x126   : > { %2220 = vmatpush.msra.mxu1 %v2157_v19  ;;  %v1705_v19 = vld [vmem:[#allocation2 + $0x94] sm:$0xff] }
 0x127   : > { %4133 = vmatmul.msk.f32.gmra.mxu2 %vm536_vm2, %v1162_v20  ;;  %v4986_v23 = vpop.f32.mrf.mxu0  ;;  %v5058_v20 = vpop.f32.mrf.mxu1 }
 0x128   : > { %2221 = vmatpush.msra.mxu1 %v2156_v46 }
 0x129   : > { %4167 = vmatmul.msk.f32.gmra.mxu3 %vm536_vm2, %v1440_v22 }
 0x12a   : > { %4178 = vmatmul.msk.f32.gmra.mxu0 %vm536_vm2, %v1695_v24  ;;  %v1702_v24 = vld [vmem:[#allocation2 + $0x74] sm:$0xff] }
 0x12d   : > { %4100 = vmatmul.msk.f32.gmra.mxu1 %vm536_vm2, %v885_v25  ;;  %v5062_v25 = vpop.f32.mrf.mxu2 }
 0x12f   : > { %4134 = vmatmul.msk.f32.gmra.mxu2 %vm536_vm2, %v1163_v27  ;;  %v4992_v29 = vpop.f32.mrf.mxu0  ;;  %v5065_v27 = vpop.f32.mrf.mxu3 }
 0x131   : > { %4168 = vmatmul.msk.f32.gmra.mxu3 %vm536_vm2, %v1441_v28 }
 0x132   : > { %4179 = vmatmul.msk.f32.gmra.mxu0 %vm536_vm2, %v1696_v31  ;;  %v1703_v31 = vld [vmem:[#allocation2 + $0x7c] sm:$0xff] }
 0x135   : > { %4101 = vmatmul.msk.f32.gmra.mxu1 %vm536_vm2, %v886_v32  ;;  %v5069_v32 = vpop.f32.mrf.mxu1 }
 0x137   : > { %4135 = vmatmul.msk.f32.gmra.mxu2 %vm536_vm2, %v1164_v34  ;;  %v5005_v40 = vpop.f32.mrf.mxu0  ;;  %v5071_v34 = vpop.f32.mrf.mxu2 }
 0x139   : > { %4169 = vmatmul.msk.f32.gmra.mxu3 %vm536_vm2, %v1442_v39  ;;  %v1704_v39 = vld [vmem:[#allocation2 + $0x84] sm:$0xff] }
 0x13a   : > { %4180 = vmatmul.msk.f32.gmra.mxu0 %vm536_vm2, %v1697_v41 }
 0x13d   : > { %v5078_v41 = vpop.f32.mrf.mxu1 }
 0x13f   : > { %v5019_v52 = vpop.f32.mrf.mxu0 }
 0x142   : > { %4181 = vmatmul.msk.f32.gmra.mxu0 %vm536_vm2, %v1698_v54  ;;  %v5087_v54 = vpop.f32.mrf.mxu2 }
 0x147   : > { %v5028_v61 = vpop.f32.mrf.mxu0 }
 0x14a   : > { %4182 = vmatmul.msk.f32.gmra.mxu0 %vm536_vm2, %v1699_v62  ;;  %v2155_v62 = vld [vmem:[%s6099_s3 + $0x10] sm:$0xff] }
 0x14b   : > { %2222 = vmatpush.msra.mxu1 %v2155_v62  ;;  %v4220_v62 = vld [vmem:[%s6099_s3 + $0x40] sm:$0xff] }
 0x14f   : > { %v5035_v5 = vpop.f32.mrf.mxu0 }
 0x150   : > { %6100 = vst [vmem:[#allocation14_spill] sm:$0xff] %v5035_v5 }
 0x152   : > { %4183 = vmatmul.msk.f32.gmra.mxu0 %vm536_vm2, %v1700_v35  ;;  %v5074_v35 = vpop.f32.mrf.mxu3 }
 0x157   : > { %v5047_v12 = vpop.f32.mrf.mxu0 }
 0x158   : > { %6101 = vst [vmem:[#allocation15_spill] sm:$0xff] %v5047_v12 }
 0x15a   : > { %4184 = vmatmul.msk.f32.gmra.mxu0 %vm536_vm2, %v1701_v13  ;;  %v1708_v13 = vld [vmem:[#allocation2 + $0xac] sm:$0xff] }
 0x15b   : > { %2134 = vst.msk [vmem:[#allocation2 + $0xb1] sm:$0x1] %vm2111_vm3, %v6078_v1  ;;  %v5113_v1 = vpop.f32.mrf.mxu1 }
 0x15f   : > { %v5060_v22 = vpop.f32.mrf.mxu0 }
 0x160   : > { %6102 = vst [vmem:[#allocation16_spill] sm:$0xff] %v5060_v22 }
 0x162   : > { %4185 = vmatmul.msk.f32.gmra.mxu0 %vm536_vm2, %v1702_v24  ;;  %v2154_v24 = vld [vmem:[%s6099_s3 + $0x8] sm:$0xff] }
 0x163   : > { %2223 = vmatpush.msra.mxu1 %v2154_v24 }
 0x165   : > { %2224 = vmatpush.msra.mxu1 %v2153_v51  ;;  %v4246_v51 = vld [vmem:[%s6099_s3 + $0x90] sm:$0xff] }
 0x167   : > { %v5067_v28 = vpop.f32.mrf.mxu0 }
 0x168   : > { %6103 = vst [vmem:[#allocation17_spill] sm:$0xff] %v5067_v28 }
 0x16a   : > { %4186 = vmatmul.msk.f32.gmra.mxu0 %vm536_vm2, %v1703_v31  ;;  %v4221_v31 = vld [vmem:[%s6099_s3 + $0x48] sm:$0xff] }
 0x16b   : > { %2380 = vmatpush.msra.mxu2 %v4221_v31  ;;  %v1706_v31 = vld [vmem:[#allocation2 + $0x9c] sm:$0xff] }
 0x16d   : > { %2381 = vmatpush.msra.mxu2 %v4220_v62  ;;  %v5129_v62 = vpop.f32.mrf.mxu1 }
 0x16f   : > { %v5076_v36 = vpop.f32.mrf.mxu0 }
 0x170   : > { %6104 = vst [vmem:[#allocation18_spill] sm:$0xff] %v5076_v36 }
 0x172   : > { %4187 = vmatmul.msk.f32.gmra.mxu0 %vm536_vm2, %v1704_v39  ;;  %v5103_v39 = vpop.f32.mrf.mxu3 }
 0x177   : > { %v1839_v18 = vpop.f32.mrf.mxu0 }
 0x178   : > { %v1935_v46 = vadd.f32 %v1839_v18, %v4867_v8  ;;  %v5116_v8 = vpop.f32.mrf.mxu2  ;;  %v4247_v18 = vld [vmem:[%s6099_s3 + $0x98] sm:$0xff] }
 0x179   : > { %2532 = vmatpush.msra.mxu3 %v4247_v18 }
 0x17a   : > { %v1967_v10 = vmax.f32 %v1935_v46, 0.0  ;;  %4188 = vmatmul.msk.f32.gmra.mxu0 %vm536_vm2, %v1705_v19  ;;  %v5122_v46 = vpop.f32.mrf.mxu3 }
 0x17b   : > { %2533 = vmatpush.msra.mxu3 %v4246_v51 }
 0x17c   : > { %2000 = vst.msk [vmem:[#allocation3] sm:$0xff] %vm1999_vm4, %v1967_v10 }
 0x17f   : > { %v1842_v24 = vpop.f32.mrf.mxu0 }
 0x180   : > { %v1936_v57 = vadd.f32 %v1842_v24, %v4876_v21  ;;  %v4245_v21 = vld [vmem:[%s6099_s3 + $0x88] sm:$0xff]  ;;  %v5134_v18 = vpop.f32.mrf.mxu2  ;;  %v4244_v24 = vld [vmem:[%s6099_s3 + $0x80] sm:$0xff] }
 0x181   : > { %2534 = vmatpush.msra.mxu3 %v4245_v21 }
 0x182   : > { %v1968_v19 = vmax.f32 %v1936_v57, 0.0  ;;  %4189 = vmatmul.msk.f32.gmra.mxu0 %vm536_vm2, %v1706_v31  ;;  %v5141_v53 = vpop.f32.mrf.mxu3 }
 0x183   : > { %2535 = vmatpush.msra.mxu3 %v4244_v24 }
 0x184   : > { %2001 = vst.msk [vmem:[#allocation3 + $0x8] sm:$0xff] %vm1999_vm4, %v1968_v19 }
 0x187   : > { %v1845_v10 = vpop.f32.mrf.mxu0 }
 0x188   : > { %v1937_v57 = vadd.f32 %v1845_v10, %v4883_v33  ;;  %v5148_v10 = vpop.f32.mrf.mxu1 }
 0x18a   : > { %v1969_v31 = vmax.f32 %v1937_v57, 0.0  ;;  %4190 = vmatmul.msk.f32.gmra.mxu0 %vm536_vm2, %v1707_v47  ;;  %v5151_v57 = vpop.f32.mrf.mxu2 }
 0x18b   : > { %v2032_v19 = vld [vmem:[#allocation3] ss:$2 sm:$0xff]  ;;  %v2064_v51 = vld [vmem:[#allocation3 + $0x1] ss:$2 sm:$0xff] }
 0x18c   : > { %v5143_v44 = vmax.f32 %v2032_v19, %v2064_v51  ;;  %2002 = vst.msk [vmem:[#allocation3 + $0x10] sm:$0xff] %vm1999_vm4, %v1969_v31  ;;  %v5155_v51 = vpop.f32.mrf.mxu3  ;;  %v6106_v31 = vmov 0.0  }
 0x18e   : > { %6105 = vst [vmem:[#allocation19_spill] sm:$0xff] %v5143_v44 }
 0x18f   : > { %2116 = vst.msk [vmem:[#allocation2 + $0x1] sm:$0xff] %vm1999_vm4, %v5143_v44  ;;  %v1848_v33 = vpop.f32.mrf.mxu0 }
 0x190   : > { %v1938_v21 = vadd.f32 %v1848_v33, %v4890_v49  ;;  %v1709_v33 = vld [vmem:[#allocation2 + $0xb4] sm:$0xff]  ;;  %v5162_v44 = vpop.f32.mrf.mxu1 }
 0x192   : > { %v1970_v47 = vmax.f32 %v1938_v21, 0.0  ;;  %4191 = vmatmul.msk.f32.gmra.mxu0 %vm536_vm2, %v1708_v13  ;;  %v5165_v37 = vpop.f32.mrf.mxu2 }
 0x194   : > { %2003 = vst.msk [vmem:[#allocation3 + $0x18] sm:$0xff] %vm1999_vm4, %v1970_v47 }
 0x196   : > { %v2137_v24 = vld [vmem:[#allocation2] sm:$0xff] }
 0x197   : > { %v2293_v19 = vld [vmem:[#allocation2 + $0x1] sm:$0xff]  ;;  %4204 = vmatmul.msk.f32.vlgmr.msra.gmra.mxu1 %vm1999_vm4, %v2137_v24  ;;  %2743 = vst.msk [vmem:[#allocation2] sm:$0x1] %vm2742_vm5, %v6106_v31  ;;  %v1851_v49 = vpop.f32.mrf.mxu0 }
 0x198   : > { %4228 = vmatmul.msk.f32.vlgmr.msra.gmra.mxu2 %vm1999_vm4, %v2293_v19  ;;  %v1939_v21 = vadd.f32 %v1851_v49, %v4897_v0  ;;  %v4323_v0 = vld [vmem:[%s6067_s5 + $0x58] sm:$0xff]  ;;  %v5175_v49 = vpop.f32.mrf.mxu3 }
 0x199   : > { %v1710_v19 = vld [vmem:[#allocation2 + $0xbc] sm:$0xff]  ;;  %3168 = vmatpush.msra.mxu0 %v4323_v0 }
 0x19a   : > { %v1971_v13 = vmax.f32 %v1939_v21, 0.0  ;;  %4192 = vmatmul.msk.f32.gmra.mxu0 %vm536_vm2, %v1709_v33  ;;  %v5182_v28 = vpop.f32.mrf.mxu2 }
 0x19b   : > { %v2034_v47 = vld [vmem:[#allocation3 + $0x10] ss:$2 sm:$0xff]  ;;  %v2066_v45 = vld [vmem:[#allocation3 + $0x11] ss:$2 sm:$0xff] }
 0x19c   : > { %v5167_v36 = vmax.f32 %v2034_v47, %v2066_v45  ;;  %2004 = vst.msk [vmem:[#allocation3 + $0x20] sm:$0xff] %vm1999_vm4, %v1971_v13  ;;  %v5179_v45 = vpop.f32.mrf.mxu1 }
 0x19e   : > { %6107 = vst [vmem:[#allocation20_spill] sm:$0xff] %v5167_v36 }
 0x19f   : > { %2117 = vst.msk [vmem:[#allocation2 + $0x9] sm:$0xff] %vm1999_vm4, %v5167_v36  ;;  %v1854_v24 = vpop.f32.mrf.mxu0 }
 0x1a0   : > { %v1940_v33 = vadd.f32 %v1854_v24, %v4906_v14  ;;  %v1711_v14 = vld [vmem:[#allocation2 + $0xc4] sm:$0xff] }
 0x1a2   : > { %v1972_v21 = vmax.f32 %v1940_v33, 0.0  ;;  %4193 = vmatmul.msk.f32.gmra.mxu0 %vm536_vm2, %v1710_v19  ;;  %v5188_v19 = vpop.f32.mrf.mxu3 }
 0x1a4   : > { %2005 = vst.msk [vmem:[#allocation3 + $0x28] sm:$0xff] %vm1999_vm4, %v1972_v21 }
 0x1a6   : > { %v2138_v13 = vld [vmem:[#allocation2 + $0x8] sm:$0xff] }
 0x1a7   : > { %v2294_v47 = vld [vmem:[#allocation2 + $0x9] sm:$0xff]  ;;  %4205 = vmatmul.msk.f32.gmra.mxu1 %vm1999_vm4, %v2138_v13  ;;  %v1857_v0 = vpop.f32.mrf.mxu0  ;;  %v831_v13 = vadd.f32 %v4856_v56, %v4902_v4 }
 0x1a8   : > { %v2447_v36 = vld [vmem:[#allocation2 + $0x2] sm:$0xff]  ;;  %4229 = vmatmul.msk.f32.gmra.mxu2 %vm1999_vm4, %v2294_v47  ;;  %v1941_v24 = vadd.f32 %v1857_v0, %v4915_v26  ;;  %v5196_v47 = vpop.f32.mrf.mxu1 }
 0x1a9   : > { %4252 = vmatmul.msk.f32.vlgmr.msra.gmra.mxu3 %vm1999_vm4, %v2447_v36  ;;  %6109 = vst [vmem:[#allocation22_spill] sm:$0xff] %v5196_v47  ;;  %v1712_v36 = vld [vmem:[#allocation2 + $0xcc] sm:$0xff]  ;;  %v1109_v0 = vadd.f32 %v5000_v38, %v831_v13  ;;  %v832_v47 = vadd.f32 %v4856_v56, %v4911_v17  ;;  %v1713_v13 = vld [vmem:[#allocation2 + $0xdc] sm:$0xff] }
 0x1aa   : > { %v1973_v33 = vmax.f32 %v1941_v24, 0.0  ;;  %4194 = vmatmul.msk.f32.gmra.mxu0 %vm536_vm2, %v1711_v14  ;;  %v5201_v24 = vpop.f32.mrf.mxu2 }
 0x1ab   : > { %v2036_v21 = vld [vmem:[#allocation3 + $0x20] ss:$2 sm:$0xff]  ;;  %v2068_v22 = vld [vmem:[#allocation3 + $0x21] ss:$2 sm:$0xff] }
 0x1ac   : > { %v5191_v12 = vmax.f32 %v2036_v21, %v2068_v22  ;;  %2006 = vst.msk [vmem:[#allocation3 + $0x30] sm:$0xff] %vm1999_vm4, %v1973_v33  ;;  %v1387_v22 = vadd.f32 %v5007_v42, %v1109_v0  ;;  %v5206_v33 = vpop.f32.mrf.mxu3 }
 0x1ae   : > { %6108 = vst [vmem:[#allocation21_spill] sm:$0xff] %v5191_v12  ;;  %v1665_v38 = vadd.f32 %v5014_v48, %v1387_v22 }
 0x1af   : > { %2118 = vst.msk [vmem:[#allocation2 + $0x11] sm:$0xff] %vm1999_vm4, %v5191_v12  ;;  %v1860_v26 = vpop.f32.mrf.mxu0 }
 0x1b0   : > { %v1942_v14 = vadd.f32 %v1860_v26, %v4940_v43  ;;  %v5214_v43 = vld [vmem:[#allocation2 + $0xf4] sm:$0xff]  ;;  %v1110_v26 = vadd.f32 %v5021_v55, %v832_v47 }
 0x1b1   : > { %2135 = vst.msk [vmem:[#allocation2 + $0xf9] sm:$0x1] %vm2111_vm3, %v6106_v31 }
 0x1b2   : > { %v1974_v21 = vmax.f32 %v1942_v14, 0.0  ;;  %4195 = vmatmul.msk.f32.gmra.mxu0 %vm536_vm2, %v1712_v36  ;;  %v5220_v36 = vpop.f32.mrf.mxu1  ;;  %v1388_v48 = vadd.f32 %v5023_v59, %v1110_v26  ;;  %v5223_v0 = vpop.f32.mrf.mxu2 }
 0x1b4   : > { %2007 = vst.msk [vmem:[#allocation3 + $0x38] sm:$0xff] %vm1999_vm4, %v1974_v21  ;;  %v833_v21 = vadd.f32 %v4856_v56, %v4920_v30  ;;  %v1666_v55 = vadd.f32 %v5026_v60, %v1388_v48  ;;  %v5232_v47 = vpop.f32.mrf.mxu3 }
 0x1b6   : > { %v2139_v4 = vld [vmem:[#allocation2 + $0x10] sm:$0xff] }
 0x1b7   : > { %v2295_v5 = vld [vmem:[#allocation2 + $0x11] sm:$0xff]  ;;  %4206 = vmatmul.msk.f32.gmra.mxu1 %vm1999_vm4, %v2139_v4  ;;  %v1863_v42 = vpop.f32.mrf.mxu0  ;;  %v1714_v4 = vld [vmem:[#allocation2 + $0xe4] sm:$0xff] }
 0x1b8   : > { %v2448_v12 = vld [vmem:[#allocation2 + $0xa] sm:$0xff]  ;;  %4230 = vmatmul.msk.f32.gmra.mxu2 %vm1999_vm4, %v2295_v5  ;;  %v1943_v17 = vadd.f32 %v1863_v42, %v1665_v38  ;;  %v1111_v38 = vadd.f32 %v5030_v2, %v833_v21 }
 0x1b9   : > { %4253 = vmatmul.msk.f32.gmra.mxu3 %vm1999_vm4, %v2448_v12  ;;  %v1715_v21 = vld [vmem:[#allocation2 + $0xec] sm:$0xff] }
 0x1ba   : > { %v1975_v14 = vmax.f32 %v1943_v17, 0.0  ;;  %4196 = vmatmul.msk.f32.gmra.mxu0 %vm536_vm2, %v1713_v13  ;;  %v1389_v13 = vadd.f32 %v5033_v3, %v1111_v38  ;;  %v5238_v26 = vpop.f32.mrf.mxu1  ;;  %v5241_v30 = vpop.f32.mrf.mxu2 }
 0x1bb   : > { %v2038_v5 = vld [vmem:[#allocation3 + $0x30] ss:$2 sm:$0xff]  ;;  %v2070_v22 = vld [vmem:[#allocation3 + $0x31] ss:$2 sm:$0xff] }
 0x1bc   : > { %v5226_v12 = vmax.f32 %v2038_v5, %v2070_v22  ;;  %2008 = vst.msk [vmem:[#allocation3 + $0x40] sm:$0xff] %vm1999_vm4, %v1975_v14  ;;  %v834_v5 = vadd.f32 %v4856_v56, %v4947_v50  ;;  %v1667_v2 = vadd.f32 %v5037_v7, %v1389_v13 }
 0x1be   : > { %2119 = vst.msk [vmem:[#allocation2 + $0x19] sm:$0xff] %vm1999_vm4, %v5226_v12 }
 0x1bf   : > { %v1866_v59 = vpop.f32.mrf.mxu0 }
 0x1c0   : > { %v1944_v42 = vadd.f32 %v1866_v59, %v1666_v55  ;;  %v1112_v55 = vadd.f32 %v5040_v9, %v834_v5  ;;  %v5253_v59 = vpop.f32.mrf.mxu3 }
 0x1c2   : > { %v1976_v17 = vmax.f32 %v1944_v42, 0.0  ;;  %4197 = vmatmul.msk.f32.gmra.mxu0 %vm536_vm2, %v1714_v4  ;;  %v1390_v50 = vadd.f32 %v5045_v11, %v1112_v55  ;;  %v5257_v13 = vpop.f32.mrf.mxu1  ;;  %v836_v55 = vadd.f32 %v4856_v56, %v4959_v63 }
 0x1c4   : > { %2009 = vst.msk [vmem:[#allocation3 + $0x48] sm:$0xff] %vm1999_vm4, %v1976_v17  ;;  %v1668_v9 = vadd.f32 %v5049_v15, %v1390_v50 }
 0x1c5   : > { %v2140_v60 = vld [vmem:[#allocation2 + $0x18] sm:$0xff] }
 0x1c6   : > { %v2296_v48 = vld [vmem:[#allocation2 + $0x19] sm:$0xff]  ;;  %4207 = vmatmul.msk.f32.gmra.mxu1 %vm1999_vm4, %v2140_v60  ;;  %v835_v60 = vadd.f32 %v4856_v56, %v4953_v58 }
 0x1c7   : > { %v2449_v14 = vld [vmem:[#allocation2 + $0x12] sm:$0xff]  ;;  %4231 = vmatmul.msk.f32.gmra.mxu2 %vm1999_vm4, %v2296_v48  ;;  %v2450_v3 = vld [vmem:[#allocation2 + $0x1a] sm:$0xff]  ;;  %v1869_v22 = vpop.f32.mrf.mxu0  ;;  %v5265_v48 = vpop.f32.mrf.mxu2 }
 0x1c8   : > { %4254 = vmatmul.msk.f32.gmra.mxu3 %vm1999_vm4, %v2449_v14  ;;  %2764 = vst.msk [vmem:[#allocation2 + $0x21] sm:$0x1] %vm2742_vm5, %v6106_v31  ;;  %v1945_v4 = vadd.f32 %v1869_v22, %v1667_v2  ;;  %v1113_v14 = vadd.f32 %v5058_v20, %v835_v60  ;;  %v5272_v22 = vpop.f32.mrf.mxu3 }
 0x1ca   : > { %v1977_v7 = vmax.f32 %v1945_v4, 0.0  ;;  %4198 = vmatmul.msk.f32.gmra.mxu0 %vm536_vm2, %v1715_v21  ;;  %v1391_v2 = vadd.f32 %v5062_v25, %v1113_v14  ;;  %v5280_v4 = vpop.f32.mrf.mxu1  ;;  %v1717_v25 = vld [vmem:[#allocation2 + $0xfc] sm:$0xff] }
 0x1cb   : > { %v2040_v38 = vld [vmem:[#allocation3 + $0x40] ss:$2 sm:$0xff]  ;;  %v2072_v42 = vld [vmem:[#allocation3 + $0x41] ss:$2 sm:$0xff] }
 0x1cc   : > { %v5259_v17 = vmax.f32 %v2040_v38, %v2072_v42  ;;  %2010 = vst.msk [vmem:[#allocation3 + $0x50] sm:$0xff] %vm1999_vm4, %v1977_v7 }
 0x1ce   : > { %2120 = vst.msk [vmem:[#allocation2 + $0x49] sm:$0xff] %vm1999_vm4, %v5259_v17 }
 0x1cf   : > { %v1872_v11 = vpop.f32.mrf.mxu0  ;;  %v5287_v50 = vpop.f32.mrf.mxu2 }
 0x1d0   : > { %4255 = vmatmul.msk.f32.gmra.mxu3 %vm1999_vm4, %v2450_v3  ;;  %v1946_v5 = vadd.f32 %v1872_v11, %v1668_v9  ;;  %v1669_v3 = vadd.f32 %v5065_v27, %v1391_v2  ;;  %v5291_v60 = vpop.f32.mrf.mxu3  ;;  %v837_v11 = vadd.f32 %v4856_v56, %v4965_v6 }
 0x1d2   : > { %v1978_v21 = vmax.f32 %v1946_v5, 0.0  ;;  %4199 = vmatmul.msk.f32.gmra.mxu0 %vm536_vm2, %v5214_v43  ;;  %v1114_v43 = vadd.f32 %v5069_v32, %v836_v55  ;;  %v1718_v5 = vld [vmem:[#allocation2 + $0x104] sm:$0xff]  ;;  %v1115_v2 = vadd.f32 %v5078_v41, %v837_v11 }
 0x1d4   : > { %2011 = vst.msk [vmem:[#allocation3 + $0x58] sm:$0xff] %vm1999_vm4, %v1978_v21  ;;  %v1392_v63 = vadd.f32 %v5071_v34, %v1114_v43  ;;  %v4322_v34 = vld [vmem:[%s6067_s5 + $0x50] sm:$0xff]  ;;  %v5305_v21 = vpop.f32.mrf.mxu1 }
 0x1d5   : > { %v2141_v58 = vld [vmem:[#allocation2 + $0x48] sm:$0xff]  ;;  %3169 = vmatpush.msra.mxu0 %v4322_v34 }
 0x1d6   : > { %v2297_v15 = vld [vmem:[#allocation2 + $0x49] sm:$0xff]  ;;  %4208 = vmatmul.msk.f32.gmra.mxu1 %vm1999_vm4, %v2141_v58  ;;  %2744 = vst.msk [vmem:[#allocation2 + $0x48] sm:$0x1] %vm2742_vm5, %v6106_v31  ;;  %v1670_v32 = vadd.f32 %v5074_v35, %v1392_v63 }
 0x1d7   : > { %4232 = vmatmul.msk.f32.gmra.mxu2 %vm1999_vm4, %v2297_v15  ;;  %v1875_v20 = vpop.f32.mrf.mxu0  ;;  %v1393_v15 = vadd.f32 %v5087_v54, %v1115_v2  ;;  %v5308_v6 = vpop.f32.mrf.mxu2 }
 0x1d8   : > { %v1947_v7 = vadd.f32 %v1875_v20, %v1669_v3  ;;  %v5315_v43 = vpop.f32.mrf.mxu3 }
 0x1d9   : > { %v1671_v41 = vadd.f32 %v5103_v39, %v1393_v15 }
 0x1da   : > { %v1979_v38 = vmax.f32 %v1947_v7, 0.0  ;;  %4200 = vmatmul.msk.f32.gmra.mxu0 %vm536_vm2, %v1717_v25  ;;  %v838_v25 = vadd.f32 %v4856_v56, %v4980_v16  ;;  %v1719_v7 = vld [vmem:[#allocation2 + $0x10c] sm:$0xff] }
 0x1db   : > { %v2042_v27 = vld [vmem:[#allocation3 + $0x50] ss:$2 sm:$0xff]  ;;  %v2074_v42 = vld [vmem:[#allocation3 + $0x51] ss:$2 sm:$0xff] }
 0x1dc   : > { %v5293_v9 = vmax.f32 %v2042_v27, %v2074_v42  ;;  %2012 = vst.msk [vmem:[#allocation3 + $0x60] sm:$0xff] %vm1999_vm4, %v1979_v38  ;;  %v1116_v63 = vadd.f32 %v5113_v1, %v838_v25  ;;  %v5322_v42 = vpop.f32.mrf.mxu1  ;;  %v5333_v1 = vld [vmem:[%s6097_s2] ss:$0 sm:$0xff]  ;;  %s4486_s2 = scalar_lea.hbm %s4485_s1, 64 }
 0x1dd   : > { %v840_v25 = vadd.f32 %v5333_v1, %v4992_v29  ;;  %p4487_p11 = scmp.ne.s32.totalorder %s4485_s1, %s4486_s2  ;;  %p4492_p1 = scmp.lt.s32.totalorder %s4490_s26, %s4486_s2 }
 0x1de   : > { %2121 = vst.msk [vmem:[#allocation2 + $0x51] sm:$0xff] %vm1999_vm4, %v5293_v9  ;;  %v1394_v27 = vadd.f32 %v5116_v8, %v1116_v63  ;;  %v839_v8 = vadd.f32 %v5333_v1, %v4986_v23 }
 0x1df   : > { %v1878_v14 = vpop.f32.mrf.mxu0  ;;  %v5325_v11 = vpop.f32.mrf.mxu2  ;;  %p4488_p12 = pnand %p4487_p11, %p4655_p5  ;;  %p4493_p2 = por %p4492_p1, %p4491_p0 }
 0x1e0   : > { %v1948_v58 = vadd.f32 %v1878_v14, %v1670_v32  ;;  %v1672_v34 = vadd.f32 %v5122_v46, %v1394_v27  ;;  %v1117_v2 = vadd.f32 %v5129_v62, %v839_v8 }
 0x1e1   : > { %p4489_p13 = pneg %p4488_p12 }
 0x1e2   : > { %v1980_v35 = vmax.f32 %v1948_v58, 0.0  ;;  %4201 = vmatmul.msk.f32.gmra.mxu0 %vm536_vm2, %v1718_v5  ;;  %v1720_v5 = vld [vmem:[#allocation2 + $0x114] sm:$0xff]  ;;  %v5341_v58 = vpop.f32.mrf.mxu3 }
 0x1e3   : > { %p4494_p3 = pnand %p4493_p2, %p4489_p13 }
 0x1e4   : > { %2013 = vst.msk [vmem:[#allocation3 + $0x68] sm:$0xff] %vm1999_vm4, %v1980_v35  ;;  %v1395_v35 = vadd.f32 %v5134_v18, %v1117_v2 }
 0x1e5   : > { %v2142_v55 = vld [vmem:[#allocation2 + $0x50] sm:$0xff] }
 0x1e6   : > { %v2298_v3 = vld [vmem:[#allocation2 + $0x51] sm:$0xff]  ;;  %4209 = vmatmul.msk.f32.gmra.mxu1 %vm1999_vm4, %v2142_v55  ;;  %v1673_v62 = vadd.f32 %v5141_v53, %v1395_v35 }
 0x1e7   : > { %v2451_v20 = vld [vmem:[#allocation2 + $0x4a] sm:$0xff]  ;;  %4233 = vmatmul.msk.f32.gmra.mxu2 %vm1999_vm4, %v2298_v3  ;;  %v1881_v54 = vpop.f32.mrf.mxu0  ;;  %v5345_v3 = vpop.f32.mrf.mxu1 }
 0x1e8   : > { %4256 = vmatmul.msk.f32.gmra.mxu3 %vm1999_vm4, %v2451_v20  ;;  %v1949_v38 = vadd.f32 %v1881_v54, %v1671_v41  ;;  %v5351_v41 = vpop.f32.mrf.mxu2  ;;  %v1118_v54 = vadd.f32 %v5148_v10, %v840_v25 }
 0x1ea   : > { %v1981_v56 = vmax.f32 %v1949_v38, 0.0  ;;  %4202 = vmatmul.msk.f32.gmra.mxu0 %vm536_vm2, %v1719_v7  ;;  %v1396_v63 = vadd.f32 %v5151_v57, %v1118_v54  ;;  %v5358_v38 = vpop.f32.mrf.mxu3 }
 0x1eb   : > { %v2044_v16 = vld [vmem:[#allocation3 + $0x60] ss:$2 sm:$0xff]  ;;  %v2076_v39 = vld [vmem:[#allocation3 + $0x61] ss:$2 sm:$0xff] }
 0x1ec   : > { %v5327_v32 = vmax.f32 %v2044_v16, %v2076_v39  ;;  %2014 = vst.msk [vmem:[#allocation3 + $0x70] sm:$0xff] %vm1999_vm4, %v1981_v56  ;;  %v841_v16 = vadd.f32 %v5333_v1, %v5005_v40  ;;  %v1674_v39 = vadd.f32 %v5155_v51, %v1396_v63  ;;  %v843_v63 = vadd.f32 %v5333_v1, %v5028_v61 }
 0x1ee   : > { %2122 = vst.msk [vmem:[#allocation2 + $0x59] sm:$0xff] %vm1999_vm4, %v5327_v32  ;;  %v1119_v57 = vadd.f32 %v5162_v44, %v841_v16 }
 0x1ef   : > { %v1884_v14 = vpop.f32.mrf.mxu0  ;;  %v5366_v8 = vpop.f32.mrf.mxu1 }
 0x1f0   : > { %v1950_v15 = vadd.f32 %v1884_v14, %v1672_v34  ;;  %v5371_v34 = vpop.f32.mrf.mxu2 }
 0x1f2   : > { %v1982_v55 = vmax.f32 %v1950_v15, 0.0  ;;  %4203 = vmatmul.msk.f32.gmra.mxu0 %vm536_vm2, %v1720_v5  ;;  %v1397_v5 = vadd.f32 %v5165_v37, %v1119_v57  ;;  %v5374_v15 = vpop.f32.mrf.mxu3 }
 0x1f4   : > { %2015 = vst.msk [vmem:[#allocation3 + $0x78] sm:$0xff] %vm1999_vm4, %v1982_v55  ;;  %v842_v55 = vadd.f32 %v5333_v1, %v5019_v52 }
 0x1f5   : > { %v2143_v23 = vld [vmem:[#allocation2 + $0x58] sm:$0xff] }
 0x1f6   : > { %v2299_v46 = vld [vmem:[#allocation2 + $0x59] sm:$0xff]  ;;  %4210 = vmatmul.msk.f32.gmra.mxu1 %vm1999_vm4, %v2143_v23  ;;  %v1675_v23 = vadd.f32 %v5175_v49, %v1397_v5 }
 0x1f7   : > { %v2452_v20 = vld [vmem:[#allocation2 + $0x52] sm:$0xff]  ;;  %4234 = vmatmul.msk.f32.gmra.mxu2 %vm1999_vm4, %v2299_v46  ;;  %v1887_v18 = vpop.f32.mrf.mxu0  ;;  %v1120_v46 = vadd.f32 %v5179_v45, %v842_v55 }
 0x1f8   : > { %4257 = vmatmul.msk.f32.gmra.mxu3 %vm1999_vm4, %v2452_v20  ;;  %v1951_v7 = vadd.f32 %v1887_v18, %v1673_v62  ;;  %v5386_v20 = vpop.f32.mrf.mxu1  ;;  %v5389_v62 = vpop.f32.mrf.mxu2 }
 0x1f9   : > { %v1398_v52 = vadd.f32 %v5182_v28, %v1120_v46  ;;  %v2807_v28 = vld [vmem:[%s6067_s5 + $0x18] sm:$0xff] }
 0x1fa   : > { %v1983_v27 = vmax.f32 %v1951_v7, 0.0  ;;  %v5397_v45 = vpop.f32.mrf.mxu3  ;;  %2868 = vmatpush.msrb.mxu2 %v2807_v28  ;;  %v2623_v28 = vld [vmem:[%s6069_s7 + $0x30] sm:$0xff] }
 0x1fb   : > { %v2046_v29 = vld [vmem:[#allocation3 + $0x70] ss:$2 sm:$0xff]  ;;  %v2078_v56 = vld [vmem:[#allocation3 + $0x71] ss:$2 sm:$0xff] }
 0x1fc   : > { %v5360_v53 = vmax.f32 %v2046_v29, %v2078_v56  ;;  %2016 = vst.msk [vmem:[#allocation3 + $0x80] sm:$0xff] %vm1999_vm4, %v1983_v27  ;;  %v1676_v27 = vadd.f32 %v5188_v19, %v1398_v52  ;;  %v2624_v29 = vld [vmem:[%s6069_s7 + $0x38] sm:$0xff]  ;;  %v6110_v19 = vld [vmem:[#allocation22_spill] sm:$0xff] }
 0x1fd   : > { %v4303_v56 = vld [vmem:[%s6067_s5 + $0x38] sm:$0xff]  ;;  %v1121_v16 = vadd.f32 %v6110_v19, %v843_v63  ;;  %2685 = vmatpush.msrb.mxu1 %v2624_v29 }
 0x1fe   : > { %2123 = vst.msk [vmem:[#allocation2 + $0x61] sm:$0xff] %vm1999_vm4, %v5360_v53  ;;  %3018 = vmatpush.msrb.mxu3 %v4303_v56 }
 0x1ff   : > { %v1890_v10 = vpop.f32.mrf.mxu0  ;;  %2686 = vmatpush.msrb.mxu1 %v2623_v28  ;;  %v6114_v28 = vld [vmem:[#allocation17_spill] sm:$0xff] }
 0x200   : > { %v1952_v14 = vadd.f32 %v1890_v10, %v1674_v39  ;;  %v1399_v10 = vadd.f32 %v5201_v24, %v1121_v16  ;;  %v5413_v57 = vpop.f32.mrf.mxu1  ;;  %v5415_v5 = vpop.f32.mrf.mxu2 }
 0x202   : > { %v1984_v2 = vmax.f32 %v1952_v14, 0.0  ;;  %v1677_v55 = vadd.f32 %v5206_v33, %v1399_v10 }
 0x204   : > { %2017 = vst.msk [vmem:[#allocation3 + $0x88] sm:$0xff] %vm1999_vm4, %v1984_v2 }
 0x205   : > { %v2144_v40 = vld [vmem:[#allocation2 + $0x60] sm:$0xff] }
 0x206   : > { %v2300_v51 = vld [vmem:[#allocation2 + $0x61] sm:$0xff]  ;;  %4211 = vmatmul.msk.f32.gmra.mxu1 %vm1999_vm4, %v2144_v40 }
 0x207   : > { %v2453_v35 = vld [vmem:[#allocation2 + $0x5a] sm:$0xff]  ;;  %4235 = vmatmul.msk.f32.gmra.mxu2 %vm1999_vm4, %v2300_v51  ;;  %v2454_v44 = vld [vmem:[#allocation2 + $0x62] sm:$0xff]  ;;  %v1893_v37 = vpop.f32.mrf.mxu0  ;;  %v6111_v51 = vld [vmem:[#allocation14_spill] sm:$0xff] }
 0x208   : > { %4258 = vmatmul.msk.f32.gmra.mxu3 %vm1999_vm4, %v2453_v35  ;;  %2765 = vst.msk [vmem:[#allocation2 + $0x69] sm:$0x1] %vm2742_vm5, %v6106_v31  ;;  %v1953_v25 = vadd.f32 %v1893_v37, %v1675_v23  ;;  %v844_v35 = vadd.f32 %v5333_v1, %v6111_v51  ;;  %v6113_v51 = vld [vmem:[#allocation16_spill] sm:$0xff] }
 0x20a   : > { %v1985_v49 = vmax.f32 %v1953_v25, 0.0  ;;  %v1122_v23 = vadd.f32 %v5220_v36, %v844_v35  ;;  %v5437_v36 = vpop.f32.mrf.mxu2 }
 0x20b   : > { %v2048_v18 = vld [vmem:[#allocation3 + $0x80] ss:$2 sm:$0xff]  ;;  %v2080_v54 = vld [vmem:[#allocation3 + $0x81] ss:$2 sm:$0xff] }
 0x20c   : > { %v5391_v7 = vmax.f32 %v2048_v18, %v2080_v54  ;;  %2018 = vst.msk [vmem:[#allocation3 + $0x90] sm:$0xff] %vm1999_vm4, %v1985_v49  ;;  %v1400_v46 = vadd.f32 %v5223_v0, %v1122_v23  ;;  %v5429_v18 = vpop.f32.mrf.mxu1  ;;  %v6112_v54 = vld [vmem:[#allocation15_spill] sm:$0xff]  ;;  %v4321_v0 = vld [vmem:[%s6067_s5 + $0x48] sm:$0xff] }
 0x20d   : > { %v845_v63 = vadd.f32 %v5333_v1, %v6112_v54  ;;  %3170 = vmatpush.msra.mxu0 %v4321_v0 }
 0x20e   : > { %2124 = vst.msk [vmem:[#allocation2 + $0x91] sm:$0xff] %vm1999_vm4, %v5391_v7 }
 0x20f   : > { %v1896_v61 = vpop.f32.mrf.mxu0  ;;  %v1123_v56 = vadd.f32 %v5238_v26, %v845_v63  ;;  %v846_v26 = vadd.f32 %v5333_v1, %v6113_v51 }
 0x210   : > { %4259 = vmatmul.msk.f32.gmra.mxu3 %vm1999_vm4, %v2454_v44  ;;  %v1954_v39 = vadd.f32 %v1896_v61, %v1676_v27  ;;  %v5426_v44 = vpop.f32.mrf.mxu3  ;;  %v1678_v27 = vadd.f32 %v5232_v47, %v1400_v46 }
 0x211   : > { %v1401_v47 = vadd.f32 %v5241_v30, %v1123_v56  ;;  %v1124_v23 = vadd.f32 %v5257_v13, %v846_v26 }
 0x212   : > { %v1986_v14 = vmax.f32 %v1954_v39, 0.0  ;;  %v5454_v39 = vld [vmem:[%s6066_s4] ss:$0 sm:$0xff] }
 0x213   : > { %v1679_v35 = vadd.f32 %v5253_v59, %v1401_v47  ;;  %v1402_v59 = vadd.f32 %v5265_v48, %v1124_v23  ;;  %v2806_v48 = vld [vmem:[%s6067_s5 + $0x10] sm:$0xff] }
 0x214   : > { %2019 = vst.msk [vmem:[#allocation3 + $0x98] sm:$0xff] %vm1999_vm4, %v1986_v14  ;;  %v2226_v10 = vpop.f32.mrf.mxu1  ;;  %v4302_v47 = vld [vmem:[%s6067_s5 + $0x30] sm:$0xff]  ;;  %2869 = vmatpush.msrb.mxu2 %v2806_v48 }
 0x215   : > { %v2145_v2 = vld [vmem:[#allocation2 + $0x90] sm:$0xff]  ;;  %v1680_v56 = vadd.f32 %v5272_v22, %v1402_v59  ;;  %3019 = vmatpush.msrb.mxu3 %v4302_v47 }
 0x216   : > { %v2301_v40 = vld [vmem:[#allocation2 + $0x91] sm:$0xff]  ;;  %4212 = vmatmul.msk.f32.gmra.mxu1 %vm1999_vm4, %v2145_v2  ;;  %2745 = vst.msk [vmem:[#allocation2 + $0x90] sm:$0x1] %vm2742_vm5, %v6106_v31 }
 0x217   : > { %4236 = vmatmul.msk.f32.gmra.mxu2 %vm1999_vm4, %v2301_v40  ;;  %v1899_v24 = vpop.f32.mrf.mxu0 }
 0x218   : > { %v1955_v37 = vadd.f32 %v1899_v24, %v1677_v55  ;;  %v5449_v19 = vpop.f32.mrf.mxu3  ;;  %v2277_v55 = vadd.f32 %v5454_v39, %v2226_v10 }
 0x21a   : > { %v1987_v25 = vmax.f32 %v1955_v37, 0.0 }
 0x21b   : > { %v2050_v52 = vld [vmem:[#allocation3 + $0x90] ss:$2 sm:$0xff]  ;;  %v2082_v49 = vld [vmem:[#allocation3 + $0x91] ss:$2 sm:$0xff]  ;;  %v2383_v30 = vpop.f32.mrf.mxu2 }
 0x21c   : > { %v5431_v33 = vmax.f32 %v2050_v52, %v2082_v49  ;;  %2020 = vst.msk [vmem:[#allocation3 + $0xa0] sm:$0xff] %vm1999_vm4, %v1987_v25  ;;  %v2431_v46 = vadd.f32 %v2383_v30, %v2277_v55  ;;  %v4320_v25 = vld [vmem:[%s6067_s5 + $0x40] sm:$0xff]  ;;  %v6115_v30 = vld [vmem:[#allocation18_spill] sm:$0xff] }
 0x21d   : > { %3171 = vmatpush.msra.mxu0 %v4320_v25  ;;  %v848_v55 = vadd.f32 %v5333_v1, %v6115_v30 }
 0x21e   : > { %2125 = vst.msk [vmem:[#allocation2 + $0x99] sm:$0xff] %vm1999_vm4, %v5431_v33 }
 0x21f   : > { %v1902_v29 = vpop.f32.mrf.mxu0 }
 0x220   : > { %v1956_v61 = vadd.f32 %v1902_v29, %v1678_v27  ;;  %v847_v29 = vadd.f32 %v5333_v1, %v6114_v28 }
 0x222   : > { %v1988_v16 = vmax.f32 %v1956_v61, 0.0  ;;  %v2622_v61 = vld [vmem:[%s6069_s7 + $0x28] sm:$0xff]  ;;  %v1125_v22 = vadd.f32 %v5280_v4, %v847_v29  ;;  %v6116_v29 = vld [vmem:[#allocation8_spill] sm:$0xff] }
 0x223   : > { %2687 = vmatpush.msrb.mxu1 %v2622_v61 }
 0x224   : > { %2021 = vst.msk [vmem:[#allocation3 + $0xa8] sm:$0xff] %vm1999_vm4, %v1988_v16 }
 0x225   : > { %v2146_v14 = vld [vmem:[#allocation2 + $0x98] sm:$0xff] }
 0x226   : > { %v2302_v2 = vld [vmem:[#allocation2 + $0x99] sm:$0xff]  ;;  %4213 = vmatmul.msk.f32.gmra.mxu1 %vm1999_vm4, %v2146_v14  ;;  %v1403_v14 = vadd.f32 %v5287_v50, %v1125_v22 }
 0x227   : > { %v2455_v40 = vld [vmem:[#allocation2 + $0x92] sm:$0xff]  ;;  %4237 = vmatmul.msk.f32.gmra.mxu2 %vm1999_vm4, %v2302_v2  ;;  %v1905_v24 = vpop.f32.mrf.mxu0 }
 0x228   : > { %4260 = vmatmul.msk.f32.gmra.mxu3 %vm1999_vm4, %v2455_v40  ;;  %v1957_v37 = vadd.f32 %v1905_v24, %v1679_v35  ;;  %v2229_v40 = vpop.f32.mrf.mxu1  ;;  %v1681_v24 = vadd.f32 %v5291_v60, %v1403_v14 }
 0x229   : > { %v2278_v50 = vadd.f32 %v5454_v39, %v2229_v40  ;;  %v6117_v40 = vld [vmem:[#allocation10_spill] sm:$0xff] }
 0x22a   : > { %v1989_v52 = vmax.f32 %v1957_v37, 0.0 }
 0x22b   : > { %v2052_v54 = vld [vmem:[#allocation3 + $0xa0] ss:$2 sm:$0xff]  ;;  %v2084_v63 = vld [vmem:[#allocation3 + $0xa1] ss:$2 sm:$0xff]  ;;  %v2386_v23 = vpop.f32.mrf.mxu2 }
 0x22c   : > { %v2537_v49 = vpop.f32.mrf.mxu3  ;;  %v5469_v0 = vmax.f32 %v2052_v54, %v2084_v63  ;;  %2022 = vst.msk [vmem:[#allocation3 + $0xb0] sm:$0xff] %vm1999_vm4, %v1989_v52  ;;  %v2432_v59 = vadd.f32 %v2386_v23, %v2278_v50 }
 0x22d   : > { %v2585_v27 = vadd.f32 %v2537_v49, %v2431_v46  ;;  %v1126_v46 = vadd.f32 %v5305_v21, %v848_v55  ;;  %v2621_v21 = vld [vmem:[%s6069_s7 + $0x20] sm:$0xff] }
 0x22e   : > { %2126 = vst.msk [vmem:[#allocation2 + $0xa1] sm:$0xff] %vm1999_vm4, %v5469_v0  ;;  %2688 = vmatpush.msrb.mxu1 %v2621_v21 }
 0x22f   : > { %v2601_v13 = vmax.f32 %v2585_v27, 0.0  ;;  %v1908_v16 = vpop.f32.mrf.mxu0  ;;  %v1404_v60 = vadd.f32 %v5308_v6, %v1126_v46 }
 0x230   : > { %v1958_v10 = vadd.f32 %v1908_v16, %v1680_v56  ;;  %v849_v56 = vadd.f32 %v5333_v1, %v6116_v29  ;;  %v2620_v29 = vld [vmem:[%s6069_s7 + $0x18] sm:$0xff] }
 0x231   : > { %2748 = vst.msk [vmem:[#allocation2 + $0x1] sm:$0xff] %vm2747_vm6, %v2601_v13  ;;  %v1682_v48 = vadd.f32 %v5315_v43, %v1404_v60  ;;  %2689 = vmatpush.msrb.mxu1 %v2620_v29 }
 0x232   : > { %v1990_v2 = vmax.f32 %v1958_v10, 0.0  ;;  %v1127_v61 = vadd.f32 %v5322_v42, %v849_v56  ;;  %v4301_v56 = vld [vmem:[%s6067_s5 + $0x28] sm:$0xff] }
 0x233   : > { %3020 = vmatpush.msrb.mxu3 %v4301_v56 }
 0x234   : > { %2023 = vst.msk [vmem:[#allocation3 + $0xb8] sm:$0xff] %vm1999_vm4, %v1990_v2  ;;  %v1405_v16 = vadd.f32 %v5325_v11, %v1127_v61  ;;  %v2232_v10 = vpop.f32.mrf.mxu1 }
 0x235   : > { %v2147_v51 = vld [vmem:[#allocation2 + $0xa0] sm:$0xff]  ;;  %v2279_v11 = vadd.f32 %v5454_v39, %v2232_v10 }
 0x236   : > { %v2303_v26 = vld [vmem:[#allocation2 + $0xa1] sm:$0xff]  ;;  %4214 = vmatmul.msk.f32.gmra.mxu1 %vm1999_vm4, %v2147_v51  ;;  %v850_v51 = vadd.f32 %v5333_v1, %v6117_v40 }
 0x237   : > { %v2456_v35 = vld [vmem:[#allocation2 + $0x9a] sm:$0xff]  ;;  %4238 = vmatmul.msk.f32.gmra.mxu2 %vm1999_vm4, %v2303_v26  ;;  %v1911_v37 = vpop.f32.mrf.mxu0  ;;  %v1683_v26 = vadd.f32 %v5341_v58, %v1405_v16 }
 0x238   : > { %v5495_v4 = vld [vmem:[#allocation2] sm:$0xff]  ;;  %4261 = vmatmul.msk.f32.gmra.mxu3 %vm1999_vm4, %v2456_v35  ;;  %v1959_v25 = vadd.f32 %v1911_v37, %v1681_v24  ;;  %v1128_v24 = vadd.f32 %v5345_v3, %v850_v51 }
 0x239   : > { %3293 = vst.msk [vmem:[#allocation2] sm:$0x1] %vm2742_vm5, %v6106_v31  ;;  %v6119_v40 = vld [vmem:[#allocation12_spill] sm:$0xff] }
 0x23a   : > { %v1991_v52 = vmax.f32 %v1959_v25, 0.0  ;;  %v1406_v50 = vadd.f32 %v5351_v41, %v1128_v24  ;;  %v852_v51 = vadd.f32 %v5333_v1, %v6119_v40 }
 0x23b   : > { %v2054_v54 = vld [vmem:[#allocation3 + $0xb0] ss:$2 sm:$0xff]  ;;  %v2086_v63 = vld [vmem:[#allocation3 + $0xb1] ss:$2 sm:$0xff]  ;;  %v2389_v35 = vpop.f32.mrf.mxu2 }
 0x23c   : > { %v2540_v49 = vpop.f32.mrf.mxu3  ;;  %v5503_v13 = vmax.f32 %v2054_v54, %v2086_v63  ;;  %2024 = vst.msk [vmem:[#allocation3 + $0xc0] sm:$0xff] %vm1999_vm4, %v1991_v52  ;;  %v2433_v23 = vadd.f32 %v2389_v35, %v2279_v11  ;;  %v6118_v63 = vld [vmem:[#allocation9_spill] sm:$0xff]  ;;  %v1684_v3 = vadd.f32 %v5358_v38, %v1406_v50  ;;  %v6120_v50 = vld [vmem:[#allocation11_spill] sm:$0xff] }
 0x23d   : > { %v2586_v27 = vadd.f32 %v2540_v49, %v2432_v59 }
 0x23e   : > { %2127 = vst.msk [vmem:[#allocation2 + $0xa9] sm:$0xff] %vm1999_vm4, %v5503_v13 }
 0x23f   : > { %v2602_v28 = vmax.f32 %v2586_v27, 0.0  ;;  %v1914_v6 = vpop.f32.mrf.mxu0  ;;  %v851_v27 = vadd.f32 %v5333_v1, %v6118_v63 }
 0x240   : > { %v1960_v47 = vadd.f32 %v1914_v6, %v1682_v48 }
 0x241   : > { %2749 = vst.msk [vmem:[#allocation2 + $0x9] sm:$0xff] %vm2747_vm6, %v2602_v28  ;;  %v2805_v28 = vld [vmem:[%s6067_s5 + $0x8] sm:$0xff]  ;;  %v1129_v21 = vadd.f32 %v5366_v8, %v851_v27 }
 0x242   : > { %v1992_v22 = vmax.f32 %v1960_v47, 0.0  ;;  %2870 = vmatpush.msrb.mxu2 %v2805_v28 }
 0x243   : > { %v2235_v49 = vpop.f32.mrf.mxu1  ;;  %v1407_v47 = vadd.f32 %v5371_v34, %v1129_v21 }
 0x244   : > { %2025 = vst.msk [vmem:[#allocation3 + $0xc8] sm:$0xff] %vm1999_vm4, %v1992_v22  ;;  %v2280_v48 = vadd.f32 %v5454_v39, %v2235_v49 }
 0x245   : > { %v2148_v43 = vld [vmem:[#allocation2 + $0xa8] sm:$0xff] }
 0x246   : > { %v2304_v14 = vld [vmem:[#allocation2 + $0xa9] sm:$0xff]  ;;  %4215 = vmatmul.msk.f32.gmra.mxu1 %vm1999_vm4, %v2148_v43 }
 0x247   : > { %v2457_v2 = vld [vmem:[#allocation2 + $0xa2] sm:$0xff]  ;;  %4239 = vmatmul.msk.f32.gmra.mxu2 %vm1999_vm4, %v2304_v14  ;;  %v2458_v30 = vld [vmem:[#allocation2 + $0xaa] sm:$0xff]  ;;  %v1917_v55 = vpop.f32.mrf.mxu0 }
 0x248   : > { %v3087_v42 = vld [vmem:[#allocation2 + $0x2] sm:$0xff]  ;;  %4262 = vmatmul.msk.f32.gmra.mxu3 %vm1999_vm4, %v2457_v2  ;;  %2766 = vst.msk [vmem:[#allocation2 + $0xb1] sm:$0x1] %vm2742_vm5, %v6106_v31  ;;  %v1961_v58 = vadd.f32 %v1917_v55, %v1683_v26  ;;  %v1685_v26 = vadd.f32 %v5374_v15, %v1407_v47 }
 0x249   : > { %4324 = vmatmul.msk.f32.vlgmr.msra.gmra.mxu0 %vm2747_vm6, %v3087_v42 }
 0x24a   : > { %v1993_v37 = vmax.f32 %v1961_v58, 0.0  ;;  %v2392_v41 = vpop.f32.mrf.mxu2 }
 0x24b   : > { %v2543_v46 = vpop.f32.mrf.mxu3  ;;  %v2056_v25 = vld [vmem:[#allocation3 + $0xc0] ss:$2 sm:$0xff]  ;;  %v2088_v59 = vld [vmem:[#allocation3 + $0xc1] ss:$2 sm:$0xff]  ;;  %v2434_v61 = vadd.f32 %v2392_v41, %v2280_v48 }
 0x24c   : > { %v2587_v60 = vadd.f32 %v2543_v46, %v2433_v23  ;;  %v5530_v52 = vmax.f32 %v2056_v25, %v2088_v59  ;;  %2026 = vst.msk [vmem:[#allocation3 + $0xd0] sm:$0xff] %vm1999_vm4, %v1993_v37  ;;  %v853_v37 = vadd.f32 %v5333_v1, %v6120_v50  ;;  %v6121_v41 = vld [vmem:[#allocation13_spill] sm:$0xff] }
 0x24d   : > { %v854_v28 = vadd.f32 %v5333_v1, %v6121_v41  ;;  %v2618_v1 = vld [vmem:[%s6069_s7 + $0x8] sm:$0xff] }
 0x24e   : > { %v2603_v54 = vmax.f32 %v2587_v60, 0.0  ;;  %2128 = vst.msk [vmem:[#allocation2 + $0xd9] sm:$0xff] %vm1999_vm4, %v5530_v52  ;;  %v1131_v59 = vadd.f32 %v5413_v57, %v853_v37 }
 0x24f   : > { %v1920_v38 = vpop.f32.mrf.mxu0  ;;  %v1132_v21 = vadd.f32 %v5429_v18, %v854_v28 }
 0x250   : > { %2750 = vst.msk [vmem:[#allocation2 + $0x11] sm:$0xff] %vm2747_vm6, %v2603_v54  ;;  %4263 = vmatmul.msk.f32.gmra.mxu3 %vm1999_vm4, %v2458_v30  ;;  %v1962_v6 = vadd.f32 %v1920_v38, %v1684_v3  ;;  %v1130_v30 = vadd.f32 %v5386_v20, %v852_v51  ;;  %v1409_v49 = vadd.f32 %v5415_v5, %v1131_v59  ;;  %v2804_v38 = vld [vmem:[%s6067_s5] sm:$0xff] }
 0x251   : > { %2871 = vmatpush.msrb.mxu2 %v2804_v38  ;;  %v1410_v47 = vadd.f32 %v5437_v36, %v1132_v21  ;;  %v2617_v36 = vld [vmem:[%s6069_s7] sm:$0xff] }
 0x252   : > { %v1994_v16 = vmax.f32 %v1962_v6, 0.0  ;;  %v1408_v11 = vadd.f32 %v5389_v62, %v1130_v30  ;;  %v2619_v62 = vld [vmem:[%s6069_s7 + $0x10] sm:$0xff]  ;;  %v1687_v29 = vadd.f32 %v5426_v44, %v1409_v49  ;;  %v4300_v44 = vld [vmem:[%s6067_s5 + $0x20] sm:$0xff] }
 0x253   : > { %v2546_v22 = vpop.f32.mrf.mxu3  ;;  %2690 = vmatpush.msrb.mxu1 %v2619_v62  ;;  %v2238_v63 = vpop.f32.mrf.mxu1  ;;  %3021 = vmatpush.msrb.mxu3 %v4300_v44  ;;  %v1688_v51 = vadd.f32 %v5449_v19, %v1410_v47  ;;  %v6123_v47 = vld [vmem:[#allocation20_spill] sm:$0xff] }
 0x254   : > { %v2588_v10 = vadd.f32 %v2546_v22, %v2434_v61  ;;  %2027 = vst.msk [vmem:[#allocation3 + $0xd8] sm:$0xff] %vm1999_vm4, %v1994_v16  ;;  %v1686_v46 = vadd.f32 %v5397_v45, %v1408_v11  ;;  %v2281_v5 = vadd.f32 %v5454_v39, %v2238_v63 }
 0x255   : > { %v2149_v14 = vld [vmem:[#allocation2 + $0xd8] sm:$0xff]  ;;  %2691 = vmatpush.msrb.mxu1 %v2618_v1 }
 0x256   : > { %v2604_v43 = vmax.f32 %v2588_v10, 0.0  ;;  %v2305_v2 = vld [vmem:[#allocation2 + $0xd9] sm:$0xff]  ;;  %4216 = vmatmul.msk.f32.gmra.mxu1 %vm1999_vm4, %v2149_v14  ;;  %2746 = vst.msk [vmem:[#allocation2 + $0xd8] sm:$0x1] %vm2742_vm5, %v6106_v31 }
 0x257   : > { %4240 = vmatmul.msk.f32.gmra.mxu2 %vm1999_vm4, %v2305_v2  ;;  %v3088_v8 = vld [vmem:[#allocation2 + $0xa] sm:$0xff]  ;;  %v1923_v34 = vpop.f32.mrf.mxu0  ;;  %2692 = vmatpush.msrb.mxu1 %v2617_v36 }
 0x258   : > { %2751 = vst.msk [vmem:[#allocation2 + $0x19] sm:$0xff] %vm2747_vm6, %v2604_v43  ;;  %4325 = vmatmul.msk.f32.gmra.mxu0 %vm2747_vm6, %v3088_v8  ;;  %v5562_v35 = vld [vmem:[#allocation2 + $0x10] sm:$0xff]  ;;  %v1963_v15 = vadd.f32 %v1923_v34, %v1685_v26 }
 0x259   : > { %v5564_v42 = vld [vmem:[#allocation2 + $0x11] sm:$0xff] }
 0x25a   : > { %3305 = vst.msk [vmem:[#allocation2 + $0x11] sm:$0x1] %vm2742_vm5, %v6106_v31  ;;  %v1995_v55 = vmax.f32 %v1963_v15, 0.0  ;;  %v2395_v56 = vpop.f32.mrf.mxu2 }
 0x25b   : > { %v2058_v24 = vld [vmem:[#allocation3 + $0xd0] ss:$2 sm:$0xff]  ;;  %v2090_v58 = vld [vmem:[#allocation3 + $0xd1] ss:$2 sm:$0xff]  ;;  %v2435_v61 = vadd.f32 %v2395_v56, %v2281_v5 }
 0x25c   : > { %v5570_v23 = vmax.f32 %v2058_v24, %v2090_v58  ;;  %2028 = vst.msk [vmem:[#allocation3 + $0xe0] sm:$0xff] %vm1999_vm4, %v1995_v55 }
 0x25e   : > { %2129 = vst.msk [vmem:[#allocation2 + $0xe1] sm:$0xff] %vm1999_vm4, %v5570_v23 }
 0x25f   : > { %v3089_v20 = vld [vmem:[#allocation2 + $0x12] sm:$0xff]  ;;  %v1926_v25 = vpop.f32.mrf.mxu0  ;;  %v3090_v57 = vld [vmem:[#allocation2 + $0x1a] sm:$0xff] }
 0x260   : > { %4326 = vmatmul.msk.f32.gmra.mxu0 %vm2747_vm6, %v3089_v20  ;;  %v1964_v60 = vadd.f32 %v1926_v25, %v1686_v46 }
 0x262   : > { %v1996_v54 = vmax.f32 %v1964_v60, 0.0 }
 0x263   : > { %v2241_v34 = vpop.f32.mrf.mxu1 }
 0x264   : > { %2029 = vst.msk [vmem:[#allocation3 + $0xe8] sm:$0xff] %vm1999_vm4, %v1996_v54  ;;  %v2282_v24 = vadd.f32 %v5454_v39, %v2241_v34 }
 0x265   : > { %v2150_v45 = vld [vmem:[#allocation2 + $0xe0] sm:$0xff] }
 0x266   : > { %v2306_v27 = vld [vmem:[#allocation2 + $0xe1] sm:$0xff]  ;;  %4217 = vmatmul.msk.f32.gmra.mxu1 %vm1999_vm4, %v2150_v45 }
 0x267   : > { %v2459_v3 = vld [vmem:[#allocation2 + $0xda] sm:$0xff]  ;;  %4241 = vmatmul.msk.f32.gmra.mxu2 %vm1999_vm4, %v2306_v27  ;;  %v1929_v48 = vpop.f32.mrf.mxu0 }
 0x268   : > { %4264 = vmatmul.msk.f32.gmra.mxu3 %vm1999_vm4, %v2459_v3  ;;  %4327 = vmatmul.msk.f32.gmra.mxu0 %vm2747_vm6, %v3090_v57  ;;  %v1965_v6 = vadd.f32 %v1929_v48, %v1687_v29  ;;  %v6122_v48 = vld [vmem:[#allocation19_spill] sm:$0xff] }
 0x26a   : > { %v1997_v16 = vmax.f32 %v1965_v6, 0.0  ;;  %v2398_v19 = vpop.f32.mrf.mxu2 }
 0x26b   : > { %v2549_v22 = vpop.f32.mrf.mxu3  ;;  %v2060_v10 = vld [vmem:[#allocation3 + $0xe0] ss:$2 sm:$0xff]  ;;  %v2092_v43 = vld [vmem:[#allocation3 + $0xe1] ss:$2 sm:$0xff]  ;;  %v2436_v58 = vadd.f32 %v2398_v19, %v2282_v24 }
 0x26c   : > { %v2589_v14 = vadd.f32 %v2549_v22, %v2435_v61  ;;  %v5604_v2 = vmax.f32 %v2060_v10, %v2092_v43  ;;  %2030 = vst.msk [vmem:[#allocation3 + $0xf0] sm:$0xff] %vm1999_vm4, %v1997_v16  ;;  %v2789_v61 = vld [vmem:[#allocation2 + $0x8] sm:$0xff] }
 0x26d   : > { %v2937_v16 = vld [vmem:[#allocation2 + $0x1] sm:$0xff] }
 0x26e   : > { %v2605_v40 = vmax.f32 %v2589_v14, 0.0  ;;  %2130 = vst.msk [vmem:[#allocation2 + $0xe9] sm:$0xff] %vm1999_vm4, %v5604_v2  ;;  %v6124_v43 = vld [vmem:[#allocation21_spill] sm:$0xff] }
 0x26f   : > { %v1932_v18 = vpop.f32.mrf.mxu0  ;;  %v2938_v14 = vld [vmem:[#allocation2 + $0x9] sm:$0xff] }
 0x270   : > { %2752 = vst.msk [vmem:[#allocation2 + $0x49] sm:$0xff] %vm2747_vm6, %v2605_v40  ;;  %v1966_v26 = vadd.f32 %v1932_v18, %v1688_v51  ;;  %v2791_v18 = vld [vmem:[#allocation2 + $0x18] sm:$0xff] }
 0x272   : > { %v1998_v8 = vmax.f32 %v1966_v26, 0.0 }
 0x273   : > { %v2244_v59 = vpop.f32.mrf.mxu1 }
 0x274   : > { %2031 = vst.msk [vmem:[#allocation3 + $0xf8] sm:$0xff] %vm1999_vm4, %v1998_v8  ;;  %v2283_v3 = vadd.f32 %v5454_v39, %v2244_v59 }
 0x275   : > { %v2151_v30 = vld [vmem:[#allocation2 + $0xe8] sm:$0xff] }
 0x276   : > { %v2307_v15 = vld [vmem:[#allocation2 + $0xe9] sm:$0xff]  ;;  %4218 = vmatmul.msk.f32.gmra.mxu1 %vm1999_vm4, %v2151_v30 }
 0x277   : > { %v2460_v11 = vld [vmem:[#allocation2 + $0xe2] sm:$0xff]  ;;  %4242 = vmatmul.msk.f32.gmra.mxu2 %vm1999_vm4, %v2307_v15 }
 0x278   : > { %v5617_v55 = vld [vmem:[#allocation2 + $0x48] sm:$0xff]  ;;  %4265 = vmatmul.msk.f32.gmra.mxu3 %vm1999_vm4, %v2460_v11 }
 0x279   : > { %3294 = vst.msk [vmem:[#allocation2 + $0x48] sm:$0x1] %vm2742_vm5, %v6106_v31  ;;  %v2941_v24 = vld [vmem:[#allocation2 + $0x49] sm:$0xff] }
 0x27a   : > { %v2401_v63 = vpop.f32.mrf.mxu2 }
 0x27b   : > { %v2552_v50 = vpop.f32.mrf.mxu3  ;;  %v2062_v37 = vld [vmem:[#allocation3 + $0xf0] ss:$2 sm:$0xff]  ;;  %v2094_v46 = vld [vmem:[#allocation3 + $0xf1] ss:$2 sm:$0xff]  ;;  %v2437_v41 = vadd.f32 %v2401_v63, %v2283_v3 }
 0x27c   : > { %v2590_v20 = vadd.f32 %v2552_v50, %v2436_v58  ;;  %v5623_v62 = vmax.f32 %v2062_v37, %v2094_v46 }
 0x27e   : > { %v2606_v25 = vmax.f32 %v2590_v20, 0.0  ;;  %2131 = vst.msk [vmem:[#allocation2 + $0xf1] sm:$0xff] %vm1999_vm4, %v5623_v62 }
 0x280   : > { %2753 = vst.msk [vmem:[#allocation2 + $0x51] sm:$0xff] %vm2747_vm6, %v2606_v25 }
 0x283   : > { %v2247_v56 = vpop.f32.mrf.mxu1 }
 0x284   : > { %v2284_v38 = vadd.f32 %v5454_v39, %v2247_v56 }
 0x285   : > { %v2152_v60 = vld [vmem:[#allocation2 + $0xf0] sm:$0xff] }
 0x286   : > { %v2308_v49 = vld [vmem:[#allocation2 + $0xf1] sm:$0xff]  ;;  %4219 = vmatmul.msk.f32.gmra.mxu1 %vm1999_vm4, %v2152_v60 }
 0x287   : > { %v2461_v54 = vld [vmem:[#allocation2 + $0xea] sm:$0xff]  ;;  %4243 = vmatmul.msk.f32.gmra.mxu2 %vm1999_vm4, %v2308_v49  ;;  %v2462_v27 = vld [vmem:[#allocation2 + $0xf2] sm:$0xff] }
 0x288   : > { %v3091_v45 = vld [vmem:[#allocation2 + $0x4a] sm:$0xff]  ;;  %4266 = vmatmul.msk.f32.gmra.mxu3 %vm1999_vm4, %v2461_v54  ;;  %2767 = vst.msk [vmem:[#allocation2 + $0xf9] sm:$0x1] %vm2742_vm5, %v6106_v31 }
 0x289   : > { %4328 = vmatmul.msk.f32.gmra.mxu0 %vm2747_vm6, %v3091_v45  ;;  %v2793_v19 = vld [vmem:[#allocation2 + $0x50] sm:$0xff] }
 0x28a   : > { %v2404_v5 = vpop.f32.mrf.mxu2 }
 0x28b   : > { %v2555_v28 = vpop.f32.mrf.mxu3  ;;  %v2438_v1 = vadd.f32 %v2404_v5, %v2284_v38 }
 0x28c   : > { %v2591_v29 = vadd.f32 %v2555_v28, %v2437_v41 }
 0x28e   : > { %v2607_v57 = vmax.f32 %v2591_v29, 0.0  ;;  %4268 = vmatmul.msk.f32.vlgmr.msrb.gmra.mxu1 %vm1999_vm4, %v6122_v48 }
 0x28f   : > { %4284 = vmatmul.msk.f32.vlgmr.msrb.gmra.mxu2 %vm2747_vm6, %v5495_v4 }
 0x290   : > { %2754 = vst.msk [vmem:[#allocation2 + $0x59] sm:$0xff] %vm2747_vm6, %v2607_v57  ;;  %4267 = vmatmul.msk.f32.gmra.mxu3 %vm1999_vm4, %v2462_v27 }
 0x293   : > { %v2558_v44 = vpop.f32.mrf.mxu3  ;;  %v2250_v51 = vpop.f32.mrf.mxu1 }
 0x294   : > { %v2592_v21 = vadd.f32 %v2558_v44, %v2438_v1  ;;  %v2285_v8 = vadd.f32 %v5454_v39, %v2250_v51 }
 0x296   : > { %v2608_v6 = vmax.f32 %v2592_v21, 0.0  ;;  %4269 = vmatmul.msk.f32.gmra.mxu1 %vm1999_vm4, %v6123_v47 }
 0x297   : > { %4285 = vmatmul.msk.f32.gmra.mxu2 %vm2747_vm6, %v2789_v61  ;;  %v3092_v22 = vld [vmem:[#allocation2 + $0x52] sm:$0xff] }
 0x298   : > { %2755 = vst.msk [vmem:[#allocation2 + $0x61] sm:$0xff] %vm2747_vm6, %v2608_v6  ;;  %4304 = vmatmul.msk.f32.vlgmr.msrb.gmra.mxu3 %vm2747_vm6, %v2937_v16  ;;  %4329 = vmatmul.msk.f32.gmra.mxu0 %vm2747_vm6, %v3092_v22  ;;  %v2794_v4 = vld [vmem:[#allocation2 + $0x58] sm:$0xff] }
 0x299   : > { %v2943_v10 = vld [vmem:[#allocation2 + $0x59] sm:$0xff] }
 0x29a   : > { %3306 = vst.msk [vmem:[#allocation2 + $0x59] sm:$0x1] %vm2742_vm5, %v6106_v31  ;;  %v2407_v36 = vpop.f32.mrf.mxu2 }
 0x29e   : > { %4270 = vmatmul.msk.f32.gmra.mxu1 %vm1999_vm4, %v6124_v43 }
 0x29f   : > { %4286 = vmatmul.msk.f32.gmra.mxu2 %vm2747_vm6, %v5562_v35  ;;  %v3093_v40 = vld [vmem:[#allocation2 + $0x5a] sm:$0xff]  ;;  %v3094_v26 = vld [vmem:[#allocation2 + $0x62] sm:$0xff]  ;;  %v2439_v35 = vadd.f32 %v2407_v36, %v2285_v8 }
 0x2a0   : > { %4305 = vmatmul.msk.f32.gmra.mxu3 %vm2747_vm6, %v2938_v14  ;;  %4330 = vmatmul.msk.f32.gmra.mxu0 %vm2747_vm6, %v3093_v40  ;;  %v2795_v25 = vld [vmem:[#allocation2 + $0x60] sm:$0xff]  ;;  %v4363_v14 = vld [vmem:[%s6071_s9 + $0x58] sm:$0xff] }
 0x2a1   : > { %3533 = vmatpush.msra.mxu3 %v4363_v14  ;;  %v3321_v40 = vld [vmem:[%s6071_s9 + $0x18] sm:$0xff] }
 0x2a2   : > { %3358 = vmatpush.msra.mxu1 %v3321_v40 }
 0x2a3   : > { %v2253_v11 = vpop.f32.mrf.mxu1 }
 0x2a6   : > { %4271 = vmatmul.msk.f32.gmra.mxu1 %vm1999_vm4, %v5226_v12  ;;  %v2940_v12 = vld [vmem:[#allocation2 + $0x19] sm:$0xff] }
 0x2a7   : > { %4287 = vmatmul.msk.f32.gmra.mxu2 %vm2747_vm6, %v2791_v18 }
 0x2a8   : > { %4306 = vmatmul.msk.f32.gmra.mxu3 %vm2747_vm6, %v5564_v42  ;;  %4331 = vmatmul.msk.f32.gmra.mxu0 %vm2747_vm6, %v3094_v26 }
 0x2aa   : > { %v2410_v42 = vpop.f32.mrf.mxu2 }
 0x2ab   : > { %v2561_v34 = vpop.f32.mrf.mxu3 }
 0x2ac   : > { %v2593_v30 = vadd.f32 %v2561_v34, %v2439_v35 }
 0x2ae   : > { %v2609_v15 = vmax.f32 %v2593_v30, 0.0  ;;  %4272 = vmatmul.msk.f32.gmra.mxu1 %vm1999_vm4, %v5259_v17  ;;  %v2286_v17 = vadd.f32 %v5454_v39, %v2253_v11 }
 0x2af   : > { %4288 = vmatmul.msk.f32.gmra.mxu2 %vm2747_vm6, %v5617_v55 }
 0x2b0   : > { %2756 = vst.msk [vmem:[#allocation2 + $0x91] sm:$0xff] %vm2747_vm6, %v2609_v15  ;;  %4307 = vmatmul.msk.f32.gmra.mxu3 %vm2747_vm6, %v2940_v12  ;;  %v2440_v55 = vadd.f32 %v2410_v42, %v2286_v17 }
 0x2b3   : > { %v2256_v20 = vpop.f32.mrf.mxu1 }
 0x2b4   : > { %v2287_v49 = vadd.f32 %v5454_v39, %v2256_v20 }
 0x2b6   : > { %4273 = vmatmul.msk.f32.gmra.mxu1 %vm1999_vm4, %v5293_v9  ;;  %v2942_v9 = vld [vmem:[#allocation2 + $0x51] sm:$0xff] }
 0x2b7   : > { %4289 = vmatmul.msk.f32.gmra.mxu2 %vm2747_vm6, %v2793_v19  ;;  %v2796_v58 = vld [vmem:[#allocation2 + $0x90] sm:$0xff] }
 0x2b8   : > { %4308 = vmatmul.msk.f32.gmra.mxu3 %vm2747_vm6, %v2941_v24  ;;  %3295 = vst.msk [vmem:[#allocation2 + $0x90] sm:$0x1] %vm2742_vm5, %v6106_v31 }
 0x2ba   : > { %v2413_v59 = vpop.f32.mrf.mxu2 }
 0x2bb   : > { %v2564_v50 = vpop.f32.mrf.mxu3 }
 0x2bc   : > { %v2594_v37 = vadd.f32 %v2564_v50, %v2440_v55 }
 0x2be   : > { %v2610_v46 = vmax.f32 %v2594_v37, 0.0  ;;  %4274 = vmatmul.msk.f32.gmra.mxu1 %vm1999_vm4, %v5327_v32  ;;  %v2441_v32 = vadd.f32 %v2413_v59, %v2287_v49 }
 0x2bf   : > { %4290 = vmatmul.msk.f32.gmra.mxu2 %vm2747_vm6, %v2794_v4 }
 0x2c0   : > { %2757 = vst.msk [vmem:[#allocation2 + $0x99] sm:$0xff] %vm2747_vm6, %v2610_v46  ;;  %4309 = vmatmul.msk.f32.gmra.mxu3 %vm2747_vm6, %v2942_v9 }
 0x2c3   : > { %v2259_v45 = vpop.f32.mrf.mxu1 }
 0x2c4   : > { %v2288_v41 = vadd.f32 %v5454_v39, %v2259_v45  ;;  %v3320_v45 = vld [vmem:[%s6071_s9 + $0x10] sm:$0xff] }
 0x2c5   : > { %3359 = vmatpush.msra.mxu1 %v3320_v45 }
 0x2c6   : > { %4275 = vmatmul.msk.f32.gmra.mxu1 %vm1999_vm4, %v5360_v53  ;;  %v2944_v53 = vld [vmem:[#allocation2 + $0x61] sm:$0xff]  ;;  %v3173_v9 = vpop.f32.mrf.mxu0 }
 0x2c7   : > { %4291 = vmatmul.msk.f32.gmra.mxu2 %vm2747_vm6, %v2795_v25  ;;  %v3095_v60 = vld [vmem:[#allocation2 + $0x92] sm:$0xff] }
 0x2c8   : > { %4310 = vmatmul.msk.f32.gmra.mxu3 %vm2747_vm6, %v2943_v10  ;;  %4332 = vmatmul.msk.f32.gmra.mxu0 %vm2747_vm6, %v3095_v60  ;;  %v2797_v5 = vld [vmem:[#allocation2 + $0x98] sm:$0xff]  ;;  %v5751_v60 = vld [vmem:[%s6068_s6] ss:$0 sm:$0xff] }
 0x2ca   : > { %v2416_v3 = vpop.f32.mrf.mxu2 }
 0x2cb   : > { %v2567_v54 = vpop.f32.mrf.mxu3  ;;  %v2442_v28 = vadd.f32 %v2416_v3, %v2288_v41 }
 0x2cc   : > { %v2595_v63 = vadd.f32 %v2567_v54, %v2441_v32  ;;  %v4350_v54 = vld [vmem:[%s6071_s9 + $0x30] sm:$0xff] }
 0x2ce   : > { %v2611_v27 = vmax.f32 %v2595_v63, 0.0  ;;  %4276 = vmatmul.msk.f32.gmra.mxu1 %vm1999_vm4, %v5391_v7  ;;  %v2945_v7 = vld [vmem:[#allocation2 + $0x91] sm:$0xff] }
 0x2cf   : > { %4292 = vmatmul.msk.f32.gmra.mxu2 %vm2747_vm6, %v2796_v58  ;;  %v4362_v63 = vld [vmem:[%s6071_s9 + $0x50] sm:$0xff] }
 0x2d0   : > { %2758 = vst.msk [vmem:[#allocation2 + $0xa1] sm:$0xff] %vm2747_vm6, %v2611_v27  ;;  %4311 = vmatmul.msk.f32.gmra.mxu3 %vm2747_vm6, %v2944_v53 }
 0x2d1   : > { %3534 = vmatpush.msra.mxu3 %v4362_v63 }
 0x2d3   : > { %v2570_v29 = vpop.f32.mrf.mxu3  ;;  %v2262_v21 = vpop.f32.mrf.mxu1 }
 0x2d4   : > { %v2596_v56 = vadd.f32 %v2570_v29, %v2442_v28  ;;  %v2289_v16 = vadd.f32 %v5454_v39, %v2262_v21  ;;  %v3318_v21 = vld [vmem:[%s6071_s9] sm:$0xff] }
 0x2d5   : > { %v3176_v29 = vpop.f32.mrf.mxu0 }
 0x2d6   : > { %v2612_v57 = vmax.f32 %v2596_v56, 0.0  ;;  %4277 = vmatmul.msk.f32.gmra.mxu1 %vm1999_vm4, %v5431_v33  ;;  %v2946_v33 = vld [vmem:[#allocation2 + $0x99] sm:$0xff] }
 0x2d7   : > { %4293 = vmatmul.msk.f32.gmra.mxu2 %vm2747_vm6, %v2797_v5  ;;  %v3096_v48 = vld [vmem:[#allocation2 + $0x9a] sm:$0xff] }
 0x2d8   : > { %2759 = vst.msk [vmem:[#allocation2 + $0xa9] sm:$0xff] %vm2747_vm6, %v2612_v57  ;;  %4312 = vmatmul.msk.f32.gmra.mxu3 %vm2747_vm6, %v2945_v7  ;;  %4333 = vmatmul.msk.f32.gmra.mxu0 %vm2747_vm6, %v3096_v48  ;;  %v2798_v38 = vld [vmem:[#allocation2 + $0xa0] sm:$0xff] }
 0x2d9   : > { %v2947_v1 = vld [vmem:[#allocation2 + $0xa1] sm:$0xff] }
 0x2da   : > { %3307 = vst.msk [vmem:[#allocation2 + $0xa1] sm:$0x1] %vm2742_vm5, %v6106_v31  ;;  %v2419_v61 = vpop.f32.mrf.mxu2 }
 0x2de   : > { %4278 = vmatmul.msk.f32.gmra.mxu1 %vm1999_vm4, %v5469_v0  ;;  %v2443_v0 = vadd.f32 %v2419_v61, %v2289_v16 }
 0x2df   : > { %4294 = vmatmul.msk.f32.gmra.mxu2 %vm2747_vm6, %v2798_v38  ;;  %v3097_v44 = vld [vmem:[#allocation2 + $0xa2] sm:$0xff]  ;;  %v3098_v47 = vld [vmem:[#allocation2 + $0xaa] sm:$0xff] }
 0x2e0   : > { %4313 = vmatmul.msk.f32.gmra.mxu3 %vm2747_vm6, %v2946_v33  ;;  %4334 = vmatmul.msk.f32.gmra.mxu0 %vm2747_vm6, %v3097_v44  ;;  %v2799_v6 = vld [vmem:[#allocation2 + $0xa8] sm:$0xff] }
 0x2e1   : > { %v2948_v43 = vld [vmem:[#allocation2 + $0xa9] sm:$0xff] }
 0x2e2   : > { %v4349_v33 = vld [vmem:[%s6071_s9 + $0x28] sm:$0xff] }
 0x2e6   : > { %4279 = vmatmul.msk.f32.gmra.mxu1 %vm1999_vm4, %v5503_v13  ;;  %v4351_v13 = vld [vmem:[%s6071_s9 + $0x38] sm:$0xff] }
 0x2e7   : > { %4295 = vmatmul.msk.f32.gmra.mxu2 %vm2747_vm6, %v2799_v6  ;;  %v4348_v6 = vld [vmem:[%s6071_s9 + $0x20] sm:$0xff] }
 0x2e8   : > { %4314 = vmatmul.msk.f32.gmra.mxu3 %vm2747_vm6, %v2947_v1  ;;  %4335 = vmatmul.msk.f32.gmra.mxu0 %vm2747_vm6, %v3098_v47  ;;  %v3319_v1 = vld [vmem:[%s6071_s9 + $0x8] sm:$0xff] }
 0x2e9   : > { %3447 = vmatpush.msra.mxu2 %v4351_v13  ;;  %3360 = vmatpush.msra.mxu1 %v3319_v1 }
 0x2ea   : > { %v2422_v51 = vpop.f32.mrf.mxu2 }
 0x2eb   : > { %v2573_v22 = vpop.f32.mrf.mxu3  ;;  %3448 = vmatpush.msra.mxu2 %v4350_v54  ;;  %3361 = vmatpush.msra.mxu1 %v3318_v21 }
 0x2ec   : > { %v2597_v4 = vadd.f32 %v2573_v22, %v2443_v0 }
 0x2ed   : > { %3449 = vmatpush.msra.mxu2 %v4349_v33 }
 0x2ee   : > { %v2613_v10 = vmax.f32 %v2597_v4, 0.0  ;;  %4280 = vmatmul.msk.f32.gmra.mxu1 %vm1999_vm4, %v5530_v52  ;;  %v2265_v52 = vpop.f32.mrf.mxu1 }
 0x2ef   : > { %v2290_v26 = vadd.f32 %v5454_v39, %v2265_v52  ;;  %3450 = vmatpush.msra.mxu2 %v4348_v6 }
 0x2f0   : > { %2760 = vst.msk [vmem:[#allocation2 + $0xd9] sm:$0xff] %vm2747_vm6, %v2613_v10  ;;  %4315 = vmatmul.msk.f32.gmra.mxu3 %vm2747_vm6, %v2948_v43  ;;  %v3179_v43 = vpop.f32.mrf.mxu0 }
 0x2f1   : > { %v2444_v8 = vadd.f32 %v2422_v51, %v2290_v26 }
 0x2f6   : > { %4281 = vmatmul.msk.f32.gmra.mxu1 %vm1999_vm4, %v5570_v23  ;;  %v2268_v34 = vpop.f32.mrf.mxu1 }
 0x2f7   : > { %v2800_v18 = vld [vmem:[#allocation2 + $0xd8] sm:$0xff]  ;;  %v2291_v24 = vadd.f32 %v5454_v39, %v2268_v34 }
 0x2f8   : > { %v2949_v36 = vld [vmem:[#allocation2 + $0xd9] sm:$0xff]  ;;  %4296 = vmatmul.msk.f32.gmra.mxu2 %vm2747_vm6, %v2800_v18  ;;  %3296 = vst.msk [vmem:[#allocation2 + $0xd8] sm:$0x1] %vm2742_vm5, %v6106_v31 }
 0x2f9   : > { %4316 = vmatmul.msk.f32.gmra.mxu3 %vm2747_vm6, %v2949_v36 }
 0x2fa   : > { %v2425_v23 = vpop.f32.mrf.mxu2 }
 0x2fb   : > { %v2576_v35 = vpop.f32.mrf.mxu3  ;;  %v2445_v58 = vadd.f32 %v2425_v23, %v2291_v24 }
 0x2fc   : > { %v2598_v30 = vadd.f32 %v2576_v35, %v2444_v8 }
 0x2fe   : > { %v2614_v15 = vmax.f32 %v2598_v30, 0.0  ;;  %4282 = vmatmul.msk.f32.gmra.mxu1 %vm1999_vm4, %v5604_v2 }
 0x300   : > { %2761 = vst.msk [vmem:[#allocation2 + $0xe1] sm:$0xff] %vm2747_vm6, %v2614_v15 }
 0x303   : > { %v2271_v12 = vpop.f32.mrf.mxu1 }
 0x304   : > { %v2292_v46 = vadd.f32 %v5454_v39, %v2271_v12  ;;  %v4361_v12 = vld [vmem:[%s6071_s9 + $0x48] sm:$0xff] }
 0x305   : > { %3535 = vmatpush.msra.mxu3 %v4361_v12 }
 0x306   : > { %4283 = vmatmul.msk.f32.gmra.mxu1 %vm1999_vm4, %v5623_v62  ;;  %v5746_v62 = vld [vmem:[%s6070_s8] ss:$0 sm:$0xff] }
 0x307   : > { %v2801_v11 = vld [vmem:[#allocation2 + $0xe0] sm:$0xff] }
 0x308   : > { %v2950_v19 = vld [vmem:[#allocation2 + $0xe1] sm:$0xff]  ;;  %4297 = vmatmul.msk.f32.gmra.mxu2 %vm2747_vm6, %v2801_v11  ;;  %v3182_v11 = vpop.f32.mrf.mxu0 }
 0x309   : > { %v3099_v42 = vld [vmem:[#allocation2 + $0xda] sm:$0xff]  ;;  %4317 = vmatmul.msk.f32.gmra.mxu3 %vm2747_vm6, %v2950_v19 }
 0x30a   : > { %4336 = vmatmul.msk.f32.gmra.mxu0 %vm2747_vm6, %v3099_v42  ;;  %v2428_v2 = vpop.f32.mrf.mxu2  ;;  %v4360_v42 = vld [vmem:[%s6071_s9 + $0x40] sm:$0xff] }
 0x30b   : > { %v2579_v17 = vpop.f32.mrf.mxu3  ;;  %v2694_v50 = vpop.f32.mrf.mxu1  ;;  %v2446_v20 = vadd.f32 %v2428_v2, %v2292_v46  ;;  %3536 = vmatpush.msra.mxu3 %v4360_v42 }
 0x30c   : > { %v2599_v55 = vadd.f32 %v2579_v17, %v2445_v58  ;;  %v2695_v49 = vadd.f32 %v5746_v62, %v2694_v50 }
 0x30e   : > { %v2615_v37 = vmax.f32 %v2599_v55, 0.0  ;;  %v2772_v28 = vadd.f32 %v5751_v60, %v2695_v49 }
 0x310   : > { %2762 = vst.msk [vmem:[#allocation2 + $0xe9] sm:$0xff] %vm2747_vm6, %v2615_v37 }
 0x312   : > { %v2873_v25 = vpop.f32.mrf.mxu2 }
 0x313   : > { %v2582_v59 = vpop.f32.mrf.mxu3  ;;  %v2697_v39 = vpop.f32.mrf.mxu1  ;;  %v2921_v56 = vadd.f32 %v2873_v25, %v2772_v28 }
 0x314   : > { %v2600_v32 = vadd.f32 %v2582_v59, %v2446_v20  ;;  %v2698_v7 = vadd.f32 %v5746_v62, %v2697_v39  ;;  %v3185_v59 = vpop.f32.mrf.mxu0 }
 0x316   : > { %v2616_v27 = vmax.f32 %v2600_v32, 0.0  ;;  %v2773_v0 = vadd.f32 %v5751_v60, %v2698_v7 }
 0x317   : > { %v2802_v3 = vld [vmem:[#allocation2 + $0xe8] sm:$0xff] }
 0x318   : > { %v2951_v53 = vld [vmem:[#allocation2 + $0xe9] sm:$0xff]  ;;  %2763 = vst.msk [vmem:[#allocation2 + $0xf1] sm:$0xff] %vm2747_vm6, %v2616_v27  ;;  %4298 = vmatmul.msk.f32.gmra.mxu2 %vm2747_vm6, %v2802_v3 }
 0x319   : > { %v3100_v41 = vld [vmem:[#allocation2 + $0xe2] sm:$0xff]  ;;  %4318 = vmatmul.msk.f32.gmra.mxu3 %vm2747_vm6, %v2951_v53 }
 0x31a   : > { %4337 = vmatmul.msk.f32.gmra.mxu0 %vm2747_vm6, %v3100_v41  ;;  %3308 = vst.msk [vmem:[#allocation2 + $0xe9] sm:$0x1] %vm2742_vm5, %v6106_v31  ;;  %v2876_v57 = vpop.f32.mrf.mxu2 }
 0x31b   : > { %v3023_v5 = vpop.f32.mrf.mxu3  ;;  %v2700_v38 = vpop.f32.mrf.mxu1  ;;  %v2922_v4 = vadd.f32 %v2876_v57, %v2773_v0 }
 0x31c   : > { %v3071_v48 = vadd.f32 %v3023_v5, %v2921_v56  ;;  %v2701_v14 = vadd.f32 %v5746_v62, %v2700_v38 }
 0x31e   : > { %v3221_v44 = vadd.f32 %v3173_v9, %v3071_v48  ;;  %v2774_v18 = vadd.f32 %v5751_v60, %v2701_v14 }
 0x31f   : > { %v2803_v61 = vld [vmem:[#allocation2 + $0xf0] sm:$0xff] }
 0x320   : > { %v2952_v47 = vld [vmem:[#allocation2 + $0xf1] sm:$0xff]  ;;  %v3237_v22 = vmax.f32 %v3221_v44, 0.0  ;;  %4299 = vmatmul.msk.f32.gmra.mxu2 %vm2747_vm6, %v2803_v61 }
 0x321   : > { %v3101_v16 = vld [vmem:[#allocation2 + $0xea] sm:$0xff]  ;;  %4319 = vmatmul.msk.f32.gmra.mxu3 %vm2747_vm6, %v2952_v47  ;;  %v3102_v26 = vld [vmem:[#allocation2 + $0xf2] sm:$0xff] }
 0x322   : > { %4338 = vmatmul.msk.f32.gmra.mxu0 %vm2747_vm6, %v3101_v16  ;;  %3253 = vst.msk [vmem:[#allocation3] sm:$0xff] %vm2747_vm6, %v3237_v22  ;;  %v2879_v10 = vpop.f32.mrf.mxu2 }
 0x323   : > { %v3026_v13 = vpop.f32.mrf.mxu3  ;;  %v2703_v52 = vpop.f32.mrf.mxu1  ;;  %v2923_v8 = vadd.f32 %v2879_v10, %v2774_v18 }
 0x324   : > { %v3072_v40 = vadd.f32 %v3026_v13, %v2922_v4  ;;  %v2704_v30 = vadd.f32 %v5746_v62, %v2703_v52 }
 0x326   : > { %v3222_v51 = vadd.f32 %v3176_v29, %v3072_v40  ;;  %v2775_v24 = vadd.f32 %v5751_v60, %v2704_v30  ;;  %v3188_v29 = vpop.f32.mrf.mxu0 }
 0x328   : > { %v3238_v36 = vmax.f32 %v3222_v51, 0.0 }
 0x32a   : > { %4339 = vmatmul.msk.f32.gmra.mxu0 %vm2747_vm6, %v3102_v26  ;;  %3254 = vst.msk [vmem:[#allocation3 + $0x8] sm:$0xff] %vm2747_vm6, %v3238_v36  ;;  %v2882_v35 = vpop.f32.mrf.mxu2 }
 0x32b   : > { %v3029_v34 = vpop.f32.mrf.mxu3  ;;  %v2706_v23 = vpop.f32.mrf.mxu1  ;;  %v2924_v50 = vadd.f32 %v2882_v35, %v2775_v24 }
 0x32c   : > { %v3073_v15 = vadd.f32 %v3029_v34, %v2923_v8  ;;  %v2707_v9 = vadd.f32 %v5746_v62, %v2706_v23 }
 0x32e   : > { %v3223_v19 = vadd.f32 %v3179_v43, %v3073_v15  ;;  %v2776_v32 = vadd.f32 %v5751_v60, %v2707_v9  ;;  %v3191_v16 = vpop.f32.mrf.mxu0 }
 0x330   : > { %v3239_v58 = vmax.f32 %v3223_v19, 0.0 }
 0x331   : > { %v3269_v2 = vld [vmem:[#allocation3] ss:$2 sm:$0xff]  ;;  %v3277_v17 = vld [vmem:[#allocation3 + $0x1] ss:$2 sm:$0xff] }
 0x332   : > { %v5800_v55 = vmax.f32 %v3269_v2, %v3277_v17  ;;  %3255 = vst.msk [vmem:[#allocation3 + $0x10] sm:$0xff] %vm2747_vm6, %v3239_v58  ;;  %v2885_v37 = vpop.f32.mrf.mxu2 }
 0x333   : > { %v3032_v46 = vpop.f32.mrf.mxu3  ;;  %v2709_v25 = vpop.f32.mrf.mxu1  ;;  %v2925_v54 = vadd.f32 %v2885_v37, %v2776_v32 }
 0x334   : > { %3297 = vst.msk [vmem:[#allocation2 + $0x1] sm:$0xff] %vm2747_vm6, %v5800_v55  ;;  %v3074_v20 = vadd.f32 %v3032_v46, %v2924_v50  ;;  %v2710_v53 = vadd.f32 %v5746_v62, %v2709_v25 }
 0x336   : > { %v3224_v49 = vadd.f32 %v3182_v11, %v3074_v20  ;;  %v2777_v57 = vadd.f32 %v5751_v60, %v2710_v53  ;;  %v3194_v34 = vpop.f32.mrf.mxu0 }
 0x338   : > { %v3240_v39 = vmax.f32 %v3224_v49, 0.0 }
 0x33a   : > { %3256 = vst.msk [vmem:[#allocation3 + $0x18] sm:$0xff] %vm2747_vm6, %v3240_v39  ;;  %v2888_v63 = vpop.f32.mrf.mxu2 }
 0x33b   : > { %v3035_v45 = vpop.f32.mrf.mxu3  ;;  %v3310_v27 = vld [vmem:[#allocation2] sm:$0xff]  ;;  %v2712_v28 = vpop.f32.mrf.mxu1  ;;  %v2926_v1 = vadd.f32 %v2888_v63, %v2777_v57 }
 0x33c   : > { %v3398_v3 = vld [vmem:[#allocation2 + $0x1] sm:$0xff]  ;;  %v3075_v41 = vadd.f32 %v3035_v45, %v2925_v54  ;;  %4340 = vmatmul.msk.f32.vlgmr.msra.gmra.mxu1 %vm2747_vm6, %v3310_v27  ;;  %3652 = vst.msk [vmem:[#allocation2] sm:$0x1] %vm3651_vm7, %v6106_v31  ;;  %v2713_v21 = vadd.f32 %v5746_v62, %v2712_v28 }
 0x33d   : > { %4352 = vmatmul.msk.f32.vlgmr.msra.gmra.mxu2 %vm2747_vm6, %v3398_v3 }
 0x33e   : > { %v3225_v56 = vadd.f32 %v3185_v59, %v3075_v41  ;;  %v2778_v0 = vadd.f32 %v5751_v60, %v2713_v21 }
 0x340   : > { %v3241_v5 = vmax.f32 %v3225_v56, 0.0 }
 0x341   : > { %v3270_v7 = vld [vmem:[#allocation3 + $0x10] ss:$2 sm:$0xff]  ;;  %v3278_v48 = vld [vmem:[#allocation3 + $0x11] ss:$2 sm:$0xff] }
 0x342   : > { %v5814_v38 = vmax.f32 %v3270_v7, %v3278_v48  ;;  %3257 = vst.msk [vmem:[#allocation3 + $0x20] sm:$0xff] %vm2747_vm6, %v3241_v5  ;;  %v2891_v33 = vpop.f32.mrf.mxu2 }
 0x343   : > { %v3038_v44 = vpop.f32.mrf.mxu3  ;;  %v2715_v61 = vpop.f32.mrf.mxu1  ;;  %v2927_v4 = vadd.f32 %v2891_v33, %v2778_v0 }
 0x344   : > { %3298 = vst.msk [vmem:[#allocation2 + $0x9] sm:$0xff] %vm2747_vm6, %v5814_v38  ;;  %v3076_v6 = vadd.f32 %v3038_v44, %v2926_v1  ;;  %v2716_v52 = vadd.f32 %v5746_v62, %v2715_v61 }
 0x345   : > { %v3197_v37 = vpop.f32.mrf.mxu0 }
 0x346   : > { %v3226_v47 = vadd.f32 %v3188_v29, %v3076_v6  ;;  %v2779_v8 = vadd.f32 %v5751_v60, %v2716_v52 }
 0x348   : > { %v3242_v22 = vmax.f32 %v3226_v47, 0.0 }
 0x34a   : > { %3258 = vst.msk [vmem:[#allocation3 + $0x28] sm:$0xff] %vm2747_vm6, %v3242_v22  ;;  %v2894_v10 = vpop.f32.mrf.mxu2 }
 0x34b   : > { %v3041_v43 = vpop.f32.mrf.mxu3  ;;  %v3311_v13 = vld [vmem:[#allocation2 + $0x8] sm:$0xff]  ;;  %v2718_v18 = vpop.f32.mrf.mxu1  ;;  %v2928_v12 = vadd.f32 %v2894_v10, %v2779_v8 }
 0x34c   : > { %v3399_v14 = vld [vmem:[#allocation2 + $0x9] sm:$0xff]  ;;  %v3077_v51 = vadd.f32 %v3041_v43, %v2927_v4  ;;  %4341 = vmatmul.msk.f32.gmra.mxu1 %vm2747_vm6, %v3311_v13  ;;  %v2719_v42 = vadd.f32 %v5746_v62, %v2718_v18 }
 0x34d   : > { %v3484_v40 = vld [vmem:[#allocation2 + $0x2] sm:$0xff]  ;;  %4353 = vmatmul.msk.f32.gmra.mxu2 %vm2747_vm6, %v3399_v14  ;;  %v3485_v36 = vld [vmem:[#allocation2 + $0xa] sm:$0xff] }
 0x34e   : > { %4364 = vmatmul.msk.f32.vlgmr.msra.gmra.mxu3 %vm2747_vm6, %v3484_v40  ;;  %3665 = vst.msk [vmem:[#allocation2 + $0x11] sm:$0x1] %vm3651_vm7, %v6106_v31  ;;  %v3227_v26 = vadd.f32 %v3191_v16, %v3077_v51  ;;  %v2780_v17 = vadd.f32 %v5751_v60, %v2719_v42 }
 0x350   : > { %v3243_v35 = vmax.f32 %v3227_v26, 0.0 }
 0x351   : > { %v3271_v30 = vld [vmem:[#allocation3 + $0x20] ss:$2 sm:$0xff]  ;;  %v3279_v15 = vld [vmem:[#allocation3 + $0x21] ss:$2 sm:$0xff] }
 0x352   : > { %v5829_v23 = vmax.f32 %v3271_v30, %v3279_v15  ;;  %3259 = vst.msk [vmem:[#allocation3 + $0x30] sm:$0xff] %vm2747_vm6, %v3243_v35  ;;  %v2897_v11 = vpop.f32.mrf.mxu2 }
 0x353   : > { %v3044_v19 = vpop.f32.mrf.mxu3  ;;  %v2721_v58 = vpop.f32.mrf.mxu1  ;;  %v2929_v46 = vadd.f32 %v2897_v11, %v2780_v17 }
 0x354   : > { %3299 = vst.msk [vmem:[#allocation2 + $0x49] sm:$0xff] %vm2747_vm6, %v5829_v23  ;;  %v3078_v24 = vadd.f32 %v3044_v19, %v2928_v12  ;;  %v2722_v49 = vadd.f32 %v5746_v62, %v2721_v58 }
 0x355   : > { %v3200_v53 = vpop.f32.mrf.mxu0 }
 0x356   : > { %4365 = vmatmul.msk.f32.gmra.mxu3 %vm2747_vm6, %v3485_v36  ;;  %v3228_v2 = vadd.f32 %v3194_v34, %v3078_v24  ;;  %v2781_v63 = vadd.f32 %v5751_v60, %v2722_v49 }
 0x358   : > { %v3244_v50 = vmax.f32 %v3228_v2, 0.0 }
 0x35a   : > { %3260 = vst.msk [vmem:[#allocation3 + $0x38] sm:$0xff] %vm2747_vm6, %v3244_v50  ;;  %v2900_v9 = vpop.f32.mrf.mxu2 }
 0x35b   : > { %v3047_v20 = vpop.f32.mrf.mxu3  ;;  %v3312_v25 = vld [vmem:[#allocation2 + $0x48] sm:$0xff]  ;;  %v2724_v54 = vpop.f32.mrf.mxu1  ;;  %v2930_v28 = vadd.f32 %v2900_v9, %v2781_v63 }
 0x35c   : > { %v3400_v59 = vld [vmem:[#allocation2 + $0x49] sm:$0xff]  ;;  %v3079_v32 = vadd.f32 %v3047_v20, %v2929_v46  ;;  %4342 = vmatmul.msk.f32.gmra.mxu1 %vm2747_vm6, %v3312_v25  ;;  %3653 = vst.msk [vmem:[#allocation2 + $0x48] sm:$0x1] %vm3651_vm7, %v6106_v31  ;;  %v2725_v56 = vadd.f32 %v5746_v62, %v2724_v54 }
 0x35d   : > { %4354 = vmatmul.msk.f32.gmra.mxu2 %vm2747_vm6, %v3400_v59  ;;  %v3203_v21 = vpop.f32.mrf.mxu0 }
 0x35e   : > { %v3229_v39 = vadd.f32 %v3197_v37, %v3079_v32  ;;  %v2782_v48 = vadd.f32 %v5751_v60, %v2725_v56 }
 0x360   : > { %v3245_v45 = vmax.f32 %v3229_v39, 0.0 }
 0x361   : > { %v3272_v27 = vld [vmem:[#allocation3 + $0x30] ss:$2 sm:$0xff]  ;;  %v3280_v3 = vld [vmem:[#allocation3 + $0x31] ss:$2 sm:$0xff] }
 0x362   : > { %v5844_v41 = vmax.f32 %v3272_v27, %v3280_v3  ;;  %3261 = vst.msk [vmem:[#allocation3 + $0x40] sm:$0xff] %vm2747_vm6, %v3245_v45  ;;  %v2903_v5 = vpop.f32.mrf.mxu2 }
 0x363   : > { %v3050_v29 = vpop.f32.mrf.mxu3  ;;  %v2727_v33 = vpop.f32.mrf.mxu1  ;;  %v2931_v44 = vadd.f32 %v2903_v5, %v2782_v48 }
 0x364   : > { %3300 = vst.msk [vmem:[#allocation2 + $0x51] sm:$0xff] %vm2747_vm6, %v5844_v41  ;;  %v3080_v57 = vadd.f32 %v3050_v29, %v2930_v28  ;;  %v2728_v0 = vadd.f32 %v5746_v62, %v2727_v33 }
 0x365   : > { %v3206_v8 = vpop.f32.mrf.mxu0 }
 0x366   : > { %v3230_v7 = vadd.f32 %v3200_v53, %v3080_v57  ;;  %v2783_v13 = vadd.f32 %v5751_v60, %v2728_v0  ;;  %v4399_v57 = vld [vmem:[%s6073_s11 + $0x28] sm:$0xff]  ;;  %v3581_v0 = vld [vmem:[%s6075_s13 + $0x18] sm:$0xff] }
 0x367   : > { %3897 = vmatpush.msrb.mxu0 %v4399_v57  ;;  %3622 = vmatpush.msrb.mxu1 %v3581_v0 }
 0x368   : > { %v3246_v1 = vmax.f32 %v3230_v7, 0.0 }
 0x36a   : > { %3262 = vst.msk [vmem:[#allocation3 + $0x48] sm:$0xff] %vm2747_vm6, %v3246_v1  ;;  %v2906_v43 = vpop.f32.mrf.mxu2 }
 0x36b   : > { %v3053_v6 = vpop.f32.mrf.mxu3  ;;  %v3313_v61 = vld [vmem:[#allocation2 + $0x50] sm:$0xff]  ;;  %v2932_v18 = vadd.f32 %v2906_v43, %v2783_v13  ;;  %v2730_v34 = vpop.f32.mrf.mxu1 }
 0x36c   : > { %v3401_v47 = vld [vmem:[#allocation2 + $0x51] sm:$0xff]  ;;  %v3081_v22 = vadd.f32 %v3053_v6, %v2931_v44  ;;  %4343 = vmatmul.msk.f32.gmra.mxu1 %vm2747_vm6, %v3313_v61  ;;  %v2731_v15 = vadd.f32 %v5746_v62, %v2730_v34 }
 0x36d   : > { %v3486_v16 = vld [vmem:[#allocation2 + $0x4a] sm:$0xff]  ;;  %4355 = vmatmul.msk.f32.gmra.mxu2 %vm2747_vm6, %v3401_v47  ;;  %v3487_v4 = vld [vmem:[#allocation2 + $0x52] sm:$0xff] }
 0x36e   : > { %4366 = vmatmul.msk.f32.gmra.mxu3 %vm2747_vm6, %v3486_v16  ;;  %3666 = vst.msk [vmem:[#allocation2 + $0x59] sm:$0x1] %vm3651_vm7, %v6106_v31  ;;  %v3231_v10 = vadd.f32 %v3203_v21, %v3081_v22  ;;  %v2784_v42 = vadd.f32 %v5751_v60, %v2731_v15  ;;  %v3580_v22 = vld [vmem:[%s6075_s13 + $0x10] sm:$0xff] }
 0x36f   : > { %3623 = vmatpush.msrb.mxu1 %v3580_v22 }
 0x370   : > { %v3247_v14 = vmax.f32 %v3231_v10, 0.0 }
 0x371   : > { %v3273_v40 = vld [vmem:[#allocation3 + $0x40] ss:$2 sm:$0xff]  ;;  %v3281_v52 = vld [vmem:[#allocation3 + $0x41] ss:$2 sm:$0xff] }
 0x372   : > { %v5859_v51 = vmax.f32 %v3273_v40, %v3281_v52  ;;  %3263 = vst.msk [vmem:[#allocation3 + $0x50] sm:$0xff] %vm2747_vm6, %v3247_v14 }
 0x373   : > { %v3056_v36 = vpop.f32.mrf.mxu3  ;;  %v2733_v46 = vpop.f32.mrf.mxu1 }
 0x374   : > { %3301 = vst.msk [vmem:[#allocation2 + $0x91] sm:$0xff] %vm2747_vm6, %v5859_v51  ;;  %v3082_v26 = vadd.f32 %v3056_v36, %v2932_v18  ;;  %v2734_v59 = vadd.f32 %v5746_v62, %v2733_v46  ;;  %v3578_v18 = vld [vmem:[%s6075_s13] sm:$0xff] }
 0x376   : > { %4367 = vmatmul.msk.f32.gmra.mxu3 %vm2747_vm6, %v3487_v4  ;;  %v3232_v35 = vadd.f32 %v3206_v8, %v3082_v26  ;;  %v2785_v45 = vadd.f32 %v5751_v60, %v2734_v59 }
 0x378   : > { %v3248_v30 = vmax.f32 %v3232_v35, 0.0 }
 0x37a   : > { %3264 = vst.msk [vmem:[#allocation3 + $0x58] sm:$0xff] %vm2747_vm6, %v3248_v30 }
 0x37b   : > { %v3314_v12 = vld [vmem:[#allocation2 + $0x90] sm:$0xff]  ;;  %v2909_v19 = vpop.f32.mrf.mxu2  ;;  %v2736_v27 = vpop.f32.mrf.mxu1 }
 0x37c   : > { %v3402_v11 = vld [vmem:[#allocation2 + $0x91] sm:$0xff]  ;;  %4344 = vmatmul.msk.f32.gmra.mxu1 %vm2747_vm6, %v3314_v12  ;;  %3654 = vst.msk [vmem:[#allocation2 + $0x90] sm:$0x1] %vm3651_vm7, %v6106_v31  ;;  %v2933_v2 = vadd.f32 %v2909_v19, %v2784_v42  ;;  %v3059_v50 = vpop.f32.mrf.mxu3  ;;  %v2737_v29 = vadd.f32 %v5746_v62, %v2736_v27  ;;  %v3690_v19 = vld [vmem:[%s6073_s11 + $0x8] sm:$0xff] }
 0x37d   : > { %4356 = vmatmul.msk.f32.gmra.mxu2 %vm2747_vm6, %v3402_v11  ;;  %v4389_v42 = vld [vmem:[%s6073_s11 + $0x18] sm:$0xff] }
 0x37e   : > { %v3083_v37 = vadd.f32 %v3059_v50, %v2933_v2  ;;  %v2786_v1 = vadd.f32 %v5751_v60, %v2737_v29  ;;  %3729 = vmatpush.msrb.mxu2 %v3690_v19  ;;  %3813 = vmatpush.msrb.mxu3 %v4389_v42 }
 0x381   : > { %v3274_v24 = vld [vmem:[#allocation3 + $0x50] ss:$2 sm:$0xff]  ;;  %v3282_v58 = vld [vmem:[#allocation3 + $0x51] ss:$2 sm:$0xff] }
 0x382   : > { %v5872_v17 = vmax.f32 %v3274_v24, %v3282_v58  ;;  %v3689_v24 = vld [vmem:[%s6073_s11] sm:$0xff]  ;;  %v4388_v58 = vld [vmem:[%s6073_s11 + $0x10] sm:$0xff] }
 0x383   : > { %v2739_v48 = vpop.f32.mrf.mxu1  ;;  %3730 = vmatpush.msrb.mxu2 %v3689_v24  ;;  %3814 = vmatpush.msrb.mxu3 %v4388_v58 }
 0x384   : > { %3302 = vst.msk [vmem:[#allocation2 + $0x99] sm:$0xff] %vm2747_vm6, %v5872_v17  ;;  %v2740_v6 = vadd.f32 %v5746_v62, %v2739_v48  ;;  %v3579_v62 = vld [vmem:[%s6075_s13 + $0x8] sm:$0xff] }
 0x385   : > { %3624 = vmatpush.msrb.mxu1 %v3579_v62 }
 0x386   : > { %v2787_v13 = vadd.f32 %v5751_v60, %v2740_v6 }
 0x387   : > { %v3209_v9 = vpop.f32.mrf.mxu0  ;;  %3625 = vmatpush.msrb.mxu1 %v3578_v18 }
 0x388   : > { %v3233_v20 = vadd.f32 %v3209_v9, %v3083_v37  ;;  %v4398_v9 = vld [vmem:[%s6073_s11 + $0x20] sm:$0xff] }
 0x389   : > { %3898 = vmatpush.msrb.mxu0 %v4398_v9 }
 0x38a   : > { %v3249_v25 = vmax.f32 %v3233_v20, 0.0  ;;  %v5945_v20 = vld [vmem:[%s6072_s10] ss:$0 sm:$0xff] }
 0x38b   : > { %v3315_v49 = vld [vmem:[#allocation2 + $0x98] sm:$0xff]  ;;  %v2912_v63 = vpop.f32.mrf.mxu2 }
 0x38c   : > { %3265 = vst.msk [vmem:[#allocation3 + $0x60] sm:$0xff] %vm2747_vm6, %v3249_v25  ;;  %v3403_v32 = vld [vmem:[#allocation2 + $0x99] sm:$0xff]  ;;  %4345 = vmatmul.msk.f32.gmra.mxu1 %vm2747_vm6, %v3315_v49  ;;  %v2934_v3 = vadd.f32 %v2912_v63, %v2785_v45  ;;  %v3062_v53 = vpop.f32.mrf.mxu3 }
 0x38d   : > { %v3488_v39 = vld [vmem:[#allocation2 + $0x92] sm:$0xff]  ;;  %4357 = vmatmul.msk.f32.gmra.mxu2 %vm2747_vm6, %v3403_v32  ;;  %v3489_v54 = vld [vmem:[#allocation2 + $0x9a] sm:$0xff] }
 0x38e   : > { %4368 = vmatmul.msk.f32.gmra.mxu3 %vm2747_vm6, %v3488_v39  ;;  %3667 = vst.msk [vmem:[#allocation2 + $0xa1] sm:$0x1] %vm3651_vm7, %v6106_v31  ;;  %v3084_v28 = vadd.f32 %v3062_v53, %v2934_v3 }
 0x396   : > { %4369 = vmatmul.msk.f32.gmra.mxu3 %vm2747_vm6, %v3489_v54 }
 0x397   : > { %v3212_v56 = vpop.f32.mrf.mxu0 }
 0x398   : > { %v3234_v5 = vadd.f32 %v3212_v56, %v3084_v28 }
 0x39a   : > { %v3250_v7 = vmax.f32 %v3234_v5, 0.0 }
 0x39b   : > { %v2915_v33 = vpop.f32.mrf.mxu2 }
 0x39c   : > { %3266 = vst.msk [vmem:[#allocation3 + $0x68] sm:$0xff] %vm2747_vm6, %v3250_v7  ;;  %v3065_v44 = vpop.f32.mrf.mxu3  ;;  %v2935_v21 = vadd.f32 %v2915_v33, %v2786_v1 }
 0x39e   : > { %v3085_v61 = vadd.f32 %v3065_v44, %v2935_v21 }
 0x39f   : > { %v3215_v47 = vpop.f32.mrf.mxu0 }
 0x3a0   : > { %v3235_v16 = vadd.f32 %v3215_v47, %v3085_v61 }
 0x3a2   : > { %v3251_v43 = vmax.f32 %v3235_v16, 0.0 }
 0x3a3   : > { %v3275_v4 = vld [vmem:[#allocation3 + $0x60] ss:$2 sm:$0xff]  ;;  %v3283_v10 = vld [vmem:[#allocation3 + $0x61] ss:$2 sm:$0xff]  ;;  %v2918_v40 = vpop.f32.mrf.mxu2 }
 0x3a4   : > { %v5902_v14 = vmax.f32 %v3275_v4, %v3283_v10  ;;  %3267 = vst.msk [vmem:[#allocation3 + $0x70] sm:$0xff] %vm2747_vm6, %v3251_v43  ;;  %v2936_v52 = vadd.f32 %v2918_v40, %v2787_v13  ;;  %v3068_v36 = vpop.f32.mrf.mxu3 }
 0x3a6   : > { %3303 = vst.msk [vmem:[#allocation2 + $0xd9] sm:$0xff] %vm2747_vm6, %v5902_v14  ;;  %v3086_v60 = vadd.f32 %v3068_v36, %v2936_v52 }
 0x3a7   : > { %v3218_v26 = vpop.f32.mrf.mxu0 }
 0x3a8   : > { %v3236_v8 = vadd.f32 %v3218_v26, %v3086_v60 }
 0x3aa   : > { %v3252_v35 = vmax.f32 %v3236_v8, 0.0 }
 0x3ac   : > { %3268 = vst.msk [vmem:[#allocation3 + $0x78] sm:$0xff] %vm2747_vm6, %v3252_v35 }
 0x3ad   : > { %v3316_v34 = vld [vmem:[#allocation2 + $0xd8] sm:$0xff] }
 0x3ae   : > { %v3404_v30 = vld [vmem:[#allocation2 + $0xd9] sm:$0xff]  ;;  %4346 = vmatmul.msk.f32.gmra.mxu1 %vm2747_vm6, %v3316_v34  ;;  %3655 = vst.msk [vmem:[#allocation2 + $0xd8] sm:$0x1] %vm3651_vm7, %v6106_v31 }
 0x3af   : > { %4358 = vmatmul.msk.f32.gmra.mxu2 %vm2747_vm6, %v3404_v30 }
 0x3b3   : > { %v3276_v15 = vld [vmem:[#allocation3 + $0x70] ss:$2 sm:$0xff]  ;;  %v3284_v12 = vld [vmem:[#allocation3 + $0x71] ss:$2 sm:$0xff] }
 0x3b4   : > { %v5915_v11 = vmax.f32 %v3276_v15, %v3284_v12 }
 0x3b6   : > { %3304 = vst.msk [vmem:[#allocation2 + $0xe1] sm:$0xff] %vm2747_vm6, %v5915_v11 }
 0x3b9   : > { %v3363_v25 = vpop.f32.mrf.mxu1 }
 0x3bd   : > { %v3317_v2 = vld [vmem:[#allocation2 + $0xe0] sm:$0xff] }
 0x3be   : > { %v3405_v50 = vld [vmem:[#allocation2 + $0xe1] sm:$0xff]  ;;  %4347 = vmatmul.msk.f32.gmra.mxu1 %vm2747_vm6, %v3317_v2 }
 0x3bf   : > { %v3490_v37 = vld [vmem:[#allocation2 + $0xda] sm:$0xff]  ;;  %4359 = vmatmul.msk.f32.gmra.mxu2 %vm2747_vm6, %v3405_v50  ;;  %v3491_v46 = vld [vmem:[#allocation2 + $0xe2] sm:$0xff] }
 0x3c0   : > { %4370 = vmatmul.msk.f32.gmra.mxu3 %vm2747_vm6, %v3490_v37  ;;  %3668 = vst.msk [vmem:[#allocation2 + $0xe9] sm:$0x1] %vm3651_vm7, %v6106_v31  ;;  %v3452_v59 = vpop.f32.mrf.mxu2  ;;  %v3390_v31 = vadd.f32 %v5945_v20, %v3363_v25 }
 0x3c2   : > { %v3476_v49 = vadd.f32 %v3452_v59, %v3390_v31 }
 0x3c6   : > { %4372 = vmatmul.msk.f32.vlgmr.msrb.gmra.mxu1 %vm2747_vm6, %v5800_v55 }
 0x3c8   : > { %4371 = vmatmul.msk.f32.gmra.mxu3 %vm2747_vm6, %v3491_v46 }
 0x3c9   : > { %v3366_v54 = vpop.f32.mrf.mxu1 }
 0x3ca   : > { %v3391_v45 = vadd.f32 %v5945_v20, %v3366_v54 }
 0x3ce   : > { %4373 = vmatmul.msk.f32.gmra.mxu1 %vm2747_vm6, %v5814_v38 }
 0x3d0   : > { %v3455_v63 = vpop.f32.mrf.mxu2 }
 0x3d1   : > { %v3538_v32 = vpop.f32.mrf.mxu3  ;;  %v3477_v27 = vadd.f32 %v3455_v63, %v3391_v45 }
 0x3d2   : > { %v3562_v39 = vadd.f32 %v3538_v32, %v3476_v49 }
 0x3d4   : > { %v3570_v55 = vmax.f32 %v3562_v39, 0.0 }
 0x3d6   : > { %3657 = vst.msk [vmem:[#allocation2 + $0x1] sm:$0xff] %vm3656_vm8, %v3570_v55  ;;  %4374 = vmatmul.msk.f32.gmra.mxu1 %vm2747_vm6, %v5829_v23 }
 0x3d9   : > { %v3541_v3 = vpop.f32.mrf.mxu3  ;;  %v3369_v23 = vpop.f32.mrf.mxu1 }
 0x3da   : > { %v3563_v53 = vadd.f32 %v3541_v3, %v3477_v27  ;;  %v3392_v48 = vadd.f32 %v5945_v20, %v3369_v23 }
 0x3dc   : > { %v3571_v28 = vmax.f32 %v3563_v53, 0.0 }
 0x3dd   : > { %v3681_v29 = vld [vmem:[#allocation2] sm:$0xff] }
 0x3de   : > { %v3764_v38 = vld [vmem:[#allocation2 + $0x1] sm:$0xff]  ;;  %4380 = vmatmul.msk.f32.vlgmr.msrb.gmra.mxu2 %vm3656_vm8, %v3681_v29  ;;  %3658 = vst.msk [vmem:[#allocation2 + $0x9] sm:$0xff] %vm3656_vm8, %v3571_v28  ;;  %4375 = vmatmul.msk.f32.gmra.mxu1 %vm2747_vm6, %v5844_v41 }
 0x3df   : > { %4390 = vmatmul.msk.f32.vlgmr.msrb.gmra.mxu3 %vm3656_vm8, %v3764_v38 }
 0x3e0   : > { %v3458_v7 = vpop.f32.mrf.mxu2 }
 0x3e1   : > { %v3478_v41 = vadd.f32 %v3458_v7, %v3392_v48  ;;  %v4468_v48 = vld [vmem:[%s6074_s12] ss:$0 sm:$0xff] }
 0x3e5   : > { %v3682_v56 = vld [vmem:[#allocation2 + $0x8] sm:$0xff] }
 0x3e6   : > { %v3765_v57 = vld [vmem:[#allocation2 + $0x9] sm:$0xff]  ;;  %4381 = vmatmul.msk.f32.gmra.mxu2 %vm3656_vm8, %v3682_v56  ;;  %4376 = vmatmul.msk.f32.gmra.mxu1 %vm2747_vm6, %v5859_v51 }
 0x3e7   : > { %v3848_v5 = vld [vmem:[#allocation2 + $0x2] sm:$0xff]  ;;  %4391 = vmatmul.msk.f32.gmra.mxu3 %vm3656_vm8, %v3765_v57  ;;  %v3849_v1 = vld [vmem:[#allocation2 + $0xa] sm:$0xff] }
 0x3e8   : > { %4400 = vmatmul.msk.f32.vlgmr.msrb.gmra.mxu0 %vm3656_vm8, %v3848_v5  ;;  %v4467_v5 = vld [vmem:[%s6076_s14] ss:$0 sm:$0xff] }
 0x3e9   : > { %v3372_v21 = vpop.f32.mrf.mxu1 }
 0x3ea   : > { %v3393_v47 = vadd.f32 %v5945_v20, %v3372_v21 }
 0x3ee   : > { %4377 = vmatmul.msk.f32.gmra.mxu1 %vm2747_vm6, %v5872_v17 }
 0x3f0   : > { %4401 = vmatmul.msk.f32.gmra.mxu0 %vm3656_vm8, %v3849_v1  ;;  %v3461_v61 = vpop.f32.mrf.mxu2 }
 0x3f1   : > { %v3544_v33 = vpop.f32.mrf.mxu3  ;;  %v3479_v51 = vadd.f32 %v3461_v61, %v3393_v47 }
 0x3f2   : > { %v3564_v44 = vadd.f32 %v3544_v33, %v3478_v41 }
 0x3f4   : > { %v3572_v6 = vmax.f32 %v3564_v44, 0.0 }
 0x3f6   : > { %3659 = vst.msk [vmem:[#allocation2 + $0x49] sm:$0xff] %vm3656_vm8, %v3572_v6  ;;  %4378 = vmatmul.msk.f32.gmra.mxu1 %vm2747_vm6, %v5902_v14 }
 0x3f9   : > { %v3547_v16 = vpop.f32.mrf.mxu3  ;;  %v3375_v62 = vpop.f32.mrf.mxu1 }
 0x3fa   : > { %v3565_v0 = vadd.f32 %v3547_v16, %v3479_v51  ;;  %v3394_v40 = vadd.f32 %v5945_v20, %v3375_v62 }
 0x3fc   : > { %v3573_v22 = vmax.f32 %v3565_v0, 0.0 }
 0x3fd   : > { %v3683_v4 = vld [vmem:[#allocation2 + $0x48] sm:$0xff] }
 0x3fe   : > { %v3766_v10 = vld [vmem:[#allocation2 + $0x49] sm:$0xff]  ;;  %3660 = vst.msk [vmem:[#allocation2 + $0x51] sm:$0xff] %vm3656_vm8, %v3573_v22  ;;  %4382 = vmatmul.msk.f32.gmra.mxu2 %vm3656_vm8, %v3683_v4  ;;  %4379 = vmatmul.msk.f32.gmra.mxu1 %vm2747_vm6, %v5915_v11 }
 0x3ff   : > { %4392 = vmatmul.msk.f32.gmra.mxu3 %vm3656_vm8, %v3766_v10 }
 0x400   : > { %v3464_v14 = vpop.f32.mrf.mxu2 }
 0x401   : > { %v3480_v18 = vadd.f32 %v3464_v14, %v3394_v40 }
 0x405   : > { %v3684_v17 = vld [vmem:[#allocation2 + $0x50] sm:$0xff] }
 0x406   : > { %v3767_v43 = vld [vmem:[#allocation2 + $0x51] sm:$0xff]  ;;  %4383 = vmatmul.msk.f32.gmra.mxu2 %vm3656_vm8, %v3684_v17 }
 0x407   : > { %v3850_v13 = vld [vmem:[#allocation2 + $0x4a] sm:$0xff]  ;;  %4393 = vmatmul.msk.f32.gmra.mxu3 %vm3656_vm8, %v3767_v43  ;;  %v3851_v52 = vld [vmem:[#allocation2 + $0x52] sm:$0xff] }
 0x408   : > { %4402 = vmatmul.msk.f32.gmra.mxu0 %vm3656_vm8, %v3850_v13 }
 0x409   : > { %v3378_v26 = vpop.f32.mrf.mxu1 }
 0x40a   : > { %v3395_v34 = vadd.f32 %v5945_v20, %v3378_v26 }
 0x410   : > { %4403 = vmatmul.msk.f32.gmra.mxu0 %vm3656_vm8, %v3851_v52  ;;  %v3467_v35 = vpop.f32.mrf.mxu2 }
 0x411   : > { %v3550_v36 = vpop.f32.mrf.mxu3  ;;  %v3481_v30 = vadd.f32 %v3467_v35, %v3395_v34 }
 0x412   : > { %v3566_v60 = vadd.f32 %v3550_v36, %v3480_v18 }
 0x414   : > { %v3574_v8 = vmax.f32 %v3566_v60, 0.0 }
 0x416   : > { %3661 = vst.msk [vmem:[#allocation2 + $0x91] sm:$0xff] %vm3656_vm8, %v3574_v8 }
 0x419   : > { %v3553_v15 = vpop.f32.mrf.mxu3 }
 0x41a   : > { %v3567_v12 = vadd.f32 %v3553_v15, %v3481_v30 }
 0x41c   : > { %v3575_v11 = vmax.f32 %v3567_v12, 0.0 }
 0x41d   : > { %v3685_v19 = vld [vmem:[#allocation2 + $0x90] sm:$0xff] }
 0x41e   : > { %v3768_v42 = vld [vmem:[#allocation2 + $0x91] sm:$0xff]  ;;  %3662 = vst.msk [vmem:[#allocation2 + $0x99] sm:$0xff] %vm3656_vm8, %v3575_v11  ;;  %4384 = vmatmul.msk.f32.gmra.mxu2 %vm3656_vm8, %v3685_v19 }
 0x41f   : > { %4394 = vmatmul.msk.f32.gmra.mxu3 %vm3656_vm8, %v3768_v42 }
 0x425   : > { %v3686_v24 = vld [vmem:[#allocation2 + $0x98] sm:$0xff] }
 0x426   : > { %v3769_v58 = vld [vmem:[#allocation2 + $0x99] sm:$0xff]  ;;  %4385 = vmatmul.msk.f32.gmra.mxu2 %vm3656_vm8, %v3686_v24 }
 0x427   : > { %v3852_v2 = vld [vmem:[#allocation2 + $0x92] sm:$0xff]  ;;  %4395 = vmatmul.msk.f32.gmra.mxu3 %vm3656_vm8, %v3769_v58  ;;  %v3853_v50 = vld [vmem:[#allocation2 + $0x9a] sm:$0xff] }
 0x428   : > { %4404 = vmatmul.msk.f32.gmra.mxu0 %vm3656_vm8, %v3852_v2 }
 0x42b   : > { %v3381_v37 = vpop.f32.mrf.mxu1 }
 0x42c   : > { %v3396_v25 = vadd.f32 %v5945_v20, %v3381_v37 }
 0x430   : > { %4405 = vmatmul.msk.f32.gmra.mxu0 %vm3656_vm8, %v3853_v50 }
 0x432   : > { %v3470_v9 = vpop.f32.mrf.mxu2 }
 0x433   : > { %v3482_v59 = vadd.f32 %v3470_v9, %v3396_v25 }
 0x43b   : > { %v3384_v46 = vpop.f32.mrf.mxu1 }
 0x43c   : > { %v3397_v55 = vadd.f32 %v5945_v20, %v3384_v46 }
 0x442   : > { %v3473_v54 = vpop.f32.mrf.mxu2 }
 0x443   : > { %v3556_v31 = vpop.f32.mrf.mxu3  ;;  %v3627_v32 = vpop.f32.mrf.mxu1  ;;  %v3483_v63 = vadd.f32 %v3473_v54, %v3397_v55 }
 0x444   : > { %v3568_v49 = vadd.f32 %v3556_v31, %v3482_v59  ;;  %v3628_v23 = vadd.f32 %v4467_v5, %v3627_v32 }
 0x446   : > { %v3576_v39 = vmax.f32 %v3568_v49, 0.0  ;;  %v3673_v41 = vadd.f32 %v4468_v48, %v3628_v23 }
 0x448   : > { %3663 = vst.msk [vmem:[#allocation2 + $0xd9] sm:$0xff] %vm3656_vm8, %v3576_v39 }
 0x44b   : > { %v3559_v45 = vpop.f32.mrf.mxu3  ;;  %v3630_v3 = vpop.f32.mrf.mxu1 }
 0x44c   : > { %v3569_v27 = vadd.f32 %v3559_v45, %v3483_v63  ;;  %v3631_v6 = vadd.f32 %v4467_v5, %v3630_v3 }
 0x44e   : > { %v3577_v53 = vmax.f32 %v3569_v27, 0.0  ;;  %v3674_v10 = vadd.f32 %v4468_v48, %v3631_v6 }
 0x44f   : > { %v3687_v28 = vld [vmem:[#allocation2 + $0xd8] sm:$0xff] }
 0x450   : > { %v3770_v29 = vld [vmem:[#allocation2 + $0xd9] sm:$0xff]  ;;  %3664 = vst.msk [vmem:[#allocation2 + $0xe1] sm:$0xff] %vm3656_vm8, %v3577_v53  ;;  %4386 = vmatmul.msk.f32.gmra.mxu2 %vm3656_vm8, %v3687_v28 }
 0x451   : > { %4396 = vmatmul.msk.f32.gmra.mxu3 %vm3656_vm8, %v3770_v29 }
 0x453   : > { %v3633_v38 = vpop.f32.mrf.mxu1 }
 0x454   : > { %v3634_v34 = vadd.f32 %v4467_v5, %v3633_v38 }
 0x456   : > { %v3675_v11 = vadd.f32 %v4468_v48, %v3634_v34 }
 0x457   : > { %v3688_v56 = vld [vmem:[#allocation2 + $0xe0] sm:$0xff] }
 0x458   : > { %v3771_v57 = vld [vmem:[#allocation2 + $0xe1] sm:$0xff]  ;;  %4387 = vmatmul.msk.f32.gmra.mxu2 %vm3656_vm8, %v3688_v56 }
 0x459   : > { %v3854_v20 = vld [vmem:[#allocation2 + $0xda] sm:$0xff]  ;;  %4397 = vmatmul.msk.f32.gmra.mxu3 %vm3656_vm8, %v3771_v57  ;;  %v3855_v1 = vld [vmem:[#allocation2 + $0xe2] sm:$0xff] }
 0x45a   : > { %4406 = vmatmul.msk.f32.gmra.mxu0 %vm3656_vm8, %v3854_v20 }
 0x45b   : > { %v3636_v7 = vpop.f32.mrf.mxu1 }
 0x45c   : > { %v3637_v58 = vadd.f32 %v4467_v5, %v3636_v7 }
 0x45e   : > { %v3676_v9 = vadd.f32 %v4468_v48, %v3637_v58 }
 0x461   : > { %v3732_v33 = vpop.f32.mrf.mxu2 }
 0x462   : > { %4407 = vmatmul.msk.f32.gmra.mxu0 %vm3656_vm8, %v3855_v1  ;;  %v3816_v44 = vpop.f32.mrf.mxu3  ;;  %v3756_v21 = vadd.f32 %v3732_v33, %v3673_v41 }
 0x463   : > { %v3639_v51 = vpop.f32.mrf.mxu1 }
 0x464   : > { %v3840_v61 = vadd.f32 %v3816_v44, %v3756_v21  ;;  %v3640_v16 = vadd.f32 %v4467_v5, %v3639_v51 }
 0x465   : > { %v3900_v47 = vpop.f32.mrf.mxu0 }
 0x466   : > { %v3924_v0 = vadd.f32 %v3900_v47, %v3840_v61  ;;  %v3677_v22 = vadd.f32 %v4468_v48, %v3640_v16 }
 0x468   : > { %v3932_v4 = vmax.f32 %v3924_v0, 0.0 }
 0x469   : > { %v3735_v17 = vpop.f32.mrf.mxu2 }
 0x46a   : > { %3940 = vst.msk [vmem:[%s6010_s0] sm:$0xff] %vm3656_vm8, %v3932_v4  ;;  %v3757_v43 = vadd.f32 %v3735_v17, %v3674_v10  ;;  %v3819_v13 = vpop.f32.mrf.mxu3 }
 0x46b   : > { %v3642_v14 = vpop.f32.mrf.mxu1 }
 0x46c   : > { %v3841_v62 = vadd.f32 %v3819_v13, %v3757_v43  ;;  %v3643_v52 = vadd.f32 %v4467_v5, %v3642_v14 }
 0x46d   : > { %v3903_v40 = vpop.f32.mrf.mxu0 }
 0x46e   : > { %v3925_v18 = vadd.f32 %v3903_v40, %v3841_v62  ;;  %v3678_v36 = vadd.f32 %v4468_v48, %v3643_v52 }
 0x470   : > { %v3933_v60 = vmax.f32 %v3925_v18, 0.0 }
 0x472   : > { %3941 = vst.msk [vmem:[%s6010_s0 + $0x8] sm:$0xff] %vm3656_vm8, %v3933_v60 }
 0x473   : > { %v3645_v26 = vpop.f32.mrf.mxu1 }
 0x474   : > { %v3646_v8 = vadd.f32 %v4467_v5, %v3645_v26 }
 0x476   : > { %v3679_v35 = vadd.f32 %v4468_v48, %v3646_v8 }
 0x47b   : > { %v3648_v30 = vpop.f32.mrf.mxu1 }
 0x47c   : > { %v3649_v15 = vadd.f32 %v4467_v5, %v3648_v30 }
 0x47e   : > { %v3680_v12 = vadd.f32 %v4468_v48, %v3649_v15 }
 0x481   : > { %v3738_v19 = vpop.f32.mrf.mxu2 }
 0x482   : > { %v3822_v42 = vpop.f32.mrf.mxu3  ;;  %v3758_v24 = vadd.f32 %v3738_v19, %v3675_v11 }
 0x484   : > { %v3842_v2 = vadd.f32 %v3822_v42, %v3758_v24 }
 0x485   : > { %v3906_v50 = vpop.f32.mrf.mxu0 }
 0x486   : > { %v3926_v37 = vadd.f32 %v3906_v50, %v3842_v2 }
 0x488   : > { %v3934_v46 = vmax.f32 %v3926_v37, 0.0 }
 0x489   : > { %v3741_v25 = vpop.f32.mrf.mxu2 }
 0x48a   : > { %3942 = vst.msk [vmem:[%s6010_s0 + $0x10] sm:$0xff] %vm3656_vm8, %v3934_v46  ;;  %v3759_v59 = vadd.f32 %v3741_v25, %v3676_v9  ;;  %v3825_v31 = vpop.f32.mrf.mxu3 }
 0x48c   : > { %v3843_v49 = vadd.f32 %v3825_v31, %v3759_v59 }
 0x48d   : > { %v3909_v32 = vpop.f32.mrf.mxu0 }
 0x48e   : > { %v3927_v39 = vadd.f32 %v3909_v32, %v3843_v49 }
 0x490   : > { %v3935_v54 = vmax.f32 %v3927_v39, 0.0 }
 0x492   : > { %3943 = vst.msk [vmem:[%s6010_s0 + $0x18] sm:$0xff] %vm3656_vm8, %v3935_v54 }
 0x4a1   : > { %v3744_v55 = vpop.f32.mrf.mxu2 }
 0x4a2   : > { %v3828_v63 = vpop.f32.mrf.mxu3  ;;  %v3760_v45 = vadd.f32 %v3744_v55, %v3677_v22 }
 0x4a4   : > { %v3844_v27 = vadd.f32 %v3828_v63, %v3760_v45 }
 0x4a5   : > { %v3912_v3 = vpop.f32.mrf.mxu0 }
 0x4a6   : > { %v3928_v53 = vadd.f32 %v3912_v3, %v3844_v27 }
 0x4a8   : > { %v3936_v28 = vmax.f32 %v3928_v53, 0.0 }
 0x4a9   : > { %v3747_v29 = vpop.f32.mrf.mxu2 }
 0x4aa   : > { %3944 = vst.msk [vmem:[%s6010_s0 + $0x20] sm:$0xff] %vm3656_vm8, %v3936_v28  ;;  %v3761_v38 = vadd.f32 %v3747_v29, %v3678_v36  ;;  %v3831_v56 = vpop.f32.mrf.mxu3 }
 0x4ac   : > { %v3845_v57 = vadd.f32 %v3831_v56, %v3761_v38 }
 0x4ad   : > { %v3915_v20 = vpop.f32.mrf.mxu0 }
 0x4ae   : > { %v3929_v5 = vadd.f32 %v3915_v20, %v3845_v57 }
 0x4b0   : > { %v3937_v23 = vmax.f32 %v3929_v5, 0.0 }
 0x4b2   : > { %3945 = vst.msk [vmem:[%s6010_s0 + $0x28] sm:$0xff] %vm3656_vm8, %v3937_v23 }
 0x4d3   : > { %v3750_v7 = vpop.f32.mrf.mxu2 }
 0x4d4   : > { %v3834_v48 = vpop.f32.mrf.mxu3  ;;  %v3762_v1 = vadd.f32 %v3750_v7, %v3679_v35 }
 0x4d6   : > { %v3846_v41 = vadd.f32 %v3834_v48, %v3762_v1 }
 0x4d7   : > { %v3918_v33 = vpop.f32.mrf.mxu0 }
 0x4d8   : > { %v3930_v44 = vadd.f32 %v3918_v33, %v3846_v41 }
 0x4da   : > { %v3938_v21 = vmax.f32 %v3930_v44, 0.0 }
 0x4db   : > { %v3753_v6 = vpop.f32.mrf.mxu2 }
 0x4dc   : > { %3946 = vst.msk [vmem:[%s6010_s0 + $0x30] sm:$0xff] %vm3656_vm8, %v3938_v21  ;;  %v3763_v61 = vadd.f32 %v3753_v6, %v3680_v12  ;;  %v3837_v47 = vpop.f32.mrf.mxu3 }
 0x4de   : > { %v3847_v51 = vadd.f32 %v3837_v47, %v3763_v61 }
 0x4df   : > { %v3921_v16 = vpop.f32.mrf.mxu0 }
 0x4e0   : > { %v3931_v0 = vadd.f32 %v3921_v16, %v3847_v51 }
 0x4e2   : > { %v3939_v22 = vmax.f32 %v3931_v0, 0.0 }
 0x4e4   : > { %3947 = vst.msk [vmem:[%s6010_s0 + $0x38] sm:$0xff] %vm3656_vm8, %v3939_v22 }
 0x4e5   : > { %4497 = shalt.err (!%p4494_p3)
}
 0x4e6   : > { %s4535_s17 = smov 128   ;;  %s4536_s0 = smov 8  }
 0x4e7   : > { %4420 = dma.vmem_to_hbm [thread:$0]  (%p4655_p5), %s3963_s16, 1024, %s3965_s23, %s3949_s22, %s4535_s17, %s4535_s17, %s4536_s0  }
 0x4e8 PF: > { %p4426_p4 = scmp.ge.s32.totalorder %s4532_s21, 2  ;;  %s3979_s27 = sand.u32 1, %s4520_s18  }
 0x4e9   : > { %s3980_s3 = scalar_lea.sflag [#allocation5], %s3979_s27 }
 0x4ea   : > { %p4423_p7 = pnand %p4426_p4, %p4659_p6 }
 0x4ec   : > { %p4424_p8 = pneg %p4423_p7 }
 0x4ee   : > { %4515 = dma.done.wait (%p4424_p8), %s3980_s3, 1024  }
 0x4ef   : > { %4517 = vsyncadd (%p4424_p8), %s3980_s3, 4294966272  ;;  %s6125_s1 = sld [smem:[#allocation7_spill]]  ;;  %p25_p9 = scmp.ge.s32.totalorder %s4642_s24, 4  }
 0x4f0   : > { %s6126_s18 = smov %s4524_s19  ;;  %s6127_s19 = smov %s4528_s20 }
 0x4f1   : > { %s6129_s21 = smov %s4642_s24  ;;  %27 = sbr.rel (!%p25_p9) target bundleno = 8 (0x8), region = 158 }
 0x4f5   : > { %s6128_s20 = smov %s6125_s1 }
 0x4f6   :  { %3986 = vsyncpa [#allocation5], 1 }
 0x4f7   :  { %3988 = vsyncpa [#allocation5 + $0x1], 1 }

</bundles_post_ra>
